<compile_context>
chip_gen: v7x
topology: tpu7x:2x2x1
jax: 0.10.0
libtpu: 0.0.40
codegen_flags: <defaults>
</compile_context>

<pallas_src>
import math

import jax
import jax.numpy as jnp
from jax import lax
from jax.experimental import pallas as pl
from jax.experimental.pallas import tpu as pltpu


def _round_up(x, m):
    return ((x + m - 1) // m) * m


def _pick_tile(n, candidates=(512, 256, 128)):
    """Largest candidate tile that divides n with >=2 tiles (else the full extent)."""
    # TODO(synk): for large HW that is not divisible by any candidate, add a padded /
    # masked tail tile instead of falling back to a single full-extent tile.
    for c in candidates:
        if n % c == 0 and n // c >= 2:
            return c
    return n


_VMEM_LIMIT = None


def _vmem_limit_bytes():
    """Generation-dependent scoped-VMEM budget (~48 MiB on v7x, ~96 MiB on v5e/v6e)."""
    global _VMEM_LIMIT
    if _VMEM_LIMIT is None:
        cap = None
        try:
            cap = int(getattr(pltpu.get_tpu_info(), "vmem_capacity_bytes", 0)) or None
        except Exception:
            cap = None
        if cap is None:
            cap = 64 * 1024 * 1024
        _VMEM_LIMIT = int(min(cap * 3 // 4, 100 * 1024 * 1024))
    return _VMEM_LIMIT


# --------------------------------------------------------------------------
# Fused full-resolution branch: conv1x1+ReLU -> SA_Block as flash attention.
# grid = (batch, query tiles, kv tiles); online softmax over the kv axis.
# --------------------------------------------------------------------------
def _sa_flash_kernel(xq_ref, xk_ref, wg_ref, bg_ref, wq_ref, bq_ref,
                     wkv_ref, bkv_ref, gamma_ref, o_ref, m_sc, l_sc, acc_sc):
    f32 = jnp.float32
    bf16 = jnp.bfloat16
    C = wg_ref.shape[1]
    kv_i = pl.program_id(2)

    @pl.when(kv_i == 0)
    def _init():
        m_sc[...] = jnp.full_like(m_sc, -jnp.inf)
        l_sc[...] = jnp.zeros_like(l_sc)
        acc_sc[...] = jnp.zeros_like(acc_sc)

    # Query side: entry 1x1 conv + ReLU + q projection (recompute per kv step is tiny
    # compared to the HW^2 attention work).
    yq = jnp.maximum(
        jnp.dot(xq_ref[0], wg_ref[...], preferred_element_type=f32) + bg_ref[...], 0.0)
    q = (jnp.dot(yq.astype(bf16), wq_ref[...], preferred_element_type=f32)
         + bq_ref[...]).astype(bf16)                                     # (tq, d)

    # Key/value side: entry 1x1 conv + ReLU, then one fused [wv | wk] projection.
    yk = jnp.maximum(
        jnp.dot(xk_ref[0], wg_ref[...], preferred_element_type=f32) + bg_ref[...], 0.0)
    vk = jnp.dot(yk.astype(bf16), wkv_ref[...], preferred_element_type=f32) + bkv_ref[...]
    v = vk[:, :C].astype(bf16)                                           # (tk, C)
    k = vk[:, C:].astype(bf16)                                           # (tk, d)

    # energy[i, j] = q_i . k_j  (NT contraction: no explicit key transpose via the XLU).
    energy = lax.dot_general(q, k, dimension_numbers=(((1,), (1,)), ((), ())),
                             preferred_element_type=f32)                 # (tq, tk)

    # Online softmax over the key axis (matches torch softmax(dim=-1)).
    m_prev = m_sc[...]
    m_new = jnp.maximum(m_prev, jnp.max(energy, axis=-1, keepdims=True))
    alpha = jnp.exp(m_prev - m_new)
    p = jnp.exp(energy - m_new)
    l_sc[...] = alpha * l_sc[...] + jnp.sum(p, axis=-1, keepdims=True)
    acc_sc[...] = alpha * acc_sc[...] + jnp.dot(p.astype(bf16), v,
                                                preferred_element_type=f32)
    m_sc[...] = m_new

    @pl.when(kv_i == pl.num_programs(2) - 1)
    def _finish():
        out = acc_sc[...] * pl.reciprocal(l_sc[...], approx=True)        # EUP, not VALU
        o_ref[0] = (gamma_ref[0] * out + yq).astype(o_ref.dtype)         # residual on y


def sa_branch_fused(x_flat, params):
    """x_flat: (B, HW, Cin) f32 -> (B, HW, C) bf16 == SA_Block(ReLU(conv1x1(x)))."""
    B, HW, Cin = x_flat.shape
    C = params["gc3_w"].shape[1]
    d = params["sa_q_w"].shape[1]
    bf16 = jnp.bfloat16

    # Pre-cast projection weights to bf16 (halves weight DMA / resident VMEM, removes
    # per-grid-step casts); fuse value & key weights into one [wv | wk] matmul.
    wq = params["sa_q_w"].astype(bf16)
    wkv = jnp.concatenate([params["sa_v_w"], params["sa_k_w"]], axis=1).astype(bf16)
    bq = params["sa_q_b"].reshape(1, d)
    bkv = jnp.concatenate([params["sa_v_b"], params["sa_k_b"]], axis=0).reshape(1, C + d)

    tq = _pick_tile(HW)
    tk = _pick_tile(HW)
    grid = (B, HW // tq, HW // tk)

    def rep2(a):
        return pl.BlockSpec(a.shape, lambda b, qi, ki: (0, 0))

    return pl.pallas_call(
        _sa_flash_kernel,
        out_shape=jax.ShapeDtypeStruct((B, HW, C), bf16),
        grid=grid,
        in_specs=[
            pl.BlockSpec((1, tq, Cin), lambda b, qi, ki: (b, qi, 0)),    # x (query rows)
            pl.BlockSpec((1, tk, Cin), lambda b, qi, ki: (b, ki, 0)),    # x (key rows)
            rep2(params["gc3_w"]),                                       # (Cin, C) f32
            pl.BlockSpec((1, C), lambda b, qi, ki: (0, 0)),              # bg
            rep2(wq),                                                    # (C, d) bf16
            pl.BlockSpec((1, d), lambda b, qi, ki: (0, 0)),              # bq
            rep2(wkv),                                                   # (C, C+d) bf16
            pl.BlockSpec((1, C + d), lambda b, qi, ki: (0, 0)),          # bkv
            pl.BlockSpec(memory_space=pltpu.MemorySpace.SMEM),           # gamma scalar
        ],
        out_specs=pl.BlockSpec((1, tq, C), lambda b, qi, ki: (b, qi, 0)),
        scratch_shapes=[pltpu.VMEM((tq, 1), jnp.float32),                # running max
                        pltpu.VMEM((tq, 1), jnp.float32),                # running sum
                        pltpu.VMEM((tq, C), jnp.float32)],               # accumulator
        compiler_params=pltpu.CompilerParams(
            dimension_semantics=("parallel", "parallel", "arbitrary"),
            vmem_limit_bytes=_vmem_limit_bytes()),
    )(x_flat, x_flat,
      params["gc3_w"], params["gc3_b"].reshape(1, C),
      wq, bq, wkv, bkv, params["sa_gamma"].reshape(1))


# --------------------------------------------------------------------------
# Fused output heads: relu(concat_K(branches) @ concat_N(head weights) + bias)
# Branch tiles are assembled into a (tm, 4C) bf16 VMEM scratch -> one full-depth
# K=256 dot, lane-dense (N=512) stores; the concat is never materialized in HBM.
# --------------------------------------------------------------------------
def _heads_kernel(b0_ref, b1_ref, b2_ref, b3_ref, w_ref, bias_ref, o_ref, lhs_sc):
    C = b0_ref.shape[-1]
    lhs_sc[:, 0 * C:1 * C] = b0_ref[...]
    lhs_sc[:, 1 * C:2 * C] = b1_ref[...]
    lhs_sc[:, 2 * C:3 * C] = b2_ref[...]
    lhs_sc[:, 3 * C:4 * C] = b3_ref[...]
    acc = jnp.dot(lhs_sc[...], w_ref[...], preferred_element_type=jnp.float32)
    o_ref[...] = jnp.maximum(acc + bias_ref[...], 0.0)                   # f32 epilogue


def fused_output_heads(branches_flat, w_full_bf16, bias_full, tm_max=512):
    """branches_flat: 4 x (M, C) bf16; w_full_bf16: (4C, Nsum) bf16; bias_full: (Nsum,)."""
    M, C = branches_flat[0].shape
    K, Nsum = w_full_bf16.shape
    tm = min(tm_max, _round_up(M, 8))
    if tm >= M and M > 8:              # keep >=2 grid steps for v7x's two TensorCores
        tm = max(8, _round_up(-(-M // 2), 8))
    M_pad = _round_up(M, tm)
    if M_pad != M:
        branches_flat = [jnp.pad(a, ((0, M_pad - M), (0, 0))) for a in branches_flat]

    b_spec = pl.BlockSpec((tm, C), lambda i: (i, 0))
    out = pl.pallas_call(
        _heads_kernel,
        out_shape=jax.ShapeDtypeStruct((M_pad, Nsum), jnp.float32),
        grid=(M_pad // tm,),
        in_specs=[b_spec] * 4 + [pl.BlockSpec((K, Nsum), lambda i: (0, 0)),
                                 pl.BlockSpec((1, Nsum), lambda i: (0, 0))],
        out_specs=pl.BlockSpec((tm, Nsum), lambda i: (i, 0)),
        scratch_shapes=[pltpu.VMEM((tm, K), jnp.bfloat16)],
        compiler_params=pltpu.CompilerParams(
            dimension_semantics=("parallel",),
            vmem_limit_bytes=_vmem_limit_bytes()),
    )(*branches_flat, w_full_bf16, bias_full.reshape(1, Nsum))
    return out[:M]


# --------------------------------------------------------------------------
# Plain-JAX glue (pooling / bilinear resize / tiny pooled convs), PyTorch semantics
# --------------------------------------------------------------------------
def adaptive_avg_pool_nhwc(x, ps):
    """torch.nn.AdaptiveAvgPool2d semantics, NHWC input -> (B, ps, ps, C)."""
    # TODO(synk): irregular bin averaging has no clean rectangular Pallas tile; plain JAX.
    B, H, W, C = x.shape
    rows = []
    for i in range(ps):
        h0 = (i * H) // ps
        h1 = -((-(i + 1) * H) // ps)
        cols = []
        for j in range(ps):
            w0 = (j * W) // ps
            w1 = -((-(j + 1) * W) // ps)
            cols.append(jnp.mean(x[:, h0:h1, w0:w1, :], axis=(1, 2)))
        rows.append(jnp.stack(cols, axis=1))
    return jnp.stack(rows, axis=1)


def bilinear_resize_nhwc(x, out_h, out_w, align_corners):
    """PyTorch F.interpolate(mode='bilinear') semantics on NHWC."""
    # TODO(synk): gather-based bilinear resize has no clean Pallas tile pattern here.
    B, H, W, C = x.shape

    def coords(out_s, in_s):
        idx = jnp.arange(out_s, dtype=jnp.float32)
        if align_corners:
            if out_s == 1:
                src = jnp.zeros((out_s,), jnp.float32)
            else:
                src = idx * ((in_s - 1) / (out_s - 1))
        else:
            src = (idx + 0.5) * (in_s / out_s) - 0.5
            src = jnp.maximum(src, 0.0)
        i0 = jnp.clip(jnp.floor(src).astype(jnp.int32), 0, in_s - 1)
        i1 = jnp.minimum(i0 + 1, in_s - 1)
        w1 = src - i0.astype(jnp.float32)
        return i0, i1, w1

    y0, y1, wy = coords(out_h, H)
    x0, x1, wx = coords(out_w, W)

    r0 = x[:, y0, :, :]
    r1 = x[:, y1, :, :]
    rows = r0 * (1.0 - wy)[None, :, None, None] + r1 * wy[None, :, None, None]
    c0 = rows[:, :, x0, :]
    c1 = rows[:, :, x1, :]
    return c0 * (1.0 - wx)[None, None, :, None] + c1 * wx[None, None, :, None]


def pooled_branch(x, ps, w, b, out_h, out_w):
    """AdaptiveAvgPool2d(ps) -> conv1x1 -> ReLU -> bilinear(align_corners=True).
    M is only 1/9/25 tokens: a Pallas launch here is pure overhead, leave to XLA."""
    pooled = adaptive_avg_pool_nhwc(x, ps)                               # (B, ps, ps, Cin)
    y = jnp.maximum(jnp.einsum('bijc,cd->bijd', pooled, w) + b, 0.0)
    return bilinear_resize_nhwc(y, out_h, out_w, align_corners=True)


# --------------------------------------------------------------------------
# Parameter init (deterministic, synthetic)
# --------------------------------------------------------------------------
def init_gcm_params(key, in_channels, out_channels):
    out_channel_list = [256, 128, 64, 64]
    params = {}
    keys = jax.random.split(key, 32)
    it = iter(range(32))

    def conv(cin, cout):
        kw = keys[next(it)]
        kb = keys[next(it)]
        scale = 1.0 / math.sqrt(cin)
        w = jax.random.normal(kw, (cin, cout), jnp.float32) * scale
        b = jax.random.normal(kb, (cout,), jnp.float32) * 0.01
        return w, b

    # three pooled branches + the SA-branch entry conv
    for i in range(4):
        params[f"gc{i}_w"], params[f"gc{i}_b"] = conv(in_channels, out_channels)
    # SA_Block(64): query/key convs out_channels//8, value conv out_channels
    d = out_channels // 8
    params["sa_q_w"], params["sa_q_b"] = conv(out_channels, d)
    params["sa_k_w"], params["sa_k_b"] = conv(out_channels, d)
    params["sa_v_w"], params["sa_v_b"] = conv(out_channels, out_channels)
    params["sa_gamma"] = jnp.ones((1,), jnp.float32)
    # output heads
    for i in range(4):
        params[f"out{i}_w"], params[f"out{i}_b"] = conv(out_channels * 4, out_channel_list[i])
    return params


# --------------------------------------------------------------------------
# GCM forward (Pallas) and a pure-JAX f32 reference
# --------------------------------------------------------------------------
def gcm_forward(x_nchw, params):
    x = jnp.transpose(x_nchw, (0, 2, 3, 1)).astype(jnp.float32)         # NCHW -> NHWC
    B, H, W, Cin = x.shape
    HW = H * W
    C = params["gc3_w"].shape[1]
    bf16 = jnp.bfloat16

    # pooled global-context branches (tiny -> plain XLA), resized back to (H, W);
    # bf16 so the fused heads kernel reads half the activation bytes.
    branches = []
    for i, ps in enumerate((1, 3, 5)):
        br = pooled_branch(x, ps, params[f"gc{i}_w"], params[f"gc{i}_b"], H, W)
        branches.append(br.astype(bf16))

    # full-resolution branch: fused conv+ReLU+SA_Block flash-attention kernel (bf16 out)
    sa = sa_branch_fused(x.reshape(B, HW, Cin), params)                  # (B, HW, C)
    branches.append(sa.reshape(B, H, W, C))

    # fused output heads: single K=4C matmul against the N-concatenated head weights
    head_w = jnp.concatenate([params[f"out{i}_w"] for i in range(4)], axis=1).astype(bf16)
    head_b = jnp.concatenate([params[f"out{i}_b"] for i in range(4)], axis=0)
    n_sizes = [params[f"out{i}_w"].shape[1] for i in range(4)]

    branches_flat = [b.reshape(B * HW, C) for b in branches]
    fused = fused_output_heads(branches_flat, head_w, head_b)            # (B*HW, sum(nc))

    # slice per head, bilinear upsample (align_corners=False), back to NCHW
    outputs = []
    off = 0
    for i, s in enumerate((2, 4, 8, 16)):
        nc = n_sizes[i]
        y = fused[:, off:off + nc].reshape(B, H, W, nc)
        off += nc
        y = bilinear_resize_nhwc(y, H * s, W * s, align_corners=False)
        outputs.append(jnp.transpose(y, (0, 3, 1, 2)))
    return outputs


def gcm_reference(x_nchw, params):
    """Pure-JAX f32 reference of the same forward pass (numeric validation)."""
    x = jnp.transpose(x_nchw, (0, 2, 3, 1)).astype(jnp.float32)
    B, H, W, Cin = x.shape
    C = params["gc3_w"].shape[1]
    branches = [pooled_branch(x, ps, params[f"gc{i}_w"], params[f"gc{i}_b"], H, W)
                for i, ps in enumerate((1, 3, 5))]
    y = jnp.maximum(jnp.einsum('bhwc,cd->bhwd', x, params["gc3_w"]) + params["gc3_b"], 0.0)
    yf = y.reshape(B, H * W, C)
    q = yf @ params["sa_q_w"] + params["sa_q_b"]
    k = yf @ params["sa_k_w"] + params["sa_k_b"]
    v = yf @ params["sa_v_w"] + params["sa_v_b"]
    attn = jax.nn.softmax(jnp.einsum('bqd,bkd->bqk', q, k), axis=-1)
    sa = params["sa_gamma"][0] * jnp.einsum('bqk,bkc->bqc', attn, v) + yf
    branches.append(sa.reshape(B, H, W, C))
    cat = jnp.concatenate(branches, axis=-1)
    outputs = []
    for i, s in enumerate((2, 4, 8, 16)):
        yh = jnp.maximum(jnp.einsum('bhwc,cd->bhwd', cat, params[f"out{i}_w"])
                         + params[f"out{i}_b"], 0.0)
        yh = bilinear_resize_nhwc(yh, H * s, W * s, align_corners=False)
        outputs.append(jnp.transpose(yh, (0, 3, 1, 2)))
    return outputs


# --------------------------------------------------------------------------
# Main
# --------------------------------------------------------------------------
if __name__ == "__main__":
    B, Cin, H, W = 2, 4, 16, 16
    out_channels = 64   # SA_Block is hard-coded to 64 channels in the PyTorch module

    key = jax.random.PRNGKey(0)
    kx, kp = jax.random.split(key)
    x = jax.random.normal(kx, (B, Cin, H, W), jnp.float32)
    params = init_gcm_params(kp, Cin, out_channels)

    outs = jax.jit(gcm_forward)(x, params)
    outs = [jax.block_until_ready(o) for o in outs]

    expected_shapes = [(B, 256, 2 * H, 2 * W), (B, 128, 4 * H, 4 * W),
                       (B, 64, 8 * H, 8 * W), (B, 64, 16 * H, 16 * W)]
    assert [tuple(o.shape) for o in outs] == expected_shapes, [o.shape for o in outs]
    assert all(bool(jnp.all(jnp.isfinite(o))) for o in outs)

    # Numeric check vs. a pure-JAX f32 reference (bf16 MXU operands + approx reciprocal
    # in the softmax -> tolerance, not exact match).
    refs = jax.jit(gcm_reference)(x, params)
    refs = [jax.block_until_ready(r) for r in refs]
    for o, r in zip(outs, refs):
        diff = jnp.abs(o - r)
        max_err = float(jnp.max(diff))
        mean_err = float(jnp.mean(diff))
        assert max_err < 0.3 and mean_err < 0.05, (max_err, mean_err)

    print("KERNEL_OK")
</pallas_src>

<mosaic_0001>
module attributes {stable_mosaic.version = 11 : i64} {
  func.func private @main(%arg0: i32) attributes {dimension_semantics = [#tpu.dimension_semantics<core_parallel>], iteration_bounds = array<i64: 2>, tpu.core_type = #tpu.core_type<sc_scalar_subcore>, window_params = []} {
    return
  }
}

module attributes {stable_mosaic.version = 11 : i64} {
  func.func private @main(%arg0: i32) attributes {dimension_semantics = [#tpu.dimension_semantics<core_parallel>], iteration_bounds = array<i64: 2>, tpu.core_type = #tpu.core_type<sc_scalar_subcore>, window_params = []} {
    return
  }
}

module attributes {stable_mosaic.version = 11 : i64} {
  func.func @_sa_flash_kernel(%arg0: i32, %arg1: i32, %arg2: i32, %arg3: memref<1x128x4xf32, #tpu.memory_space<vmem>>, %arg4: memref<1x128x4xf32, #tpu.memory_space<vmem>>, %arg5: memref<4x64xf32, #tpu.memory_space<vmem>>, %arg6: memref<1x64xf32, #tpu.memory_space<vmem>>, %arg7: memref<64x8xbf16, #tpu.memory_space<vmem>>, %arg8: memref<1x8xf32, #tpu.memory_space<vmem>>, %arg9: memref<64x72xbf16, #tpu.memory_space<vmem>>, %arg10: memref<1x72xf32, #tpu.memory_space<vmem>>, %arg11: memref<1xf32, #tpu.memory_space<smem>>, %arg12: memref<1x128x64xbf16, #tpu.memory_space<vmem>>, %arg13: memref<128x1xf32, #tpu.memory_space<vmem>>, %arg14: memref<128x1xf32, #tpu.memory_space<vmem>>, %arg15: memref<128x64xf32, #tpu.memory_space<vmem>>) attributes {dimension_semantics = [#tpu.dimension_semantics<parallel>, #tpu.dimension_semantics<parallel>, #tpu.dimension_semantics<arbitrary>], iteration_bounds = array<i64: 2, 2, 2>, scalar_prefetch = 0 : i64, scratch_operands = 3 : i64, tpu.core_type = #tpu.core_type<tc>, window_params = [{transform_indices = @transform_0, window_bounds = array<i64: 1, 128, 4>}, {transform_indices = @transform_1, window_bounds = array<i64: 1, 128, 4>}, {pipeline_mode = #tpu.pipeline_mode<synchronous>, transform_indices = @transform_2, window_bounds = array<i64: 4, 64>}, {pipeline_mode = #tpu.pipeline_mode<synchronous>, transform_indices = @transform_3, window_bounds = array<i64: 1, 64>}, {pipeline_mode = #tpu.pipeline_mode<synchronous>, transform_indices = @transform_4, window_bounds = array<i64: 64, 8>}, {pipeline_mode = #tpu.pipeline_mode<synchronous>, transform_indices = @transform_5, window_bounds = array<i64: 1, 8>}, {pipeline_mode = #tpu.pipeline_mode<synchronous>, transform_indices = @transform_6, window_bounds = array<i64: 64, 72>}, {pipeline_mode = #tpu.pipeline_mode<synchronous>, transform_indices = @transform_7, window_bounds = array<i64: 1, 72>}, {transform_indices = @transform_8, window_bounds = array<i64: 1>}, {transform_indices = @transform_9, window_bounds = array<i64: 1, 128, 64>}]} {
    %c0_i32 = arith.constant 0 : i32
    %0 = arith.cmpi eq, %arg2, %c0_i32 : i32
    %1 = arith.extui %0 : i1 to i32
    %c0_i32_0 = arith.constant 0 : i32
    %2 = arith.cmpi ne, %1, %c0_i32_0 : i32
    scf.if %2 {
      %cst_44 = arith.constant 0xFF800000 : f32
      %65 = vector.broadcast %cst_44 : f32 to vector<128x1xf32>
      %c0_45 = arith.constant 0 : index
      %c0_46 = arith.constant 0 : index
      %66 = vector.load %arg13[%c0_45, %c0_46] : memref<128x1xf32, #tpu.memory_space<vmem>>, vector<128x1xf32>
      tpu.vector_store %arg13[%c0_45, %c0_46], %65 {strides = array<i32>} : memref<128x1xf32, #tpu.memory_space<vmem>>, vector<128x1xf32>,
      %cst_47 = arith.constant 0.000000e+00 : f32
      %67 = vector.broadcast %cst_47 : f32 to vector<128x1xf32>
      %c0_48 = arith.constant 0 : index
      %c0_49 = arith.constant 0 : index
      %68 = vector.load %arg14[%c0_48, %c0_49] : memref<128x1xf32, #tpu.memory_space<vmem>>, vector<128x1xf32>
      tpu.vector_store %arg14[%c0_48, %c0_49], %67 {strides = array<i32>} : memref<128x1xf32, #tpu.memory_space<vmem>>, vector<128x1xf32>,
      %cst_50 = arith.constant 0.000000e+00 : f32
      %69 = vector.broadcast %cst_50 : f32 to vector<128x64xf32>
      %c0_51 = arith.constant 0 : index
      %c0_52 = arith.constant 0 : index
      %70 = vector.load %arg15[%c0_51, %c0_52] : memref<128x64xf32, #tpu.memory_space<vmem>>, vector<128x64xf32>
      tpu.vector_store %arg15[%c0_51, %c0_52], %69 {strides = array<i32>} : memref<128x64xf32, #tpu.memory_space<vmem>>, vector<128x64xf32>,
    } else {
    }
    %c0 = arith.constant 0 : index
    %c0_1 = arith.constant 0 : index
    %c0_2 = arith.constant 0 : index
    %3 = vector.load %arg3[%c0, %c0_1, %c0_2] : memref<1x128x4xf32, #tpu.memory_space<vmem>>, vector<1x128x4xf32>
    %4 = vector.shape_cast %3 : vector<1x128x4xf32> to vector<128x4xf32>
    %c0_3 = arith.constant 0 : index
    %c0_4 = arith.constant 0 : index
    %5 = vector.load %arg5[%c0_3, %c0_4] : memref<4x64xf32, #tpu.memory_space<vmem>>, vector<4x64xf32>
    %cst = arith.constant dense<0.000000e+00> : vector<128x64xf32>
    %6 = tpu.matmul %4, %5, %cst {dimension_numbers = #tpu.dot_dimension_numbers<[1], [0], [0], [1], [0, 0, 1, 1], [], []>} : vector<128x4xf32>, vector<4x64xf32>, vector<128x64xf32> -> vector<128x64xf32>
    %c0_5 = arith.constant 0 : index
    %c0_6 = arith.constant 0 : index
    %7 = vector.load %arg6[%c0_5, %c0_6] : memref<1x64xf32, #tpu.memory_space<vmem>>, vector<1x64xf32>
    %8 = vector.broadcast %7 : vector<1x64xf32> to vector<128x64xf32>
    %9 = arith.addf %6, %8 : vector<128x64xf32>
    %cst_7 = arith.constant 0.000000e+00 : f32
    %10 = vector.broadcast %cst_7 : f32 to vector<128x64xf32>
    %11 = arith.maximumf %9, %10 : vector<128x64xf32>
    %12 = arith.truncf %11 : vector<128x64xf32> to vector<128x64xbf16>
    %c0_8 = arith.constant 0 : index
    %c0_9 = arith.constant 0 : index
    %13 = vector.load %arg7[%c0_8, %c0_9] : memref<64x8xbf16, #tpu.memory_space<vmem>>, vector<64x8xbf16>
    %cst_10 = arith.constant dense<0.000000e+00> : vector<128x8xf32>
    %14 = tpu.matmul %12, %13, %cst_10 {dimension_numbers = #tpu.dot_dimension_numbers<[1], [0], [0], [1], [0, 0, 1, 1], [], []>} : vector<128x64xbf16>, vector<64x8xbf16>, vector<128x8xf32> -> vector<128x8xf32>
    %c0_11 = arith.constant 0 : index
    %c0_12 = arith.constant 0 : index
    %15 = vector.load %arg8[%c0_11, %c0_12] : memref<1x8xf32, #tpu.memory_space<vmem>>, vector<1x8xf32>
    %16 = vector.broadcast %15 : vector<1x8xf32> to vector<128x8xf32>
    %17 = arith.addf %14, %16 : vector<128x8xf32>
    %18 = arith.truncf %17 : vector<128x8xf32> to vector<128x8xbf16>
    %c0_13 = arith.constant 0 : index
    %c0_14 = arith.constant 0 : index
    %c0_15 = arith.constant 0 : index
    %19 = vector.load %arg4[%c0_13, %c0_14, %c0_15] : memref<1x128x4xf32, #tpu.memory_space<vmem>>, vector<1x128x4xf32>
    %20 = vector.shape_cast %19 : vector<1x128x4xf32> to vector<128x4xf32>
    %c0_16 = arith.constant 0 : index
    %c0_17 = arith.constant 0 : index
    %21 = vector.load %arg5[%c0_16, %c0_17] : memref<4x64xf32, #tpu.memory_space<vmem>>, vector<4x64xf32>
    %cst_18 = arith.constant dense<0.000000e+00> : vector<128x64xf32>
    %22 = tpu.matmul %20, %21, %cst_18 {dimension_numbers = #tpu.dot_dimension_numbers<[1], [0], [0], [1], [0, 0, 1, 1], [], []>} : vector<128x4xf32>, vector<4x64xf32>, vector<128x64xf32> -> vector<128x64xf32>
    %c0_19 = arith.constant 0 : index
    %c0_20 = arith.constant 0 : index
    %23 = vector.load %arg6[%c0_19, %c0_20] : memref<1x64xf32, #tpu.memory_space<vmem>>, vector<1x64xf32>
    %24 = vector.broadcast %23 : vector<1x64xf32> to vector<128x64xf32>
    %25 = arith.addf %22, %24 : vector<128x64xf32>
    %cst_21 = arith.constant 0.000000e+00 : f32
    %26 = vector.broadcast %cst_21 : f32 to vector<128x64xf32>
    %27 = arith.maximumf %25, %26 : vector<128x64xf32>
    %28 = arith.truncf %27 : vector<128x64xf32> to vector<128x64xbf16>
    %c0_22 = arith.constant 0 : index
    %c0_23 = arith.constant 0 : index
    %29 = vector.load %arg9[%c0_22, %c0_23] : memref<64x72xbf16, #tpu.memory_space<vmem>>, vector<64x72xbf16>
    %cst_24 = arith.constant dense<0.000000e+00> : vector<128x72xf32>
    %30 = tpu.matmul %28, %29, %cst_24 {dimension_numbers = #tpu.dot_dimension_numbers<[1], [0], [0], [1], [0, 0, 1, 1], [], []>} : vector<128x64xbf16>, vector<64x72xbf16>, vector<128x72xf32> -> vector<128x72xf32>
    %c0_25 = arith.constant 0 : index
    %c0_26 = arith.constant 0 : index
    %31 = vector.load %arg10[%c0_25, %c0_26] : memref<1x72xf32, #tpu.memory_space<vmem>>, vector<1x72xf32>
    %32 = vector.broadcast %31 : vector<1x72xf32> to vector<128x72xf32>
    %33 = arith.addf %30, %32 : vector<128x72xf32>
    %34 = vector.extract_strided_slice %33 {offsets = [0, 0], sizes = [128, 64], strides = [1, 1]} : vector<128x72xf32> to vector<128x64xf32>
    %35 = arith.truncf %34 : vector<128x64xf32> to vector<128x64xbf16>
    %36 = vector.extract_strided_slice %33 {offsets = [0, 64], sizes = [128, 8], strides = [1, 1]} : vector<128x72xf32> to vector<128x8xf32>
    %37 = arith.truncf %36 : vector<128x8xf32> to vector<128x8xbf16>
    %cst_27 = arith.constant dense<0.000000e+00> : vector<128x128xf32>
    %38 = tpu.matmul %18, %37, %cst_27 {dimension_numbers = #tpu.dot_dimension_numbers<[1], [1], [0], [0], [0, 0, 1, 0], [], []>} : vector<128x8xbf16>, vector<128x8xbf16>, vector<128x128xf32> -> vector<128x128xf32>
    %c0_28 = arith.constant 0 : index
    %c0_29 = arith.constant 0 : index
    %39 = vector.load %arg13[%c0_28, %c0_29] : memref<128x1xf32, #tpu.memory_space<vmem>>, vector<128x1xf32>
    %cst_30 = arith.constant dense<0xFF800000> : vector<128xf32>
    %40 = vector.multi_reduction <maximumf>, %38, %cst_30 [1] : vector<128x128xf32> to vector<128xf32>
    %41 = vector.shape_cast %40 : vector<128xf32> to vector<128x1xf32>
    %42 = arith.maximumf %39, %41 : vector<128x1xf32>
    %43 = arith.subf %39, %42 : vector<128x1xf32>
    %44 = math.exp %43 : vector<128x1xf32>
    %45 = vector.broadcast %42 : vector<128x1xf32> to vector<128x128xf32>
    %46 = arith.subf %38, %45 : vector<128x128xf32>
    %47 = math.exp %46 : vector<128x128xf32>
    %c0_31 = arith.constant 0 : index
    %c0_32 = arith.constant 0 : index
    %48 = vector.load %arg14[%c0_31, %c0_32] : memref<128x1xf32, #tpu.memory_space<vmem>>, vector<128x1xf32>
    %49 = arith.mulf %44, %48 : vector<128x1xf32>
    %cst_33 = arith.constant dense<0.000000e+00> : vector<128xf32>
    %50 = vector.multi_reduction <add>, %47, %cst_33 [1] : vector<128x128xf32> to vector<128xf32>
    %51 = vector.shape_cast %50 : vector<128xf32> to vector<128x1xf32>
    %52 = arith.addf %49, %51 : vector<128x1xf32>
    %c0_34 = arith.constant 0 : index
    %c0_35 = arith.constant 0 : index
    %53 = vector.load %arg14[%c0_34, %c0_35] : memref<128x1xf32, #tpu.memory_space<vmem>>, vector<128x1xf32>
    tpu.vector_store %arg14[%c0_34, %c0_35], %52 {strides = array<i32>} : memref<128x1xf32, #tpu.memory_space<vmem>>, vector<128x1xf32>,
    %c0_36 = arith.constant 0 : index
    %c0_37 = arith.constant 0 : index
    %54 = vector.load %arg15[%c0_36, %c0_37] : memref<128x64xf32, #tpu.memory_space<vmem>>, vector<128x64xf32>
    %55 = vector.broadcast %44 : vector<128x1xf32> to vector<128x64xf32>
    %56 = arith.mulf %55, %54 : vector<128x64xf32>
    %57 = arith.truncf %47 : vector<128x128xf32> to vector<128x128xbf16>
    %cst_38 = arith.constant dense<0.000000e+00> : vector<128x64xf32>
    %58 = tpu.matmul %57, %35, %cst_38 {dimension_numbers = #tpu.dot_dimension_numbers<[1], [0], [0], [1], [0, 0, 1, 1], [], []>} : vector<128x128xbf16>, vector<128x64xbf16>, vector<128x64xf32> -> vector<128x64xf32>
    %59 = arith.addf %56, %58 : vector<128x64xf32>
    %c0_39 = arith.constant 0 : index
    %c0_40 = arith.constant 0 : index
    %60 = vector.load %arg15[%c0_39, %c0_40] : memref<128x64xf32, #tpu.memory_space<vmem>>, vector<128x64xf32>
    tpu.vector_store %arg15[%c0_39, %c0_40], %59 {strides = array<i32>} : memref<128x64xf32, #tpu.memory_space<vmem>>, vector<128x64xf32>,
    %c0_41 = arith.constant 0 : index
    %c0_42 = arith.constant 0 : index
    %61 = vector.load %arg13[%c0_41, %c0_42] : memref<128x1xf32, #tpu.memory_space<vmem>>, vector<128x1xf32>
    tpu.vector_store %arg13[%c0_41, %c0_42], %42 {strides = array<i32>} : memref<128x1xf32, #tpu.memory_space<vmem>>, vector<128x1xf32>,
    %c1_i32 = arith.constant 1 : i32
    %62 = arith.cmpi eq, %arg2, %c1_i32 : i32
    %63 = arith.extui %62 : i1 to i32
    %c0_i32_43 = arith.constant 0 : i32
    %64 = arith.cmpi ne, %63, %c0_i32_43 : i32
    scf.if %64 {
      %c0_44 = arith.constant 0 : index
      %c0_45 = arith.constant 0 : index
      %65 = vector.load %arg15[%c0_44, %c0_45] : memref<128x64xf32, #tpu.memory_space<vmem>>, vector<128x64xf32>
      %c0_46 = arith.constant 0 : index
      %c0_47 = arith.constant 0 : index
      %66 = vector.load %arg14[%c0_46, %c0_47] : memref<128x1xf32, #tpu.memory_space<vmem>>, vector<128x1xf32>
      %67 = tpu.reciprocal %66 {approx = true} : vector<128x1xf32> -> vector<128x1xf32>
      %68 = vector.broadcast %67 : vector<128x1xf32> to vector<128x64xf32>
      %69 = arith.mulf %65, %68 : vector<128x64xf32>
      %c0_48 = arith.constant 0 : index
      %70 = memref.load %arg11[%c0_48] : memref<1xf32, #tpu.memory_space<smem>>
      %71 = vector.broadcast %70 : f32 to vector<128x64xf32>
      %72 = arith.mulf %71, %69 : vector<128x64xf32>
      %73 = arith.addf %72, %11 : vector<128x64xf32>
      %74 = arith.truncf %73 : vector<128x64xf32> to vector<128x64xbf16>
      %c0_49 = arith.constant 0 : index
      %c0_50 = arith.constant 0 : index
      %c0_51 = arith.constant 0 : index
      %75 = vector.load %arg12[%c0_49, %c0_50, %c0_51] : memref<1x128x64xbf16, #tpu.memory_space<vmem>>, vector<1x128x64xbf16>
      %76 = vector.shape_cast %75 : vector<1x128x64xbf16> to vector<128x64xbf16>
      %77 = vector.shape_cast %74 : vector<128x64xbf16> to vector<1x128x64xbf16>
      tpu.vector_store %arg12[%c0_49, %c0_50, %c0_51], %77 {strides = array<i32>} : memref<1x128x64xbf16, #tpu.memory_space<vmem>>, vector<1x128x64xbf16>,
    } else {
    }
    return
  }
  func.func @transform_0(%arg0: i32, %arg1: i32, %arg2: i32) -> (i32, i32, i32) {
    %c0_i32 = arith.constant 0 : i32
    %c0_i32_0 = arith.constant 0 : i32
    return %arg0, %arg1, %c0_i32 : i32, i32, i32
  }
  func.func @transform_1(%arg0: i32, %arg1: i32, %arg2: i32) -> (i32, i32, i32) {
    %c0_i32 = arith.constant 0 : i32
    %c0_i32_0 = arith.constant 0 : i32
    return %arg0, %arg2, %c0_i32 : i32, i32, i32
  }
  func.func @transform_2(%arg0: i32, %arg1: i32, %arg2: i32) -> (i32, i32) {
    %c0_i32 = arith.constant 0 : i32
    %c0_i32_0 = arith.constant 0 : i32
    %c0_i32_1 = arith.constant 0 : i32
    return %c0_i32, %c0_i32_0 : i32, i32
  }
  func.func @transform_3(%arg0: i32, %arg1: i32, %arg2: i32) -> (i32, i32) {
    %c0_i32 = arith.constant 0 : i32
    %c0_i32_0 = arith.constant 0 : i32
    %c0_i32_1 = arith.constant 0 : i32
    return %c0_i32, %c0_i32_0 : i32, i32
  }
  func.func @transform_4(%arg0: i32, %arg1: i32, %arg2: i32) -> (i32, i32) {
    %c0_i32 = arith.constant 0 : i32
    %c0_i32_0 = arith.constant 0 : i32
    %c0_i32_1 = arith.constant 0 : i32
    return %c0_i32, %c0_i32_0 : i32, i32
  }
  func.func @transform_5(%arg0: i32, %arg1: i32, %arg2: i32) -> (i32, i32) {
    %c0_i32 = arith.constant 0 : i32
    %c0_i32_0 = arith.constant 0 : i32
    %c0_i32_1 = arith.constant 0 : i32
    return %c0_i32, %c0_i32_0 : i32, i32
  }
  func.func @transform_6(%arg0: i32, %arg1: i32, %arg2: i32) -> (i32, i32) {
    %c0_i32 = arith.constant 0 : i32
    %c0_i32_0 = arith.constant 0 : i32
    %c0_i32_1 = arith.constant 0 : i32
    return %c0_i32, %c0_i32_0 : i32, i32
  }
  func.func @transform_7(%arg0: i32, %arg1: i32, %arg2: i32) -> (i32, i32) {
    %c0_i32 = arith.constant 0 : i32
    %c0_i32_0 = arith.constant 0 : i32
    %c0_i32_1 = arith.constant 0 : i32
    return %c0_i32, %c0_i32_0 : i32, i32
  }
  func.func @transform_8(%arg0: i32, %arg1: i32, %arg2: i32) -> i32 {
    %c0_i32 = arith.constant 0 : i32
    %c0_i32_0 = arith.constant 0 : i32
    return %c0_i32 : i32
  }
  func.func @transform_9(%arg0: i32, %arg1: i32, %arg2: i32) -> (i32, i32, i32) {
    %c0_i32 = arith.constant 0 : i32
    %c0_i32_0 = arith.constant 0 : i32
    return %arg0, %arg1, %c0_i32 : i32, i32, i32
  }
}

module attributes {stable_mosaic.version = 11 : i64} {
  func.func @_heads_kernel(%arg0: i32, %arg1: memref<256x64xbf16, #tpu.memory_space<vmem>>, %arg2: memref<256x64xbf16, #tpu.memory_space<vmem>>, %arg3: memref<256x64xbf16, #tpu.memory_space<vmem>>, %arg4: memref<256x64xbf16, #tpu.memory_space<vmem>>, %arg5: memref<256x512xbf16, #tpu.memory_space<vmem>>, %arg6: memref<1x512xf32, #tpu.memory_space<vmem>>, %arg7: memref<256x512xf32, #tpu.memory_space<vmem>>, %arg8: memref<256x256xbf16, #tpu.memory_space<vmem>>) attributes {dimension_semantics = [#tpu.dimension_semantics<parallel>], iteration_bounds = array<i64: 2>, scalar_prefetch = 0 : i64, scratch_operands = 1 : i64, tpu.core_type = #tpu.core_type<tc>, window_params = [{transform_indices = @transform_0, window_bounds = array<i64: 256, 64>}, {transform_indices = @transform_1, window_bounds = array<i64: 256, 64>}, {transform_indices = @transform_2, window_bounds = array<i64: 256, 64>}, {transform_indices = @transform_3, window_bounds = array<i64: 256, 64>}, {pipeline_mode = #tpu.pipeline_mode<synchronous>, transform_indices = @transform_4, window_bounds = array<i64: 256, 512>}, {pipeline_mode = #tpu.pipeline_mode<synchronous>, transform_indices = @transform_5, window_bounds = array<i64: 1, 512>}, {transform_indices = @transform_6, window_bounds = array<i64: 256, 512>}]} {
    %c0 = arith.constant 0 : index
    %c0_0 = arith.constant 0 : index
    %0 = vector.load %arg1[%c0, %c0_0] : memref<256x64xbf16, #tpu.memory_space<vmem>>, vector<256x64xbf16>
    %c0_1 = arith.constant 0 : index
    %c0_2 = arith.constant 0 : index
    %1 = vector.load %arg8[%c0_1, %c0_2] : memref<256x256xbf16, #tpu.memory_space<vmem>>, vector<256x64xbf16>
    tpu.vector_store %arg8[%c0_1, %c0_2], %0 {strides = array<i32>} : memref<256x256xbf16, #tpu.memory_space<vmem>>, vector<256x64xbf16>,
    %c0_3 = arith.constant 0 : index
    %c0_4 = arith.constant 0 : index
    %2 = vector.load %arg2[%c0_3, %c0_4] : memref<256x64xbf16, #tpu.memory_space<vmem>>, vector<256x64xbf16>
    %c0_5 = arith.constant 0 : index
    %c64 = arith.constant 64 : index
    %3 = vector.load %arg8[%c0_5, %c64] : memref<256x256xbf16, #tpu.memory_space<vmem>>, vector<256x64xbf16>
    tpu.vector_store %arg8[%c0_5, %c64], %2 {strides = array<i32>} : memref<256x256xbf16, #tpu.memory_space<vmem>>, vector<256x64xbf16>,
    %c0_6 = arith.constant 0 : index
    %c0_7 = arith.constant 0 : index
    %4 = vector.load %arg3[%c0_6, %c0_7] : memref<256x64xbf16, #tpu.memory_space<vmem>>, vector<256x64xbf16>
    %c0_8 = arith.constant 0 : index
    %c128 = arith.constant 128 : index
    %5 = vector.load %arg8[%c0_8, %c128] : memref<256x256xbf16, #tpu.memory_space<vmem>>, vector<256x64xbf16>
    tpu.vector_store %arg8[%c0_8, %c128], %4 {strides = array<i32>} : memref<256x256xbf16, #tpu.memory_space<vmem>>, vector<256x64xbf16>,
    %c0_9 = arith.constant 0 : index
    %c0_10 = arith.constant 0 : index
    %6 = vector.load %arg4[%c0_9, %c0_10] : memref<256x64xbf16, #tpu.memory_space<vmem>>, vector<256x64xbf16>
    %c0_11 = arith.constant 0 : index
    %c192 = arith.constant 192 : index
    %7 = vector.load %arg8[%c0_11, %c192] : memref<256x256xbf16, #tpu.memory_space<vmem>>, vector<256x64xbf16>
    tpu.vector_store %arg8[%c0_11, %c192], %6 {strides = array<i32>} : memref<256x256xbf16, #tpu.memory_space<vmem>>, vector<256x64xbf16>,
    %c0_12 = arith.constant 0 : index
    %c0_13 = arith.constant 0 : index
    %8 = vector.load %arg8[%c0_12, %c0_13] : memref<256x256xbf16, #tpu.memory_space<vmem>>, vector<256x256xbf16>
    %c0_14 = arith.constant 0 : index
    %c0_15 = arith.constant 0 : index
    %9 = vector.load %arg5[%c0_14, %c0_15] : memref<256x512xbf16, #tpu.memory_space<vmem>>, vector<256x512xbf16>
    %cst = arith.constant dense<0.000000e+00> : vector<256x512xf32>
    %10 = tpu.matmul %8, %9, %cst {dimension_numbers = #tpu.dot_dimension_numbers<[1], [0], [0], [1], [0, 0, 1, 1], [], []>} : vector<256x256xbf16>, vector<256x512xbf16>, vector<256x512xf32> -> vector<256x512xf32>
    %c0_16 = arith.constant 0 : index
    %c0_17 = arith.constant 0 : index
    %11 = vector.load %arg6[%c0_16, %c0_17] : memref<1x512xf32, #tpu.memory_space<vmem>>, vector<1x512xf32>
    %12 = vector.broadcast %11 : vector<1x512xf32> to vector<256x512xf32>
    %13 = arith.addf %10, %12 : vector<256x512xf32>
    %cst_18 = arith.constant 0.000000e+00 : f32
    %14 = vector.broadcast %cst_18 : f32 to vector<256x512xf32>
    %15 = arith.maximumf %13, %14 : vector<256x512xf32>
    %c0_19 = arith.constant 0 : index
    %c0_20 = arith.constant 0 : index
    %16 = vector.load %arg7[%c0_19, %c0_20] : memref<256x512xf32, #tpu.memory_space<vmem>>, vector<256x512xf32>
    tpu.vector_store %arg7[%c0_19, %c0_20], %15 {strides = array<i32>} : memref<256x512xf32, #tpu.memory_space<vmem>>, vector<256x512xf32>,
    return
  }
  func.func @transform_0(%arg0: i32) -> (i32, i32) {
    %c0_i32 = arith.constant 0 : i32
    %c0_i32_0 = arith.constant 0 : i32
    return %arg0, %c0_i32 : i32, i32
  }
  func.func @transform_1(%arg0: i32) -> (i32, i32) {
    %c0_i32 = arith.constant 0 : i32
    %c0_i32_0 = arith.constant 0 : i32
    return %arg0, %c0_i32 : i32, i32
  }
  func.func @transform_2(%arg0: i32) -> (i32, i32) {
    %c0_i32 = arith.constant 0 : i32
    %c0_i32_0 = arith.constant 0 : i32
    return %arg0, %c0_i32 : i32, i32
  }
  func.func @transform_3(%arg0: i32) -> (i32, i32) {
    %c0_i32 = arith.constant 0 : i32
    %c0_i32_0 = arith.constant 0 : i32
    return %arg0, %c0_i32 : i32, i32
  }
  func.func @transform_4(%arg0: i32) -> (i32, i32) {
    %c0_i32 = arith.constant 0 : i32
    %c0_i32_0 = arith.constant 0 : i32
    %c0_i32_1 = arith.constant 0 : i32
    return %c0_i32, %c0_i32_0 : i32, i32
  }
  func.func @transform_5(%arg0: i32) -> (i32, i32) {
    %c0_i32 = arith.constant 0 : i32
    %c0_i32_0 = arith.constant 0 : i32
    %c0_i32_1 = arith.constant 0 : i32
    return %c0_i32, %c0_i32_0 : i32, i32
  }
  func.func @transform_6(%arg0: i32) -> (i32, i32) {
    %c0_i32 = arith.constant 0 : i32
    %c0_i32_0 = arith.constant 0 : i32
    return %arg0, %c0_i32 : i32, i32
  }
}

</mosaic_0001>

<bundles_post_ra>
// kernel: gcm_forward.2
= control target key start
LH: loop header
LB: loop body
LE: loop exit
PB: predicated region body
PF: predicated region fallthrough
CT: control target
= control target key end

     0   :  { %s3102_s11 = smov 0   ;;  %s3104_s12 = smov 0   ;;  %s3964_s0 = inlined_call_operand.vmem [shape: f32[2,256,4], index: 0, kind: input, shape index: {}, may-alias: {0,1}]   ;;  %s3965_s1 = inlined_call_operand.vmem [shape: f32[2,256,4], index: 1, kind: input, shape index: {}, may-alias: {0,1}]   ;;  %s3966_s2 = inlined_call_operand.vmem [shape: f32[4,64], index: 2, kind: input, shape index: {}]   ;;  %s3967_s3 = inlined_call_operand.vmem [shape: f32[1,64], index: 3, kind: input, shape index: {}]   ;;  %s3968_s4 = inlined_call_operand.vmem [shape: bf16[64,8], index: 4, kind: input, shape index: {}]   ;;  %s3969_s5 = inlined_call_operand.vmem [shape: f32[1,8], index: 5, kind: input, shape index: {}]   ;;  %s3970_s6 = inlined_call_operand.vmem [shape: bf16[64,72], index: 6, kind: input, shape index: {}]   ;;  %s3971_s7 = inlined_call_operand.vmem [shape: f32[1,72], index: 7, kind: input, shape index: {}]   ;;  %s3972_s8 = inlined_call_operand.<no memory space> [shape: f32[1], index: 8, kind: input, shape index: {}]   ;;  %s3973_s9 = inlined_call_operand.vmem [shape: bf16[2,256,64], index: 9, kind: output, shape index: {}]  }
   0x1   :  { %14 = sst [smem:[#allocation5]] %s3972_s8  ;;  %s3106_s13 = smov 0  }
   0x2   :  { %s3108_s14 = smov 0   ;;  %s3110_s15 = smov 0  }
   0x3   :  { %s3112_s16 = smov 0   ;;  %s3114_s17 = smov 0  }
   0x4 LB: > { %s32_s8 = sadd.s32 1, %s3030_s14  ;;  %s35_s18 = sadd.s32 1, %s3034_s15  ;;  %s3042_s17 = sphi %s3114_s17, %s20_s17   ;;  %s3038_s16 = sphi %s3112_s16, %s4025_s16   ;;  %s3034_s15 = sphi %s3110_s15, %s4024_s15   ;;  %s3030_s14 = sphi %s3108_s14, %s4023_s14   ;;  %s3026_s13 = sphi %s3106_s13, %s4022_s13   ;;  %s3022_s12 = sphi %s3104_s12, %s4021_s12   ;;  %s3018_s11 = sphi %s3102_s11, %s4020_s11  }
   0x5   : > { %p33_p0 = scmp.ge.s32.totalorder %s32_s8, 2  ;;  %p2440_p1 = scmp.ge.s32.totalorder %s3042_s17, 1 }
   0x6   : > { %p333_p2 = scmp.lt.s32.totalorder %s3042_s17, 9  ;;  %s39_s19 = sadd.s32 1, %s3038_s16 }
   0x7   : > { %s4027_s8 = smov (%p33_p0, %s32_s8), 0  ;;  %s4029_s18 = smov (!%p33_p0, %s35_s18), %s3034_s15 }
   0x8   : > { %3992 = sst [smem:[#allocation6_spill]] %s4027_s8  ;;  %p334_p3 = pnand %p2440_p1, %p333_p2 }
   0x9   : > { %p37_p4 = scmp.ge.s32.totalorder %s4029_s18, 2 }
   0xa   : > { %337 = sbr.rel (%p334_p3) target bundleno = 1622 (0x656), region = 56 }
   0xb   : > { %s4031_s18 = smov (%p37_p4, %s4029_s18), 0  ;;  %s4033_s19 = smov (!%p37_p4, %s39_s19), %s3038_s16 }
   0xc   : > { %3993 = sst [smem:[#allocation7_spill]] %s4031_s18  ;;  %p41_p5 = scmp.ge.s32.totalorder %s4033_s19, 2 }
   0xe   : > { %s4035_s19 = smov (%p41_p5, %s4033_s19), 0 }
   0xf   : > { %3994 = sst [smem:[#allocation8_spill]] %s4035_s19 }
  0x11   : > { %s2441_s20 = sshll.u32 %s3022_s12, 4  ;;  %p387_p6 = scmp.lt.s32.totalorder %s3026_s13, 1 }
  0x12   : > { %p389_p7 = scmp.lt.s32.totalorder %s2441_s20, 31  ;;  %s2444_s21 = sshll.u32 %s3018_s11, 4 }
  0x13   : > { %s4037_s13 = smov (!%p387_p6, %s3026_s13), 1  ;;  %p399_p8 = scmp.lt.s32.totalorder %s2444_s21, 31 }
  0x14   : > { %s4039_s20 = smov (!%p389_p7, %s2441_s20), 31  ;;  %s2442_s22 = sshll.u32 %s4037_s13, 5 }
  0x15   : > { %s392_s23 = sadd.s32 %s2442_s22, %s4039_s20  ;;  %s4041_s21 = smov (!%p399_p8, %s2444_s21), 31 }
  0x16   : > { %s2443_s24 = sshll.u32 %s392_s23, 3  ;;  %s2449_s25 = sshll.u32 %s392_s23, 2 }
  0x17   : > { %s3150_s28 = scalar_lea.vmem %s3964_s0, %s2443_s24  ;;  %s3155_s10 = scalar_lea.vmem %s3973_s9, %s2449_s25 }
  0x18   : > { %s402_s12 = sadd.s32 %s2442_s22, %s4041_s21  ;;  %p2450_p9 = scmp.ne.s32.totalorder %s3018_s11, 0 }
  0x19   : > { %s2446_s19 = sshll.u32 %s402_s12, 3  ;;  %vm421_vm0 = vcmask (!%p2450_p9), 7168   ;;  %vm454_vm1 = vcmask (!%p2450_p9), 523264   ;;  %v3044_v0 = vmov (!%p2450_p9), -inf   ;;  %v3045_v1 = vmov (!%p2450_p9), 0.0  }
  0x1a   : > { %s3160_s13 = scalar_lea.vmem %s3965_s1, %s2446_s19  ;;  %420 = sbr.rel (%p2450_p9) target bundleno = 50 (0x32), region = 60  ;;  %422 = vst.msk [vmem:[#allocation2] sm:$0xff] (!%p2450_p9), %vm421_vm0, %v3044_v0  ;;  %423 = vst.msk [vmem:[#allocation2 + $0x8] sm:$0xff] (!%p2450_p9), %vm421_vm0, %v3044_v0 }
  0x1b   : > { %424 = vst.msk [vmem:[#allocation2 + $0x10] sm:$0xff] (!%p2450_p9), %vm421_vm0, %v3044_v0  ;;  %425 = vst.msk [vmem:[#allocation2 + $0x18] sm:$0xff] (!%p2450_p9), %vm421_vm0, %v3044_v0 }
  0x1c   : > { %426 = vst.msk [vmem:[#allocation2 + $0x20] sm:$0xff] (!%p2450_p9), %vm421_vm0, %v3044_v0  ;;  %427 = vst.msk [vmem:[#allocation2 + $0x28] sm:$0xff] (!%p2450_p9), %vm421_vm0, %v3044_v0 }
  0x1d   : > { %428 = vst.msk [vmem:[#allocation2 + $0x30] sm:$0xff] (!%p2450_p9), %vm421_vm0, %v3044_v0  ;;  %429 = vst.msk [vmem:[#allocation2 + $0x38] sm:$0xff] (!%p2450_p9), %vm421_vm0, %v3044_v0 }
  0x1e   : > { %430 = vst.msk [vmem:[#allocation2 + $0x40] sm:$0xff] (!%p2450_p9), %vm421_vm0, %v3044_v0  ;;  %431 = vst.msk [vmem:[#allocation2 + $0x48] sm:$0xff] (!%p2450_p9), %vm421_vm0, %v3044_v0 }
  0x1f   : > { %432 = vst.msk [vmem:[#allocation2 + $0x50] sm:$0xff] (!%p2450_p9), %vm421_vm0, %v3044_v0  ;;  %433 = vst.msk [vmem:[#allocation2 + $0x58] sm:$0xff] (!%p2450_p9), %vm421_vm0, %v3044_v0 }
  0x20   : > { %434 = vst.msk [vmem:[#allocation2 + $0x60] sm:$0xff] (!%p2450_p9), %vm421_vm0, %v3044_v0  ;;  %435 = vst.msk [vmem:[#allocation2 + $0x68] sm:$0xff] (!%p2450_p9), %vm421_vm0, %v3044_v0 }
  0x21   : > { %436 = vst.msk [vmem:[#allocation2 + $0x70] sm:$0xff] %vm421_vm0, %v3044_v0  ;;  %437 = vst.msk [vmem:[#allocation2 + $0x78] sm:$0xff] %vm421_vm0, %v3044_v0 }
  0x22   : > { %438 = vst.msk [vmem:[#allocation3] sm:$0xff] %vm421_vm0, %v3045_v1  ;;  %439 = vst.msk [vmem:[#allocation3 + $0x8] sm:$0xff] %vm421_vm0, %v3045_v1 }
  0x23   : > { %440 = vst.msk [vmem:[#allocation3 + $0x10] sm:$0xff] %vm421_vm0, %v3045_v1  ;;  %441 = vst.msk [vmem:[#allocation3 + $0x18] sm:$0xff] %vm421_vm0, %v3045_v1 }
  0x24   : > { %442 = vst.msk [vmem:[#allocation3 + $0x20] sm:$0xff] %vm421_vm0, %v3045_v1  ;;  %443 = vst.msk [vmem:[#allocation3 + $0x28] sm:$0xff] %vm421_vm0, %v3045_v1 }
  0x25   : > { %444 = vst.msk [vmem:[#allocation3 + $0x30] sm:$0xff] %vm421_vm0, %v3045_v1  ;;  %445 = vst.msk [vmem:[#allocation3 + $0x38] sm:$0xff] %vm421_vm0, %v3045_v1 }
  0x26   : > { %446 = vst.msk [vmem:[#allocation3 + $0x40] sm:$0xff] %vm421_vm0, %v3045_v1  ;;  %447 = vst.msk [vmem:[#allocation3 + $0x48] sm:$0xff] %vm421_vm0, %v3045_v1 }
  0x27   : > { %448 = vst.msk [vmem:[#allocation3 + $0x50] sm:$0xff] %vm421_vm0, %v3045_v1  ;;  %449 = vst.msk [vmem:[#allocation3 + $0x58] sm:$0xff] %vm421_vm0, %v3045_v1 }
  0x28   : > { %450 = vst.msk [vmem:[#allocation3 + $0x60] sm:$0xff] %vm421_vm0, %v3045_v1  ;;  %451 = vst.msk [vmem:[#allocation3 + $0x68] sm:$0xff] %vm421_vm0, %v3045_v1 }
  0x29   : > { %452 = vst.msk [vmem:[#allocation3 + $0x70] sm:$0xff] %vm421_vm0, %v3045_v1  ;;  %453 = vst.msk [vmem:[#allocation3 + $0x78] sm:$0xff] %vm421_vm0, %v3045_v1 }
  0x2a   : > { %455 = vst.msk [vmem:[#allocation4] sm:$0xff] %vm454_vm1, %v3045_v1  ;;  %456 = vst.msk [vmem:[#allocation4 + $0x8] sm:$0xff] %vm454_vm1, %v3045_v1 }
  0x2b   : > { %457 = vst.msk [vmem:[#allocation4 + $0x10] sm:$0xff] %vm454_vm1, %v3045_v1  ;;  %458 = vst.msk [vmem:[#allocation4 + $0x18] sm:$0xff] %vm454_vm1, %v3045_v1 }
  0x2c   : > { %459 = vst.msk [vmem:[#allocation4 + $0x20] sm:$0xff] %vm454_vm1, %v3045_v1  ;;  %460 = vst.msk [vmem:[#allocation4 + $0x28] sm:$0xff] %vm454_vm1, %v3045_v1 }
  0x2d   : > { %461 = vst.msk [vmem:[#allocation4 + $0x30] sm:$0xff] %vm454_vm1, %v3045_v1  ;;  %462 = vst.msk [vmem:[#allocation4 + $0x38] sm:$0xff] %vm454_vm1, %v3045_v1 }
  0x2e   : > { %463 = vst.msk [vmem:[#allocation4 + $0x40] sm:$0xff] %vm454_vm1, %v3045_v1  ;;  %464 = vst.msk [vmem:[#allocation4 + $0x48] sm:$0xff] %vm454_vm1, %v3045_v1 }
  0x2f   : > { %465 = vst.msk [vmem:[#allocation4 + $0x50] sm:$0xff] %vm454_vm1, %v3045_v1  ;;  %466 = vst.msk [vmem:[#allocation4 + $0x58] sm:$0xff] %vm454_vm1, %v3045_v1 }
  0x30   : > { %467 = vst.msk [vmem:[#allocation4 + $0x60] sm:$0xff] %vm454_vm1, %v3045_v1  ;;  %468 = vst.msk [vmem:[#allocation4 + $0x68] sm:$0xff] %vm454_vm1, %v3045_v1 }
  0x31   : > { %469 = vst.msk [vmem:[#allocation4 + $0x70] sm:$0xff] %vm454_vm1, %v3045_v1  ;;  %470 = vst.msk [vmem:[#allocation4 + $0x78] sm:$0xff] %vm454_vm1, %v3045_v1 }
  0x32 PF: > { %v487_v2 = vld [vmem:[%s3966_s2] sm:$0xf]  ;;  %vm544_vm2 = vcmask 1043456   ;;  %vm495_vm3 = vcmask 31744   ;;  %v472_v4 = vld [vmem:[%s3150_s28 + $0x8] sm:$0xff]  ;;  %v473_v5 = vld [vmem:[%s3150_s28 + $0x10] sm:$0xff] }
  0x33   : > { %v471_v3 = vld [vmem:[%s3150_s28] sm:$0xff]  ;;  %2645 = vmatprep.subr.msk.mxu0 %vm544_vm2, %v487_v2  ;;  %2809 = vmatprep.subr.msk.mxu1 %vm544_vm2, %v487_v2  ;;  %v480_v7 = vld [vmem:[%s3150_s28 + $0x48] sm:$0xff]  ;;  %v481_v8 = vld [vmem:[%s3150_s28 + $0x50] sm:$0xff]  ;;  %vm756_vm4 = vcmask 523264   ;;  %vm1311_vm5 = vcmask 64512   ;;  %s3046_s25 = smov 64  }
  0x34   : > { %2647 = vmatprep.mubr.msk.f32.mxu0 %vm495_vm3, %v471_v3  ;;  %2646 = vmatpush3.msk.msra.mxu0 %vm544_vm2, %v487_v2  ;;  %v479_v6 = vld [vmem:[%s3150_s28 + $0x40] sm:$0xff]  ;;  %v474_v9 = vld [vmem:[%s3150_s28 + $0x18] sm:$0xff]  ;;  %v476_v13 = vld [vmem:[%s3150_s28 + $0x28] sm:$0xff]  ;;  %vm1777_vm6 = vcmask 7168   ;;  %p2520_p10 = scmp.ne.s32.totalorder %s3018_s11, 1 }
  0x35   : > { %2648 = vmatmul.mubr.msk.f32.vlgmr.msra.gmra.mrb[0].mxu0 %vm495_vm3, %v472_v4  ;;  %2810 = vmatpush3.msk.msra.mxu1 %vm544_vm2, %v487_v2  ;;  %v475_v10 = vld [vmem:[%s3150_s28 + $0x20] sm:$0xff]  ;;  %v482_v11 = vld [vmem:[%s3150_s28 + $0x58] sm:$0xff]  ;;  %v477_v14 = vld [vmem:[%s3150_s28 + $0x30] sm:$0xff]  ;;  %s2207_s11 = sld [smem:[#allocation5]] (!%p2520_p10)  ;;  %vm2305_vm7 = vcmask (!%p2520_p10), 519168  }
  0x36   : > { %2650 = vmatprep.mubr.msk.f32.mxu0 %vm495_vm3, %v473_v5  ;;  %2659 = vmatprep.mubr.msk.f32.mxu1 %vm495_vm3, %v479_v6  ;;  %v483_v12 = vld [vmem:[%s3150_s28 + $0x60] sm:$0xff]  ;;  %v478_v15 = vld [vmem:[%s3150_s28 + $0x38] sm:$0xff]  ;;  %v484_v16 = vld [vmem:[%s3150_s28 + $0x68] sm:$0xff] }
  0x37   : > { %2660 = vmatmul.mubr.msk.f32.vlgmr.msra.gmra.mrb[0].mxu1 %vm495_vm3, %v480_v7  ;;  %2695 = vmatprep.subr.msk.mxu0 %vm544_vm2, %v487_v2  ;;  %v485_v17 = vld [vmem:[%s3150_s28 + $0x70] sm:$0xff]  ;;  %v886_v18 = vld [vmem:[%s3160_s13] sm:$0xff]  ;;  %v486_v20 = vld [vmem:[%s3150_s28 + $0x78] sm:$0xff] }
  0x38   : > { %2696 = vmatpush3.msk.msra.mxu0 %vm544_vm2, %v487_v2  ;;  %2662 = vmatprep.mubr.msk.f32.mxu1 %vm495_vm3, %v481_v8  ;;  %v2882_v19 = vld [vmem:[%s3968_s4] sm:$0xff]   ;;  %v2883_v21 = vld [vmem:[%s3968_s4 + $0x8] sm:$0xff]   ;;  %v888_v23 = vld [vmem:[%s3160_s13 + $0x10] sm:$0xff] }
  0x39   : > { %2651 = vmatmul.mubr.msk.f32.gmra.mrb[2].mxu0 %vm495_vm3, %v474_v9  ;;  %2671 = vmatprep.subr.bf16.mxu1 %v2882_v19  ;;  %v887_v22 = vld [vmem:[%s3160_s13 + $0x8] sm:$0xff]  ;;  %v889_v24 = vld [vmem:[%s3160_s13 + $0x18] sm:$0xff]  ;;  %v890_v25 = vld [vmem:[%s3160_s13 + $0x20] sm:$0xff] }
  0x3a   : > { %2653 = vmatprep.mubr.msk.f32.mxu0 %vm495_vm3, %v475_v10  ;;  %2672 = vmatpush3.bf16.msra.mxu1 %v2882_v19  ;;  %v891_v26 = vld [vmem:[%s3160_s13 + $0x28] sm:$0xff]  ;;  %v892_v27 = vld [vmem:[%s3160_s13 + $0x30] sm:$0xff]  ;;  %v893_v28 = vld [vmem:[%s3160_s13 + $0x38] sm:$0xff] }
  0x3b   : > { %2663 = vmatmul.mubr.msk.f32.gmra.mrb[2].mxu1 %vm495_vm3, %v482_v11  ;;  %2673 = vmatprep.subr.bf16.mxu1 %v2883_v21  ;;  %v894_v29 = vld [vmem:[%s3160_s13 + $0x40] sm:$0xff]  ;;  %v895_v30 = vld [vmem:[%s3160_s13 + $0x48] sm:$0xff]  ;;  %v896_v31 = vld [vmem:[%s3160_s13 + $0x50] sm:$0xff] }
  0x3c   : > { %2665 = vmatprep.mubr.msk.f32.mxu1 %vm495_vm3, %v483_v12  ;;  %v897_v32 = vld [vmem:[%s3160_s13 + $0x58] sm:$0xff]  ;;  %v898_v33 = vld [vmem:[%s3160_s13 + $0x60] sm:$0xff]  ;;  %v899_v34 = vld [vmem:[%s3160_s13 + $0x68] sm:$0xff] }
  0x3d   : > { %2654 = vmatmul.mubr.msk.f32.gmra.mrb[4].mxu0 %vm495_vm3, %v476_v13  ;;  %v900_v35 = vld [vmem:[%s3160_s13 + $0x70] sm:$0xff]  ;;  %v901_v36 = vld [vmem:[%s3160_s13 + $0x78] sm:$0xff]  ;;  %v2886_v39 = vld [vmem:[%s3970_s6] sm:$0xff]  }
  0x3e   : > { %2656 = vmatprep.mubr.msk.f32.mxu0 %vm495_vm3, %v477_v14  ;;  %2674 = vmatpush3.bf16.msra.mxu1 %v2883_v21  ;;  %v2884_v37 = vld [vmem:[%s3968_s4 + $0x10] sm:$0xff]   ;;  %v2885_v38 = vld [vmem:[%s3968_s4 + $0x18] sm:$0xff]   ;;  %v3302_v40 = vld [vmem:[%s3967_s3] ss:$0 sm:$0xff] }
  0x3f   : > { %2666 = vmatmul.mubr.msk.f32.gmra.mrb[4].mxu1 %vm495_vm3, %v484_v16  ;;  %2675 = vmatprep.subr.bf16.mxu1 %v2884_v37  ;;  %v2887_v7 = vld [vmem:[%s3970_s6 + $0x8] sm:$0xff]  }
  0x40   : > { %2668 = vmatprep.mubr.msk.f32.mxu1 %vm495_vm3, %v485_v17 }
  0x41   : > { %2657 = vmatmul.mubr.msk.f32.gmra.mrb[6].mxu0 %vm495_vm3, %v478_v15 }
  0x42   : > { %2697 = vmatprep.mubr.msk.f32.mxu0 %vm495_vm3, %v886_v18  ;;  %2676 = vmatpush3.bf16.msra.mxu1 %v2884_v37 }
  0x43   : > { %2669 = vmatmul.mubr.msk.f32.gmra.mrb[6].mxu1 %vm495_vm3, %v486_v20  ;;  %2677 = vmatprep.subr.bf16.mxu1 %v2885_v38 }
  0x45   : > { %2698 = vmatmul.mubr.msk.f32.vlgmr.msra.gmra.mrb[8].mxu0 %vm495_vm3, %v887_v22 }
  0x46   : > { %2700 = vmatprep.mubr.msk.f32.mxu0 %vm495_vm3, %v888_v23  ;;  %2678 = vmatpush3.bf16.msra.mxu1 %v2885_v38  ;;  %v2889_v38 = vld [vmem:[%s3970_s6 + $0x18] sm:$0xff]  }
  0x47   : > { %2721 = vmatprep.subr.bf16.mxu1 %v2886_v39 }
  0x49   : > { %2701 = vmatmul.mubr.msk.f32.gmra.mrb[10].mxu0 %vm495_vm3, %v889_v24  ;;  %v2888_v24 = vld [vmem:[%s3970_s6 + $0x10] sm:$0xff]  }
  0x4a   : > { %2703 = vmatprep.mubr.msk.f32.mxu0 %vm495_vm3, %v890_v25 }
  0x4d   : > { %2704 = vmatmul.mubr.msk.f32.gmra.mrb[12].mxu0 %vm495_vm3, %v891_v26 }
  0x4e   : > { %2706 = vmatprep.mubr.msk.f32.mxu0 %vm495_vm3, %v892_v27 }
  0x51   : > { %2707 = vmatmul.mubr.msk.f32.gmra.mrb[14].mxu0 %vm495_vm3, %v893_v28 }
  0x52   : > { %2709 = vmatprep.mubr.msk.f32.mxu0 %vm495_vm3, %v894_v29 }
  0x55   : > { %2710 = vmatmul.mubr.msk.f32.gmra.mrb[16].mxu0 %vm495_vm3, %v895_v30 }
  0x56   : > { %2712 = vmatprep.mubr.msk.f32.mxu0 %vm495_vm3, %v896_v31 }
  0x59   : > { %2713 = vmatmul.mubr.msk.f32.gmra.mrb[18].mxu0 %vm495_vm3, %v897_v32 }
  0x5a   : > { %2715 = vmatprep.mubr.msk.f32.mxu0 %vm495_vm3, %v898_v33 }
  0x5d   : > { %2716 = vmatmul.mubr.msk.f32.gmra.mrb[20].mxu0 %vm495_vm3, %v899_v34 }
  0x5e   : > { %2718 = vmatprep.mubr.msk.f32.mxu0 %vm495_vm3, %v900_v35 }
  0x61   : > { %2719 = vmatmul.mubr.msk.f32.gmra.mrb[22].mxu0 %vm495_vm3, %v901_v36 }
 0x108   : > { %v2649_v41 = vpop.f32.mrb[0].mxu0 }
 0x109   : > { %v3305_v42 = vadd.f32 %v2649_v41, %v3302_v40  ;;  %v614_v43 = vpop.f32.mrb[1].mxu0 }
 0x10a   : > { %v3308_v44 = vadd.f32 %v3302_v40, %v614_v43  ;;  %v2661_v45 = vpop.f32.mrb[0].mxu1 }
 0x10b   : > { %v3986_v46 = vmax.f32 %v3305_v42, 0.0  ;;  %v3312_v47 = vadd.f32 %v2661_v45, %v3302_v40  ;;  %v654_v48 = vpop.f32.mrb[1].mxu1 }
 0x10c   : > { %v3988_v49 = vmax.f32 %v3308_v44, 0.0  ;;  %v2652_v50 = vpop.f32.mrb[2].mxu0  ;;  %v3316_v51 = vadd.f32 %v3302_v40, %v654_v48 }
 0x10d   : > { %v3319_v52 = vadd.f32 %v2652_v50, %v3302_v40  ;;  %v624_v53 = vpop.f32.mrb[3].mxu0  ;;  %v3981_v54 = vmax.f32 %v3312_v47, 0.0 }
 0x10e   : > { %v709_v55 = vpack.c.bf16 %v3986_v46, %v3988_v49  ;;  %v3327_v56 = vadd.f32 %v3302_v40, %v624_v53  ;;  %v3980_v57 = vmax.f32 %v3316_v51, 0.0  ;;  %v2664_v58 = vpop.f32.mrb[2].mxu1  ;;  %v3653_v49 = vld [vmem:[#allocation2 + $0x68] sm:$0xff] }
 0x10f   : > { %v3987_v59 = vmax.f32 %v3319_v52, 0.0  ;;  %v3332_v60 = vadd.f32 %v2664_v58, %v3302_v40  ;;  %v664_v61 = vpop.f32.mrb[3].mxu1 }
 0x110   : > { %v3989_v62 = vmax.f32 %v3327_v56, 0.0  ;;  %v2655_v63 = vpop.f32.mrb[4].mxu0  ;;  %2679 = vmatprep.mubr.msk.bf16.mxu1 %vm756_vm4, %v709_v55  ;;  %v713_v0 = vpack.c.bf16 %v3981_v54, %v3980_v57  ;;  %v3341_v1 = vadd.f32 %v3302_v40, %v664_v61 }
 0x111   : > { %v3344_v2 = vadd.f32 %v2655_v63, %v3302_v40  ;;  %v634_v3 = vpop.f32.mrb[5].mxu0  ;;  %v3979_v4 = vmax.f32 %v3332_v60, 0.0 }
 0x112   : > { %v710_v5 = vpack.c.bf16 %v3987_v59, %v3989_v62  ;;  %v3352_v6 = vadd.f32 %v3302_v40, %v634_v3  ;;  %v3978_v8 = vmax.f32 %v3341_v1, 0.0  ;;  %v2667_v9 = vpop.f32.mrb[4].mxu1 }
 0x113   : > { %v3985_v10 = vmax.f32 %v3344_v2, 0.0  ;;  %v3360_v11 = vadd.f32 %v2667_v9, %v3302_v40  ;;  %v674_v12 = vpop.f32.mrb[5].mxu1 }
 0x114   : > { %v3984_v13 = vmax.f32 %v3352_v6, 0.0  ;;  %v2658_v14 = vpop.f32.mrb[6].mxu0  ;;  %2680 = vmatmul.mubr.msk.bf16.vlgmr.msra.gmra.mrb[8].mxu1 %vm756_vm4, %v710_v5  ;;  %v714_v15 = vpack.c.bf16 %v3979_v4, %v3978_v8  ;;  %v3369_v16 = vadd.f32 %v3302_v40, %v674_v12 }
 0x115   : > { %v3372_v17 = vadd.f32 %v2658_v14, %v3302_v40  ;;  %2722 = vmatpush3.bf16.msra.mxu1 %v2886_v39  ;;  %v644_v18 = vpop.f32.mrb[7].mxu0  ;;  %v3977_v19 = vmax.f32 %v3360_v11, 0.0 }
 0x116   : > { %v711_v20 = vpack.c.bf16 %v3985_v10, %v3984_v13  ;;  %v3380_v21 = vadd.f32 %v3302_v40, %v644_v18  ;;  %2723 = vmatprep.subr.bf16.mxu1 %v2887_v7  ;;  %v3976_v22 = vmax.f32 %v3369_v16, 0.0  ;;  %v2670_v23 = vpop.f32.mrb[6].mxu1 }
 0x117   : > { %v3983_v25 = vmax.f32 %v3372_v17, 0.0  ;;  %v3388_v26 = vadd.f32 %v2670_v23, %v3302_v40  ;;  %v684_v27 = vpop.f32.mrb[7].mxu1 }
 0x118   : > { %v3982_v28 = vmax.f32 %v3380_v21, 0.0  ;;  %2683 = vmatprep.mubr.msk.bf16.mxu1 %vm756_vm4, %v711_v20  ;;  %v715_v29 = vpack.c.bf16 %v3977_v19, %v3976_v22  ;;  %v3397_v30 = vadd.f32 %v3302_v40, %v684_v27  ;;  %v2699_v31 = vpop.f32.mrb[8].mxu0 }
 0x119   : > { %3995 = vst [vmem:[#allocation9_spill] sm:$0xff] %v3388_v26  ;;  %2724 = vmatpush3.bf16.msra.mxu1 %v2887_v7  ;;  %v3975_v32 = vmax.f32 %v3388_v26, 0.0  ;;  %v1022_v33 = vadd.f32 %v2699_v31, %v3302_v40  ;;  %v1016_v34 = vpop.f32.mrb[9].mxu0  ;;  %v3666_v26 = vld [vmem:[#allocation2 + $0x78] sm:$0xff] }
 0x11a   : > { %3996 = vst [vmem:[#allocation10_spill] sm:$0xff] %v3397_v30  ;;  %v712_v35 = vpack.c.bf16 %v3983_v25, %v3982_v28  ;;  %2725 = vmatprep.subr.bf16.mxu1 %v2888_v24  ;;  %v3974_v36 = vmax.f32 %v3397_v30, 0.0  ;;  %v1017_v37 = vadd.f32 %v3302_v40, %v1016_v34 }
 0x11b   : > { %v1096_v39 = vmax.f32 %v1022_v33, 0.0 }
 0x11c   : > { %2684 = vmatmul.mubr.msk.bf16.gmra.mrb[12].mxu1 %vm756_vm4, %v712_v35  ;;  %v716_v41 = vpack.c.bf16 %v3975_v32, %v3974_v36  ;;  %v1095_v43 = vmax.f32 %v1017_v37, 0.0  ;;  %v2702_v45 = vpop.f32.mrb[10].mxu0 }
 0x11d   : > { %2687 = vmatprep.mubr.msk.bf16.mxu1 %vm756_vm4, %v713_v0  ;;  %2726 = vmatpush3.bf16.msra.mxu1 %v2888_v24  ;;  %v1032_v48 = vadd.f32 %v2702_v45, %v3302_v40  ;;  %v1026_v50 = vpop.f32.mrb[11].mxu0 }
 0x11e   : > { %v1111_v53 = vpack.c.bf16 %v1096_v39, %v1095_v43  ;;  %2727 = vmatprep.subr.bf16.mxu1 %v2889_v38  ;;  %v1027_v55 = vadd.f32 %v3302_v40, %v1026_v50 }
 0x11f   : > { %v1098_v58 = vmax.f32 %v1032_v48, 0.0 }
 0x120   : > { %v1097_v61 = vmax.f32 %v1027_v55, 0.0  ;;  %v2705_v63 = vpop.f32.mrb[12].mxu0 }
 0x121   : > { %2728 = vmatpush3.bf16.msra.mxu1 %v2889_v38  ;;  %v1042_v3 = vadd.f32 %v2705_v63, %v3302_v40  ;;  %v1036_v5 = vpop.f32.mrb[13].mxu0 }
 0x122   : > { %v1112_v7 = vpack.c.bf16 %v1098_v58, %v1097_v61  ;;  %v1037_v9 = vadd.f32 %v3302_v40, %v1036_v5 }
 0x123   : > { %v1100_v12 = vmax.f32 %v1042_v3, 0.0 }
 0x124   : > { %2688 = vmatmul.mubr.msk.bf16.gmra.mrb[16].mxu1 %vm756_vm4, %v714_v15  ;;  %v1099_v0 = vmax.f32 %v1037_v9, 0.0  ;;  %v2708_v14 = vpop.f32.mrb[14].mxu0 }
 0x125   : > { %2691 = vmatprep.mubr.msk.bf16.mxu1 %vm756_vm4, %v715_v29  ;;  %v1052_v18 = vadd.f32 %v2708_v14, %v3302_v40  ;;  %v1046_v20 = vpop.f32.mrb[15].mxu0 }
 0x126   : > { %v1113_v23 = vpack.c.bf16 %v1100_v12, %v1099_v0  ;;  %v1047_v24 = vadd.f32 %v3302_v40, %v1046_v20 }
 0x127   : > { %v1102_v27 = vmax.f32 %v1052_v18, 0.0 }
 0x128   : > { %v1101_v31 = vmax.f32 %v1047_v24, 0.0  ;;  %v2711_v33 = vpop.f32.mrb[16].mxu0 }
 0x129   : > { %v1062_v34 = vadd.f32 %v2711_v33, %v3302_v40  ;;  %v1056_v35 = vpop.f32.mrb[17].mxu0 }
 0x12a   : > { %v1114_v37 = vpack.c.bf16 %v1102_v27, %v1101_v31  ;;  %v1057_v38 = vadd.f32 %v3302_v40, %v1056_v35 }
 0x12b   : > { %v1104_v15 = vmax.f32 %v1062_v34, 0.0 }
 0x12c   : > { %2692 = vmatmul.mubr.msk.bf16.gmra.mrb[20].mxu1 %vm756_vm4, %v716_v41  ;;  %v1103_v39 = vmax.f32 %v1057_v38, 0.0  ;;  %v2714_v29 = vpop.f32.mrb[18].mxu0 }
 0x12d   : > { %2729 = vmatprep.mubr.msk.bf16.mxu1 %vm756_vm4, %v1111_v53  ;;  %v1072_v43 = vadd.f32 %v2714_v29, %v3302_v40  ;;  %v1066_v45 = vpop.f32.mrb[19].mxu0 }
 0x12e   : > { %v1115_v48 = vpack.c.bf16 %v1104_v15, %v1103_v39  ;;  %v1067_v50 = vadd.f32 %v3302_v40, %v1066_v45 }
 0x12f   : > { %v1106_v55 = vmax.f32 %v1072_v43, 0.0 }
 0x130   : > { %v1105_v58 = vmax.f32 %v1067_v50, 0.0  ;;  %v2717_v61 = vpop.f32.mrb[20].mxu0 }
 0x131   : > { %v1082_v63 = vadd.f32 %v2717_v61, %v3302_v40  ;;  %v1076_v3 = vpop.f32.mrb[21].mxu0 }
 0x132   : > { %v1116_v5 = vpack.c.bf16 %v1106_v55, %v1105_v58  ;;  %v1077_v9 = vadd.f32 %v3302_v40, %v1076_v3 }
 0x133   : > { %v1108_v41 = vmax.f32 %v1082_v63, 0.0 }
 0x134   : > { %2730 = vmatmul.mubr.msk.bf16.vlgmr.msra.gmra.mrb[24].mxu1 %vm756_vm4, %v1112_v7  ;;  %v1107_v12 = vmax.f32 %v1077_v9, 0.0  ;;  %v2720_v53 = vpop.f32.mrb[22].mxu0  ;;  %v2469_v7 = vld [vmem:[%s3969_s5] ss:$0 sm:$0xff] }
 0x135   : > { %2733 = vmatprep.mubr.msk.bf16.mxu1 %vm756_vm4, %v1113_v23  ;;  %v1092_v0 = vadd.f32 %v2720_v53, %v3302_v40  ;;  %v1086_v14 = vpop.f32.mrb[23].mxu0 }
 0x136   : > { %v1117_v18 = vpack.c.bf16 %v1108_v41, %v1107_v12  ;;  %v1087_v20 = vadd.f32 %v3302_v40, %v1086_v14 }
 0x137   : > { %v1110_v24 = vmax.f32 %v1092_v0, 0.0 }
 0x138   : > { %v1109_v27 = vmax.f32 %v1087_v20, 0.0 }
 0x13a   : > { %v1118_v31 = vpack.c.bf16 %v1110_v24, %v1109_v27 }
 0x13c   : > { %2734 = vmatmul.mubr.msk.bf16.gmra.mrb[28].mxu1 %vm756_vm4, %v1114_v37 }
 0x13d   : > { %2737 = vmatprep.mubr.msk.bf16.mxu1 %vm756_vm4, %v1115_v48 }
 0x144   : > { %2738 = vmatmul.mubr.msk.bf16.gmra.mrb[32].mxu1 %vm756_vm4, %v1116_v5 }
 0x145   : > { %2741 = vmatprep.mubr.msk.bf16.mxu1 %vm756_vm4, %v1117_v18 }
 0x14c   : > { %2742 = vmatmul.mubr.msk.bf16.gmra.mrb[36].mxu1 %vm756_vm4, %v1118_v31 }
 0x1e7   : > { %v2681_v23 = vpop.f32.mrb[8].mxu1 }
 0x1e8   : > { %v3444_v33 = vadd.f32 %v2681_v23, %v2469_v7  ;;  %v815_v40 = vpop.f32.mrb[9].mxu1 }
 0x1e9   : > { %v2682_v34 = vpop.f32.mrb[10].mxu1  ;;  %v816_v38 = vadd.f32 %v2469_v7, %v815_v40 }
 0x1ea   : > { %v3446_v35 = vadd.f32 %v2682_v34, %v2469_v7  ;;  %v818_v37 = vpop.f32.mrb[11].mxu1 }
 0x1eb   : > { %v819_v15 = vadd.f32 %v2469_v7, %v818_v37 }
 0x1ec   : > { %v879_v39 = vpack.c.bf16 %v3446_v35, %v3444_v33 }
 0x1ed   : > { %v878_v29 = vpack.c.bf16 %v819_v15, %v816_v38 }
 0x1ef   : > { %v2685_v43 = vpop.f32.mrb[12].mxu1  ;;  %2761 = vmatprep.mubr.msk.bf16.mxu0 %vm1311_vm5, %v878_v29 }
 0x1f0   : > { %v3451_v45 = vadd.f32 %v2685_v43, %v2469_v7  ;;  %v831_v48 = vpop.f32.mrb[13].mxu1 }
 0x1f1   : > { %v3453_v50 = vadd.f32 %v2469_v7, %v831_v48  ;;  %v2686_v55 = vpop.f32.mrb[14].mxu1 }
 0x1f2   : > { %v3455_v58 = vadd.f32 %v2686_v55, %v2469_v7  ;;  %v834_v61 = vpop.f32.mrb[15].mxu1 }
 0x1f3   : > { %v3457_v63 = vadd.f32 %v2469_v7, %v834_v61  ;;  %v2499_v61 = vld [vmem:[%s3971_s7] ss:$0 sm:$0xff] }
 0x1f4   : > { %v881_v3 = vpack.c.bf16 %v3455_v58, %v3451_v45 }
 0x1f5   : > { %v880_v5 = vpack.c.bf16 %v3457_v63, %v3453_v50 }
 0x1f7   : > { %v2689_v9 = vpop.f32.mrb[16].mxu1 }
 0x1f8   : > { %v3463_v41 = vadd.f32 %v2689_v9, %v2469_v7  ;;  %v847_v12 = vpop.f32.mrb[17].mxu1 }
 0x1f9   : > { %v3465_v53 = vadd.f32 %v2469_v7, %v847_v12  ;;  %v2690_v0 = vpop.f32.mrb[18].mxu1 }
 0x1fa   : > { %v3467_v14 = vadd.f32 %v2690_v0, %v2469_v7  ;;  %v850_v18 = vpop.f32.mrb[19].mxu1 }
 0x1fb   : > { %v3469_v20 = vadd.f32 %v2469_v7, %v850_v18 }
 0x1fc   : > { %v883_v24 = vpack.c.bf16 %v3467_v14, %v3463_v41 }
 0x1fd   : > { %v882_v27 = vpack.c.bf16 %v3469_v20, %v3465_v53  ;;  %v3047_v20 = vmov 0  }
 0x1fe   : > { %2881 = vset.pattern.permute.xlu0 %v3047_v20  ;;  %2880 = vset.pattern.permute.xlu1 %v3047_v20  ;;  %v1467_v20 = vld [vmem:[#allocation2 + $0x50] sm:$0xff] }
 0x1ff   : > { %v2693_v31 = vpop.f32.mrb[20].mxu1 }
 0x200   : > { %v3475_v23 = vadd.f32 %v2693_v31, %v2469_v7  ;;  %v863_v40 = vpop.f32.mrb[21].mxu1 }
 0x201   : > { %v3477_v34 = vadd.f32 %v2469_v7, %v863_v40  ;;  %v2694_v37 = vpop.f32.mrb[22].mxu1 }
 0x202   : > { %v3479_v38 = vadd.f32 %v2694_v37, %v2469_v7  ;;  %v866_v15 = vpop.f32.mrb[23].mxu1 }
 0x203   : > { %v3481_v29 = vadd.f32 %v2469_v7, %v866_v15 }
 0x204   : > { %v885_v43 = vpack.c.bf16 %v3479_v38, %v3475_v23  ;;  %v3590_v38 = vld [vmem:[#allocation2 + $0x10] sm:$0xff] }
 0x205   : > { %v884_v48 = vpack.c.bf16 %v3481_v29, %v3477_v34 }
 0x207   : > { %v2731_v55 = vpop.f32.mrb[24].mxu1 }
 0x208   : > { %v1216_v9 = vpop.f32.mrb[25].mxu1  ;;  %v1225_v0 = vadd.f32 %v2731_v55, %v2499_v61 }
 0x209   : > { %v2732_v12 = vpop.f32.mrb[26].mxu1  ;;  %v1217_v40 = vadd.f32 %v2499_v61, %v1216_v9 }
 0x20a   : > { %v1228_v18 = vadd.f32 %v2732_v12, %v2499_v61  ;;  %v1219_v31 = vpop.f32.mrb[27].mxu1 }
 0x20b   : > { %v1220_v37 = vadd.f32 %v2499_v61, %v1219_v31 }
 0x20c   : > { %v1280_v7 = vpack.c.bf16 %v1228_v18, %v1225_v0 }
 0x20d   : > { %v1279_v15 = vpack.c.bf16 %v1220_v37, %v1217_v40 }
 0x20f   : > { %v2735_v36 = vpop.f32.mrb[28].mxu1  ;;  %1295 = vrot.lane.b32.xlu0 %v1279_v15, %s3046_s25  ;;  %2777 = vmatprep.subr.bf16.mxu1 %v1279_v15 }
 0x210   : > { %v1241_v32 = vadd.f32 %v2735_v36, %v2499_v61  ;;  %v1232_v22 = vpop.f32.mrb[29].mxu1  ;;  %2778 = vmatpush3.bf16.msra.mxu1 %v1279_v15 }
 0x211   : > { %v1233_v19 = vadd.f32 %v2499_v61, %v1232_v22  ;;  %v2736_v8 = vpop.f32.mrb[30].mxu1  ;;  %2779 = vmatprep.subr.bf16.mxu1 %v1280_v7 }
 0x212   : > { %v1244_v4 = vadd.f32 %v2736_v8, %v2499_v61  ;;  %v1235_v57 = vpop.f32.mrb[31].mxu1 }
 0x213   : > { %v1236_v55 = vadd.f32 %v2499_v61, %v1235_v57  ;;  %1297 = vrot.lane.b32.xlu0 %v1280_v7, %s3046_s25 }
 0x214   : > { %v1282_v9 = vpack.c.bf16 %v1244_v4, %v1241_v32  ;;  %2780 = vmatpush3.bf16.msra.mxu1 %v1280_v7 }
 0x215   : > { %v1281_v12 = vpack.c.bf16 %v1236_v55, %v1233_v19 }
 0x217   : > { %1299 = vrot.lane.b32.xlu1 %v1281_v12, %s3046_s25  ;;  %2781 = vmatprep.subr.bf16.mxu1 %v1281_v12  ;;  %v2739_v0 = vpop.f32.mrb[32].mxu1 }
 0x218   : > { %2782 = vmatpush3.bf16.msra.mxu1 %v1281_v12  ;;  %v1257_v18 = vadd.f32 %v2739_v0, %v2499_v61  ;;  %v1248_v36 = vpop.f32.mrb[33].mxu1 }
 0x219   : > { %2783 = vmatprep.subr.bf16.mxu1 %v1282_v9  ;;  %v1249_v31 = vadd.f32 %v2499_v61, %v1248_v36  ;;  %v2740_v22 = vpop.f32.mrb[34].mxu1 }
 0x21a   : > { %v1260_v40 = vadd.f32 %v2740_v22, %v2499_v61  ;;  %v1251_v37 = vpop.f32.mrb[35].mxu1 }
 0x21b   : > { %1301 = vrot.lane.b32.xlu1 %v1282_v9, %s3046_s25  ;;  %v1252_v57 = vadd.f32 %v2499_v61, %v1251_v37 }
 0x21c   : > { %2784 = vmatpush3.bf16.msra.mxu1 %v1282_v9  ;;  %v1284_v8 = vpack.c.bf16 %v1260_v40, %v1257_v18 }
 0x21d   : > { %v1283_v4 = vpack.c.bf16 %v1252_v57, %v1249_v31 }
 0x21f   : > { %2785 = vmatprep.subr.bf16.mxu1 %v1283_v4  ;;  %1305 = vrot.lane.b32.xlu1 %v1284_v8, %s3046_s25  ;;  %v2743_v19 = vpop.f32.mrb[36].mxu1 }
 0x220   : > { %2786 = vmatpush3.bf16.msra.mxu1 %v1283_v4  ;;  %1303 = vrot.lane.b32.xlu0 %v1283_v4, %s3046_s25  ;;  %v1273_v32 = vadd.f32 %v2743_v19, %v2499_v61  ;;  %v1264_v7 = vpop.f32.mrb[37].mxu1 }
 0x221   : > { %2787 = vmatprep.subr.bf16.mxu1 %v1284_v8  ;;  %v1265_v15 = vadd.f32 %v2499_v61, %v1264_v7  ;;  %v2744_v55 = vpop.f32.mrb[38].mxu1 }
 0x222   : > { %v1276_v12 = vadd.f32 %v2744_v55, %v2499_v61  ;;  %v1267_v0 = vpop.f32.mrb[39].mxu1 }
 0x223   : > { %v1268_v36 = vadd.f32 %v2499_v61, %v1267_v0 }
 0x224   : > { %2788 = vmatpush3.bf16.msra.mxu1 %v1284_v8  ;;  %v1286_v22 = vpack.c.bf16 %v1276_v12, %v1273_v32 }
 0x225   : > { %v1285_v9 = vpack.c.bf16 %v1268_v36, %v1265_v15 }
 0x226   : > { %1309 = vrot.lane.b32.xlu1 %v1286_v22, %s3046_s25 }
 0x227   : > { %2789 = vmatprep.subr.bf16.mxu1 %v1285_v9  ;;  %1307 = vrot.lane.b32.xlu0 %v1285_v9, %s3046_s25 }
 0x228   : > { %2790 = vmatpush3.bf16.msra.mxu1 %v1285_v9 }
 0x229   : > { %2791 = vmatprep.subr.bf16.mxu1 %v1286_v22 }
 0x22c   : > { %2792 = vmatpush3.bf16.msra.mxu1 %v1286_v22  ;;  %v3595_v22 = vld [vmem:[#allocation2] sm:$0xff] }
 0x281   : > { %v1296_v18 = vpop.permute.xlu0 %1295 }
 0x282   : > { %v1337_v31 = vsel %vm1311_vm5, %v1296_v18, 0  ;;  %2811 = vmatprep.subr.msk.bf16.mxu0 %vm1311_vm5, %v1296_v18 }
 0x283   : > { %2746 = vmatpush3.bf16.xpose.msra.mxu0 %v1337_v31 }
 0x285   : > { %v1298_v40 = vpop.permute.xlu0 %1297 }
 0x286   : > { %2812 = vmatprep.subr.msk.bf16.mxu0 %vm1311_vm5, %v1298_v40  ;;  %v1340_v61 = vsel %vm1311_vm5, %v1298_v40, 0 }
 0x289   : > { %v1300_v37 = vpop.permute.xlu1 %1299 }
 0x28a   : > { %v1343_v57 = vsel %vm1311_vm5, %v1300_v37, 0 }
 0x28b   : > { %2748 = vmatpush3.bf16.xpose.msra.mxu0 %v1340_v61  ;;  %v3603_v61 = vld [vmem:[#allocation2 + $0x18] sm:$0xff] }
 0x28c   : > { %2813 = vmatprep.subr.msk.bf16.mxu0 %vm1311_vm5, %v1300_v37  ;;  %v3605_v37 = vld [vmem:[#allocation2 + $0x30] sm:$0xff] }
 0x28d   : > { %v1302_v8 = vpop.permute.xlu1 %1301 }
 0x28e   : > { %v1346_v19 = vsel %vm1311_vm5, %v1302_v8, 0 }
 0x291   : > { %v1306_v7 = vpop.permute.xlu1 %1305 }
 0x292   : > { %v1304_v4 = vpop.permute.xlu0 %1303  ;;  %v1352_v55 = vsel %vm1311_vm5, %v1306_v7, 0 }
 0x293   : > { %2750 = vmatpush3.bf16.xpose.msra.mxu0 %v1343_v57  ;;  %v1349_v32 = vsel %vm1311_vm5, %v1304_v4, 0 }
 0x294   : > { %2814 = vmatprep.subr.msk.bf16.mxu0 %vm1311_vm5, %v1302_v8 }
 0x298   : > { %v1310_v0 = vpop.permute.xlu1 %1309 }
 0x299   : > { %v1308_v15 = vpop.permute.xlu0 %1307  ;;  %v1358_v36 = vsel %vm1311_vm5, %v1310_v0, 0 }
 0x29a   : > { %v1355_v12 = vsel %vm1311_vm5, %v1308_v15, 0 }
 0x29b   : > { %2752 = vmatpush3.bf16.xpose.msra.mxu0 %v1346_v19 }
 0x29c   : > { %2815 = vmatprep.subr.msk.bf16.mxu0 %vm1311_vm5, %v1304_v4 }
 0x2a3   : > { %2754 = vmatpush3.bf16.xpose.msra.mxu0 %v1349_v32  ;;  %v1461_v32 = vld [vmem:[#allocation2 + $0x20] sm:$0xff] }
 0x2a4   : > { %2816 = vmatprep.subr.msk.bf16.mxu0 %vm1311_vm5, %v1306_v7  ;;  %v3614_v7 = vld [vmem:[#allocation2 + $0x28] sm:$0xff] }
 0x2ab   : > { %2756 = vmatpush3.bf16.xpose.msra.mxu0 %v1352_v55 }
 0x2ac   : > { %2817 = vmatprep.subr.msk.bf16.mxu0 %vm1311_vm5, %v1308_v15 }
 0x2b3   : > { %2758 = vmatpush3.bf16.xpose.msra.mxu0 %v1355_v12 }
 0x2b4   : > { %2818 = vmatprep.subr.msk.bf16.mxu0 %vm1311_vm5, %v1310_v0 }
 0x2bb   : > { %2760 = vmatpush3.bf16.xpose.msra.mxu0 %v1358_v36  ;;  %v3623_v36 = vld [vmem:[#allocation2 + $0x38] sm:$0xff] }
 0x2c2   : > { %2762 = vmatmul.mubr.msk.bf16.vlgmr.msra.gmra.mrb[24].mxu0 %vm1311_vm5, %v879_v39 }
 0x2c3   : > { %2765 = vmatprep.mubr.msk.bf16.mxu0 %vm1311_vm5, %v880_v5 }
 0x2ca   : > { %2766 = vmatmul.mubr.msk.bf16.gmra.mrb[28].mxu0 %vm1311_vm5, %v881_v3 }
 0x2cb   : > { %2769 = vmatprep.mubr.msk.bf16.mxu0 %vm1311_vm5, %v882_v27 }
 0x2d2   : > { %2770 = vmatmul.mubr.msk.bf16.gmra.mrb[32].mxu0 %vm1311_vm5, %v883_v24 }
 0x2d3   : > { %2773 = vmatprep.mubr.msk.bf16.mxu0 %vm1311_vm5, %v884_v48  ;;  %v1458_v48 = vld [vmem:[#allocation2 + $0x8] sm:$0xff] }
 0x2da   : > { %2774 = vmatmul.mubr.msk.bf16.gmra.mrb[36].mxu0 %vm1311_vm5, %v885_v43 }
 0x395   : > { %v3542_v33 = vpop.f32.mrb[24].mxu0 }
 0x396   : > { %1477 = vmax.xlane.f32.xlu0 %v3542_v33  ;;  %v3545_v35 = vpop.f32.mrb[25].mxu0 }
 0x397   : > { %v3547_v39 = vpop.f32.mrb[26].mxu0 }
 0x398   : > { %v3549_v45 = vpop.f32.mrb[27].mxu0 }
 0x399   : > { %1475 = vmax.xlane.f32.xlu1 %v3549_v45 }
 0x39a   : > { %1473 = vmax.xlane.f32.xlu0 %v3545_v35 }
 0x39d   : > { %v3553_v50 = vpop.f32.mrb[28].mxu0 }
 0x39e   : > { %1479 = vmax.xlane.f32.xlu0 %v3547_v39  ;;  %1485 = vmax.xlane.f32.xlu1 %v3553_v50  ;;  %v3557_v58 = vpop.f32.mrb[29].mxu0 }
 0x39f   : > { %v3559_v63 = vpop.f32.mrb[30].mxu0 }
 0x3a0   : > { %v3561_v3 = vpop.f32.mrb[31].mxu0 }
 0x3a2   : > { %1481 = vmax.xlane.f32.xlu1 %v3557_v58  ;;  %1483 = vmax.xlane.f32.xlu0 %v3561_v3 }
 0x3a5   : > { %v3565_v5 = vpop.f32.mrb[32].mxu0 }
 0x3a6   : > { %1487 = vmax.xlane.f32.xlu0 %v3559_v63  ;;  %1493 = vmax.xlane.f32.xlu1 %v3565_v5  ;;  %v3569_v41 = vpop.f32.mrb[33].mxu0 }
 0x3a7   : > { %v3571_v53 = vpop.f32.mrb[34].mxu0 }
 0x3a8   : > { %v3573_v14 = vpop.f32.mrb[35].mxu0 }
 0x3aa   : > { %1489 = vmax.xlane.f32.xlu1 %v3569_v41  ;;  %1491 = vmax.xlane.f32.xlu0 %v3573_v14 }
 0x3ad   : > { %v3577_v24 = vpop.f32.mrb[36].mxu0 }
 0x3ae   : > { %1495 = vmax.xlane.f32.xlu0 %v3571_v53  ;;  %1501 = vmax.xlane.f32.xlu1 %v3577_v24  ;;  %v3581_v27 = vpop.f32.mrb[37].mxu0 }
 0x3af   : > { %v3583_v23 = vpop.f32.mrb[38].mxu0 }
 0x3b0   : > { %v3585_v34 = vpop.f32.mrb[39].mxu0 }
 0x3b2   : > { %1497 = vmax.xlane.f32.xlu1 %v3581_v27  ;;  %1499 = vmax.xlane.f32.xlu0 %v3585_v34 }
 0x3b6   : > { %1503 = vmax.xlane.f32.xlu0 %v3583_v23 }
 0x423   : > { %v1478_v29 = vpop.xlane.xlu0 %1477 }
 0x424   : > { %v3593_v43 = vmax.f32 %v3590_v38, %v1478_v29 }
 0x426   : > { %2045 = vst.msk [vmem:[#allocation2 + $0x10] sm:$0xff] %vm1777_vm6, %v3593_v43  ;;  %v1476_v9 = vpop.xlane.xlu1 %1475 }
 0x427   : > { %v1506_v18 = vmax.f32 %v1458_v48, %v1476_v9  ;;  %v1474_v31 = vpop.xlane.xlu0 %1473 }
 0x428   : > { %v3600_v40 = vmax.f32 %v3595_v22, %v1474_v31 }
 0x429   : > { %2044 = vst.msk [vmem:[#allocation2 + $0x8] sm:$0xff] %vm1777_vm6, %v1506_v18  ;;  %1576 = vperm.xlu0 %2881, %v1506_v18  }
 0x42a   : > { %2043 = vst.msk [vmem:[#allocation2] sm:$0xff] %vm1777_vm6, %v3600_v40  ;;  %1571 = vperm.xlu1 %2880, %v3600_v40  }
 0x42b   : > { %v1480_v57 = vpop.xlane.xlu0 %1479  ;;  %v1486_v8 = vpop.xlane.xlu1 %1485 }
 0x42c   : > { %v3611_v4 = vmax.f32 %v3603_v61, %v1480_v57  ;;  %v1511_v19 = vmax.f32 %v3605_v37, %v1486_v8  ;;  %v1465_v8 = vld [vmem:[#allocation2 + $0x40] sm:$0xff] }
 0x42e   : > { %2046 = vst.msk [vmem:[#allocation2 + $0x18] sm:$0xff] %vm1777_vm6, %v3611_v4  ;;  %2049 = vst.msk [vmem:[#allocation2 + $0x30] sm:$0xff] %vm1777_vm6, %v1511_v19  ;;  %1581 = vperm.xlu1 %2880, %v3593_v43  }
 0x42f   : > { %v1482_v15 = vpop.xlane.xlu1 %1481  ;;  %v1484_v55 = vpop.xlane.xlu0 %1483 }
 0x430   : > { %v1509_v12 = vmax.f32 %v1461_v32, %v1482_v15  ;;  %v3621_v0 = vmax.f32 %v3614_v7, %v1484_v55  ;;  %v3632_v15 = vld [vmem:[#allocation2 + $0x48] sm:$0xff]  ;;  %v1522_v55 = vsub.f32 %v1458_v48, %v1506_v18 }
 0x432   : > { %2047 = vst.msk [vmem:[#allocation2 + $0x20] sm:$0xff] %vm1777_vm6, %v1509_v12  ;;  %2048 = vst.msk [vmem:[#allocation2 + $0x28] sm:$0xff] %vm1777_vm6, %v3621_v0  ;;  %1586 = vperm.xlu1 %2880, %v3611_v4   ;;  %v1539_v10 = vmul.f32 1.442695, %v1522_v55  ;;  %v1525_v46 = vsub.f32 %v1461_v32, %v1509_v12 }
 0x433   : > { %v1488_v29 = vpop.xlane.xlu0 %1487  ;;  %v1494_v9 = vpop.xlane.xlu1 %1493 }
 0x434   : > { %v3630_v31 = vmax.f32 %v3623_v36, %v1488_v29  ;;  %v1515_v57 = vmax.f32 %v1467_v20, %v1494_v9  ;;  %v3640_v29 = vld [vmem:[#allocation2 + $0x58] sm:$0xff]  ;;  %v3642_v9 = vld [vmem:[#allocation2 + $0x70] sm:$0xff]  ;;  %2890 = vpow2.f32 %v1539_v10  ;;  %v1545_v32 = vmul.f32 1.442695, %v1525_v46 }
 0x436   : > { %2050 = vst.msk [vmem:[#allocation2 + $0x38] sm:$0xff] %vm1777_vm6, %v3630_v31  ;;  %2053 = vst.msk [vmem:[#allocation2 + $0x50] sm:$0xff] %vm1777_vm6, %v1515_v57  ;;  %1601 = vperm.xlu1 %2880, %v1511_v19   ;;  %1621 = vperm.xlu0 %2881, %v1515_v57   ;;  %2892 = vpow2.f32 %v1545_v32 }
 0x437   : > { %v1490_v54 = vpop.xlane.xlu1 %1489  ;;  %v1492_v28 = vpop.xlane.xlu0 %1491 }
 0x438   : > { %v1513_v25 = vmax.f32 %v1465_v8, %v1490_v54  ;;  %v3638_v13 = vmax.f32 %v3632_v15, %v1492_v28  ;;  %v1469_v28 = vld [vmem:[#allocation2 + $0x60] sm:$0xff] }
 0x43a   : > { %2051 = vst.msk [vmem:[#allocation2 + $0x40] sm:$0xff] %vm1777_vm6, %v1513_v25  ;;  %2052 = vst.msk [vmem:[#allocation2 + $0x48] sm:$0xff] %vm1777_vm6, %v3638_v13  ;;  %1591 = vperm.xlu1 %2880, %v1509_v12   ;;  %v1529_v32 = vsub.f32 %v1465_v8, %v1513_v25 }
 0x43b   : > { %v1496_v59 = vpop.xlane.xlu0 %1495  ;;  %v1502_v48 = vpop.xlane.xlu1 %1501 }
 0x43c   : > { %v3648_v18 = vmax.f32 %v3640_v29, %v1496_v59  ;;  %v3651_v54 = vmax.f32 %v3642_v9, %v1502_v48  ;;  %v1527_v59 = vsub.f32 %v3605_v37, %v1511_v19  ;;  %v1531_v37 = vsub.f32 %v1467_v20, %v1515_v57 }
 0x43d   : > { %v1523_v57 = vsub.f32 %v3590_v38, %v3593_v43 }
 0x43e   : > { %2054 = vst.msk [vmem:[#allocation2 + $0x58] sm:$0xff] %vm1777_vm6, %v3648_v18  ;;  %2057 = vst.msk [vmem:[#allocation2 + $0x70] sm:$0xff] %vm1777_vm6, %v3651_v54  ;;  %1606 = vperm.xlu1 %2880, %v3630_v31   ;;  %v1549_v10 = vmul.f32 1.442695, %v1527_v59  ;;  %v1557_v59 = vmul.f32 1.442695, %v1531_v37  ;;  %v3682_v20 = vpop.eup %2890 }
 0x43f   : > { %v1498_v12 = vpop.xlane.xlu1 %1497  ;;  %v1500_v55 = vpop.xlane.xlu0 %1499 }
 0x440   : > { %v1517_v48 = vmax.f32 %v1469_v28, %v1498_v12  ;;  %v3664_v30 = vmax.f32 %v3653_v49, %v1500_v55  ;;  %v1521_v12 = vsub.f32 %v3595_v22, %v3600_v40  ;;  %2894 = vpow2.f32 %v1549_v10  ;;  %v3688_v62 = vpop.eup %2892 }
 0x441   : > { %2896 = vpow2.f32 %v1557_v59  ;;  %v1553_v22 = vmul.f32 1.442695, %v1529_v32  ;;  %v1541_v55 = vmul.f32 1.442695, %v1523_v57 }
 0x442   : > { %2055 = vst.msk [vmem:[#allocation2 + $0x60] sm:$0xff] %vm1777_vm6, %v1517_v48  ;;  %2056 = vst.msk [vmem:[#allocation2 + $0x68] sm:$0xff] %vm1777_vm6, %v3664_v30  ;;  %1596 = vperm.xlu1 %2880, %v3621_v0   ;;  %1631 = vperm.xlu0 %2881, %v1517_v48   ;;  %v1533_v40 = vsub.f32 %v1469_v28, %v1517_v48  ;;  %v1526_v28 = vsub.f32 %v3614_v7, %v3621_v0 }
 0x443   : > { %v1504_v46 = vpop.xlane.xlu0 %1503  ;;  %v1532_v0 = vsub.f32 %v3640_v29, %v3648_v18  ;;  %v1534_v29 = vsub.f32 %v3653_v49, %v3664_v30 }
 0x444   : > { %v3673_v19 = vmax.f32 %v3666_v26, %v1504_v46  ;;  %v1537_v46 = vmul.f32 1.442695, %v1521_v12  ;;  %v1561_v38 = vmul.f32 1.442695, %v1533_v40 }
 0x445   : > { %v1563_v57 = vmul.f32 1.442695, %v1534_v29 }
 0x446   : > { %2058 = vst.msk [vmem:[#allocation2 + $0x78] sm:$0xff] %vm1777_vm6, %v3673_v19  ;;  %1611 = vperm.xlu1 %2880, %v1513_v25   ;;  %1641 = vperm.xlu0 %2881, %v3651_v54   ;;  %2898 = vpow2.f32 %v1537_v46  ;;  %v1524_v25 = vsub.f32 %v3603_v61, %v3611_v4  ;;  %v1547_v61 = vmul.f32 1.442695, %v1526_v28  ;;  %v1528_v4 = vsub.f32 %v3623_v36, %v3630_v31 }
 0x447   : > { %2900 = vpow2.f32 %v1553_v22  ;;  %v1530_v36 = vsub.f32 %v3632_v15, %v3638_v13  ;;  %v1559_v31 = vmul.f32 1.442695, %v1532_v0 }
 0x448   : > { %2902 = vpow2.f32 %v1541_v55  ;;  %v1543_v8 = vmul.f32 1.442695, %v1524_v25  ;;  %v1551_v7 = vmul.f32 1.442695, %v1528_v4 }
 0x449   : > { %2904 = vpow2.f32 %v1561_v38  ;;  %v1555_v32 = vmul.f32 1.442695, %v1530_v36 }
 0x44a   : > { %1616 = vperm.xlu1 %2880, %v3638_v13   ;;  %1817 = vperm.xlu0 %2881, %v3682_v20   ;;  %v3694_v43 = vpop.eup %2894  ;;  %2906 = vpow2.f32 %v1543_v8 }
 0x44b   : > { %v3700_v48 = vpop.eup %2896  ;;  %2908 = vpow2.f32 %v1547_v61 }
 0x44c   : > { %2910 = vpow2.f32 %v1551_v7 }
 0x44d   : > { %2912 = vpow2.f32 %v1559_v31 }
 0x44e   : > { %1626 = vperm.xlu1 %2880, %v3648_v18   ;;  %1832 = vperm.xlu0 %2881, %v3688_v62   ;;  %2914 = vpow2.f32 %v1555_v32 }
 0x44f   : > { %2916 = vpow2.f32 %v1563_v57 }
 0x450   : > { %v3706_v10 = vpop.eup %2898 }
 0x451   : > { %v3708_v37 = vpop.eup %2900 }
 0x452   : > { %1842 = vperm.xlu0 %2881, %v3694_v43   ;;  %1636 = vperm.xlu1 %2880, %v3664_v30   ;;  %v3714_v12 = vpop.eup %2902 }
 0x453   : > { %v3716_v55 = vpop.eup %2904 }
 0x454   : > { %v3722_v59 = vpop.eup %2906 }
 0x455   : > { %v3727_v18 = vpop.eup %2908 }
 0x456   : > { %1862 = vperm.xlu0 %2881, %v3700_v48   ;;  %1646 = vperm.xlu1 %2880, %v3673_v19   ;;  %v3730_v46 = vpop.eup %2910 }
 0x457   : > { %v3733_v13 = vpop.eup %2912 }
 0x458   : > { %v3736_v15 = vpop.eup %2914 }
 0x459   : > { %v3739_v49 = vpop.eup %2916 }
 0x45a   : > { %1852 = vperm.xlu0 %2881, %v3708_v37   ;;  %1812 = vperm.xlu1 %2880, %v3706_v10  }
 0x45e   : > { %1872 = vperm.xlu0 %2881, %v3716_v55   ;;  %1822 = vperm.xlu1 %2880, %v3714_v12  }
 0x462   : > { %1827 = vperm.xlu1 %2880, %v3722_v59  }
 0x466   : > { %1837 = vperm.xlu1 %2880, %v3727_v18  }
 0x46a   : > { %1847 = vperm.xlu1 %2880, %v3730_v46  }
 0x46e   : > { %1867 = vperm.xlu1 %2880, %v3733_v13  }
 0x472   : > { %1857 = vperm.xlu1 %2880, %v3736_v15  }
 0x476   : > { %1877 = vperm.xlu1 %2880, %v3739_v49  }
 0x4a8   : > { %v1577_v30 = vpop.permute.xlu0 %1576 }
 0x4a9   : > { %v1650_v22 = vsub.f32 %v3549_v45, %v1577_v30  ;;  %v1572_v40 = vpop.permute.xlu1 %1571 }
 0x4aa   : > { %v1649_v25 = vsub.f32 %v3545_v35, %v1572_v40 }
 0x4ab   : > { %v1667_v38 = vmul.f32 1.442695, %v1650_v22 }
 0x4ac   : > { %v1665_v8 = vmul.f32 1.442695, %v1649_v25 }
 0x4ad   : > { %2918 = vpow2.f32 %v1667_v38  ;;  %v1582_v28 = vpop.permute.xlu1 %1581 }
 0x4ae   : > { %2920 = vpow2.f32 %v1665_v8  ;;  %v1651_v61 = vsub.f32 %v3542_v33, %v1582_v28 }
 0x4b0   : > { %v1669_v4 = vmul.f32 1.442695, %v1651_v61 }
 0x4b1   : > { %v1587_v7 = vpop.permute.xlu1 %1586 }
 0x4b2   : > { %2922 = vpow2.f32 %v1669_v4  ;;  %v1652_v0 = vsub.f32 %v3547_v39, %v1587_v7 }
 0x4b4   : > { %v1671_v36 = vmul.f32 1.442695, %v1652_v0 }
 0x4b5   : > { %v1602_v31 = vpop.permute.xlu1 %1601  ;;  %v1622_v32 = vpop.permute.xlu0 %1621 }
 0x4b6   : > { %2924 = vpow2.f32 %v1671_v36  ;;  %v1655_v45 = vsub.f32 %v3553_v50, %v1602_v31  ;;  %v1659_v30 = vsub.f32 %v3565_v5, %v1622_v32 }
 0x4b7   : > { %v2919_v29 = vpop.eup %2918 }
 0x4b8   : > { %v2921_v35 = vpop.eup %2920  ;;  %v1677_v57 = vmul.f32 1.442695, %v1655_v45  ;;  %1731 = vadd.xlane.f32.xlu1 %v2919_v29  ;;  %v1685_v38 = vmul.f32 1.442695, %v1659_v30 }
 0x4b9   : > { %v1592_v22 = vpop.permute.xlu1 %1591  ;;  %v1906_v40 = vpack.c.bf16 %v2919_v29, %v2921_v35 }
 0x4ba   : > { %2926 = vpow2.f32 %v1677_v57  ;;  %v1653_v33 = vsub.f32 %v3557_v58, %v1592_v22 }
 0x4bb   : > { %2793 = vmatprep.mubr.bf16.mxu1 %v1906_v40 }
 0x4bc   : > { %v2923_v25 = vpop.eup %2922  ;;  %v1673_v39 = vmul.f32 1.442695, %v1653_v33 }
 0x4bd   : > { %v1607_v8 = vpop.permute.xlu1 %1606  ;;  %1733 = vadd.xlane.f32.xlu0 %v2923_v25 }
 0x4be   : > { %2928 = vpow2.f32 %v1673_v39  ;;  %v1656_v50 = vsub.f32 %v3559_v63, %v1607_v8 }
 0x4bf   : > { %2930 = vpow2.f32 %v1685_v38 }
 0x4c0   : > { %v2925_v28 = vpop.eup %2924  ;;  %v1679_v61 = vmul.f32 1.442695, %v1656_v50 }
 0x4c1   : > { %v1597_v4 = vpop.permute.xlu1 %1596  ;;  %1729 = vadd.xlane.f32.xlu0 %v2921_v35  ;;  %v1632_v5 = vpop.permute.xlu0 %1631  ;;  %v1907_v7 = vpack.c.bf16 %v2925_v28, %v2923_v25 }
 0x4c2   : > { %2932 = vpow2.f32 %v1679_v61  ;;  %v1654_v0 = vsub.f32 %v3561_v3, %v1597_v4  ;;  %v1661_v35 = vsub.f32 %v3581_v27, %v1632_v5 }
 0x4c3   : > { %2794 = vmatmul.mubr.bf16.vlgmr.msra.gmra.mrb[40].mxu1 %v1907_v7 }
 0x4c4   : > { %v2927_v58 = vpop.eup %2926  ;;  %v1675_v36 = vmul.f32 1.442695, %v1654_v0  ;;  %v1689_v39 = vmul.f32 1.442695, %v1661_v35 }
 0x4c5   : > { %v1612_v31 = vpop.permute.xlu1 %1611  ;;  %1735 = vadd.xlane.f32.xlu0 %v2925_v28  ;;  %1741 = vadd.xlane.f32.xlu1 %v2927_v58  ;;  %v1642_v45 = vpop.permute.xlu0 %1641 }
 0x4c6   : > { %2934 = vpow2.f32 %v1675_v36  ;;  %v1657_v63 = vsub.f32 %v3569_v41, %v1612_v31  ;;  %v1663_v32 = vsub.f32 %v3577_v24, %v1642_v45 }
 0x4c8   : > { %v2929_v29 = vpop.eup %2928  ;;  %v1681_v57 = vmul.f32 1.442695, %v1657_v63  ;;  %v1693_v30 = vmul.f32 1.442695, %v1663_v32  ;;  %v3997_v63 = vsub.f32 %v3666_v26, %v3673_v19 }
 0x4c9   : > { %v1617_v22 = vpop.permute.xlu1 %1616  ;;  %1737 = vadd.xlane.f32.xlu1 %v2929_v29  ;;  %v2931_v40 = vpop.eup %2930 }
 0x4ca   : > { %2936 = vpow2.f32 %v1681_v57  ;;  %v1658_v3 = vsub.f32 %v3573_v14, %v1617_v22  ;;  %v1567_v32 = vmul.f32 1.442695, %v3997_v63  ;;  %v3998_v22 = vsub.f32 %v3642_v9, %v3651_v54  ;;  %v1700_v63 = vld [vmem:[#allocation3 + $0x18] sm:$0xff] }
 0x4cb   : > { %2938 = vpow2.f32 %v1693_v30 }
 0x4cc   : > { %v2933_v33 = vpop.eup %2932  ;;  %v1683_v25 = vmul.f32 1.442695, %v1658_v3  ;;  %v1565_v26 = vmul.f32 1.442695, %v3998_v22 }
 0x4cd   : > { %v1627_v38 = vpop.permute.xlu1 %1626  ;;  %1743 = vadd.xlane.f32.xlu0 %v2933_v33  ;;  %1749 = vadd.xlane.f32.xlu1 %v2931_v40  ;;  %v1909_v41 = vpack.c.bf16 %v2933_v33, %v2927_v58 }
 0x4ce   : > { %2940 = vpow2.f32 %v1683_v25  ;;  %v1660_v24 = vsub.f32 %v3571_v53, %v1627_v38  ;;  %v3776_v25 = vpop.permute.xlu0 %1817 }
 0x4cf   : > { %2942 = vpow2.f32 %v1689_v39 }
 0x4d0   : > { %v2935_v8 = vpop.eup %2934  ;;  %v1687_v27 = vmul.f32 1.442695, %v1660_v24 }
 0x4d1   : > { %1739 = vadd.xlane.f32.xlu0 %v2935_v8  ;;  %v1637_v50 = vpop.permute.xlu1 %1636  ;;  %v1908_v28 = vpack.c.bf16 %v2935_v8, %v2929_v29 }
 0x4d2   : > { %2944 = vpow2.f32 %v1687_v27  ;;  %v1662_v14 = vsub.f32 %v3585_v34, %v1637_v50  ;;  %v3780_v38 = vpop.permute.xlu0 %1832 }
 0x4d3   : > { %2797 = vmatprep.mubr.bf16.mxu1 %v1908_v28  ;;  %v1698_v28 = vld [vmem:[#allocation3 + $0x8] sm:$0xff] }
 0x4d4   : > { %v2937_v61 = vpop.eup %2936  ;;  %v1691_v4 = vmul.f32 1.442695, %v1662_v14  ;;  %2798 = vmatmul.mubr.bf16.gmra.mrb[44].mxu1 %v1909_v41  ;;  %v1714_v14 = vmul.f32 %v3682_v20, %v1698_v28  ;;  %v1707_v28 = vld [vmem:[#allocation3 + $0x50] sm:$0xff] }
 0x4d5   : > { %v1647_v5 = vpop.permute.xlu1 %1646  ;;  %1745 = vadd.xlane.f32.xlu1 %v2937_v61  ;;  %v2939_v0 = vpop.eup %2938 }
 0x4d6   : > { %2946 = vpow2.f32 %v1691_v4  ;;  %v1664_v7 = vsub.f32 %v3583_v23, %v1647_v5  ;;  %v3784_v9 = vpop.permute.xlu0 %1842 }
 0x4d8   : > { %v2941_v53 = vpop.eup %2940  ;;  %v1695_v58 = vmul.f32 1.442695, %v1664_v7  ;;  %v1699_v7 = vld [vmem:[#allocation3 + $0x10] sm:$0xff] }
 0x4d9   : > { %1757 = vadd.xlane.f32.xlu1 %v2939_v0  ;;  %v1910_v36 = vpack.c.bf16 %v2941_v53, %v2937_v61  ;;  %v2943_v31 = vpop.eup %2942  ;;  %v3770_v3 = vpop.permute.xlu1 %1812 }
 0x4da   : > { %2948 = vpow2.f32 %v1695_v58  ;;  %v3788_v24 = vpop.permute.xlu0 %1862  ;;  %v1697_v58 = vld [vmem:[#allocation3] sm:$0xff] }
 0x4db   : > { %2801 = vmatprep.mubr.bf16.mxu1 %v1910_v36  ;;  %2950 = vpow2.f32 %v1567_v32 }
 0x4dc   : > { %v2945_v45 = vpop.eup %2944  ;;  %2952 = vpow2.f32 %v1565_v26 }
 0x4dd   : > { %1751 = vadd.xlane.f32.xlu0 %v2945_v45  ;;  %1753 = vadd.xlane.f32.xlu1 %v2943_v31  ;;  %v1911_v34 = vpack.c.bf16 %v2945_v45, %v2931_v40  ;;  %v3772_v40 = vpop.permute.xlu1 %1822 }
 0x4de   : > { %v3792_v27 = vpop.permute.xlu0 %1852 }
 0x4df   : > { %2802 = vmatmul.mubr.bf16.gmra.mrb[48].mxu1 %v1911_v34  ;;  %v1703_v34 = vld [vmem:[#allocation3 + $0x30] sm:$0xff] }
 0x4e0   : > { %v2947_v29 = vpop.eup %2946  ;;  %v1719_v32 = vmul.f32 %v3694_v43, %v1703_v34  ;;  %v1723_v43 = vmul.f32 %v3700_v48, %v1707_v28 }
 0x4e1   : > { %1747 = vadd.xlane.f32.xlu0 %v2941_v53  ;;  %v1912_v23 = vpack.c.bf16 %v2947_v29, %v2943_v31  ;;  %v3774_v33 = vpop.permute.xlu1 %1827  ;;  %v1713_v31 = vmul.f32 %v3706_v10, %v1697_v58 }
 0x4e2   : > { %v3797_v4 = vpop.permute.xlu0 %1872 }
 0x4e3   : > { %2805 = vmatprep.mubr.bf16.mxu1 %v1912_v23 }
 0x4e4   : > { %v2949_v57 = vpop.eup %2948 }
 0x4e5   : > { %1759 = vadd.xlane.f32.xlu0 %v2949_v57  ;;  %v1913_v35 = vpack.c.bf16 %v2949_v57, %v2939_v0  ;;  %v3761_v30 = vpop.eup %2950  ;;  %v3778_v39 = vpop.permute.xlu1 %1837  ;;  %v1715_v0 = vmul.f32 %v3714_v12, %v1699_v7  ;;  %v1701_v12 = vld [vmem:[#allocation3 + $0x20] sm:$0xff] }
 0x4e6   : > { %v3767_v19 = vpop.eup %2952  ;;  %v1717_v10 = vmul.f32 %v3688_v62, %v1701_v12 }
 0x4e7   : > { %2806 = vmatmul.mubr.bf16.gmra.mrb[52].mxu1 %v1913_v35 }
 0x4e9   : > { %1755 = vadd.xlane.f32.xlu0 %v2947_v29  ;;  %v3782_v41 = vpop.permute.xlu1 %1847  ;;  %v1716_v29 = vmul.f32 %v3722_v59, %v1700_v63 }
 0x4ed   : > { %v3786_v54 = vpop.permute.xlu1 %1867 }
 0x4ee   : > { %1887 = vperm.xlu1 %2880, %v3761_v30  }
 0x4f1   : > { %v3790_v8 = vpop.permute.xlu1 %1857 }
 0x4f5   : > { %v3794_v50 = vpop.permute.xlu1 %1877 }
 0x4ff   : > { %1882 = vperm.xlu0 %2881, %v3767_v19  }
 0x545   : > { %v1732_v61 = vpop.xlane.xlu1 %1731 }
 0x546   : > { %v1762_v5 = vadd.f32 %v1732_v61, %v1714_v14  ;;  %v1704_v14 = vld [vmem:[#allocation3 + $0x38] sm:$0xff] }
 0x547   : > { %v1720_v59 = vmul.f32 %v3730_v46, %v1704_v14  ;;  %v1711_v46 = vld [vmem:[#allocation3 + $0x70] sm:$0xff]  ;;  %v1712_v14 = vld [vmem:[#allocation3 + $0x78] sm:$0xff] }
 0x548   : > { %1779 = vst.msk [vmem:[#allocation3 + $0x8] sm:$0xff] %vm1777_vm6, %v1762_v5 }
 0x54a   : > { %v1734_v53 = vpop.xlane.xlu0 %1733 }
 0x54b   : > { %v1763_v36 = vadd.f32 %v1734_v53, %v1715_v0  ;;  %v1702_v0 = vld [vmem:[#allocation3 + $0x28] sm:$0xff] }
 0x54c   : > { %v1718_v62 = vmul.f32 %v3727_v18, %v1702_v0 }
 0x54d   : > { %1780 = vst.msk [vmem:[#allocation3 + $0x10] sm:$0xff] %vm1777_vm6, %v1763_v36 }
 0x54e   : > { %v1730_v45 = vpop.xlane.xlu0 %1729 }
 0x54f   : > { %v1761_v20 = vadd.f32 %v1730_v45, %v1713_v31  ;;  %v1705_v31 = vld [vmem:[#allocation3 + $0x40] sm:$0xff] }
 0x550   : > { %v1721_v48 = vmul.f32 %v3708_v37, %v1705_v31  ;;  %v1706_v37 = vld [vmem:[#allocation3 + $0x48] sm:$0xff] }
 0x551   : > { %1778 = vst.msk [vmem:[#allocation3] sm:$0xff] %vm1777_vm6, %v1761_v20  ;;  %v1727_v20 = vmul.f32 %v3767_v19, %v1711_v46  ;;  %v1722_v19 = vmul.f32 %v3736_v15, %v1706_v37  ;;  %v1794_v15 = vld [vmem:[#allocation4] sm:$0xff] }
 0x552   : > { %v1742_v23 = vpop.xlane.xlu1 %1741  ;;  %v1736_v57 = vpop.xlane.xlu0 %1735  ;;  %v1890_v31 = vmul.f32 %v3770_v3, %v1794_v15  ;;  %v1800_v3 = vld [vmem:[#allocation4 + $0x30] sm:$0xff] }
 0x553   : > { %v1767_v35 = vadd.f32 %v1742_v23, %v1719_v32  ;;  %v1764_v22 = vadd.f32 %v1736_v57, %v1716_v29  ;;  %v1709_v29 = vld [vmem:[#allocation3 + $0x60] sm:$0xff]  ;;  %v1708_v23 = vld [vmem:[#allocation3 + $0x58] sm:$0xff] }
 0x554   : > { %v1725_v18 = vmul.f32 %v3716_v55, %v1709_v29  ;;  %v1724_v12 = vmul.f32 %v3733_v13, %v1708_v23  ;;  %v1728_v55 = vmul.f32 %v3761_v30, %v1712_v14  ;;  %v1710_v13 = vld [vmem:[#allocation3 + $0x68] sm:$0xff]  ;;  %v1896_v23 = vmul.f32 %v3784_v9, %v1800_v3  ;;  %v1802_v9 = vld [vmem:[#allocation4 + $0x40] sm:$0xff] }
 0x555   : > { %1784 = vst.msk [vmem:[#allocation3 + $0x30] sm:$0xff] %vm1777_vm6, %v1767_v35  ;;  %1781 = vst.msk [vmem:[#allocation3 + $0x18] sm:$0xff] %vm1777_vm6, %v1764_v22 }
 0x556   : > { %v1738_v26 = vpop.xlane.xlu1 %1737 }
 0x557   : > { %v1765_v61 = vadd.f32 %v1738_v26, %v1717_v10 }
 0x559   : > { %1782 = vst.msk [vmem:[#allocation3 + $0x20] sm:$0xff] %vm1777_vm6, %v1765_v61 }
 0x55a   : > { %v1750_v5 = vpop.xlane.xlu1 %1749  ;;  %v1744_v7 = vpop.xlane.xlu0 %1743 }
 0x55b   : > { %v1771_v53 = vadd.f32 %v1750_v5, %v1723_v43  ;;  %v1768_v58 = vadd.f32 %v1744_v7, %v1720_v59  ;;  %v1726_v5 = vmul.f32 %v3739_v49, %v1710_v13 }
 0x55d   : > { %1788 = vst.msk [vmem:[#allocation3 + $0x50] sm:$0xff] %vm1777_vm6, %v1771_v53  ;;  %1785 = vst.msk [vmem:[#allocation3 + $0x38] sm:$0xff] %vm1777_vm6, %v1768_v58  ;;  %v1796_v53 = vld [vmem:[#allocation4 + $0x10] sm:$0xff]  ;;  %v1797_v58 = vld [vmem:[#allocation4 + $0x18] sm:$0xff] }
 0x55e   : > { %v1740_v36 = vpop.xlane.xlu0 %1739 }
 0x55f   : > { %v1766_v45 = vadd.f32 %v1740_v36, %v1718_v62  ;;  %v1795_v62 = vld [vmem:[#allocation4 + $0x8] sm:$0xff]  ;;  %v1892_v36 = vmul.f32 %v3772_v40, %v1796_v53  ;;  %v1798_v40 = vld [vmem:[#allocation4 + $0x20] sm:$0xff] }
 0x560   : > { %v1891_v46 = vmul.f32 %v3776_v25, %v1795_v62  ;;  %v1894_v25 = vmul.f32 %v3780_v38, %v1798_v40  ;;  %v1804_v38 = vld [vmem:[#allocation4 + $0x50] sm:$0xff] }
 0x561   : > { %1783 = vst.msk [vmem:[#allocation3 + $0x28] sm:$0xff] %vm1777_vm6, %v1766_v45  ;;  %v1893_v45 = vmul.f32 %v3774_v33, %v1797_v58  ;;  %v1801_v33 = vld [vmem:[#allocation4 + $0x38] sm:$0xff]  ;;  %v1808_v62 = vld [vmem:[#allocation4 + $0x70] sm:$0xff] }
 0x562   : > { %v1746_v34 = vpop.xlane.xlu1 %1745 }
 0x563   : > { %v1769_v63 = vadd.f32 %v1746_v34, %v1721_v48 }
 0x565   : > { %1786 = vst.msk [vmem:[#allocation3 + $0x40] sm:$0xff] %vm1777_vm6, %v1769_v63 }
 0x566   : > { %v1758_v32 = vpop.xlane.xlu1 %1757 }
 0x567   : > { %v1775_v57 = vadd.f32 %v1758_v32, %v1727_v20 }
 0x569   : > { %1792 = vst.msk [vmem:[#allocation3 + $0x70] sm:$0xff] %vm1777_vm6, %v1775_v57  ;;  %v1799_v57 = vld [vmem:[#allocation4 + $0x28] sm:$0xff] }
 0x56a   : > { %v1754_v35 = vpop.xlane.xlu1 %1753  ;;  %v1752_v22 = vpop.xlane.xlu0 %1751  ;;  %v1895_v37 = vmul.f32 %v3778_v39, %v1799_v57  ;;  %v1898_v39 = vmul.f32 %v3792_v27, %v1802_v9  ;;  %v1809_v27 = vld [vmem:[#allocation4 + $0x78] sm:$0xff]  ;;  %v2080_v57 = vld [vmem:[#allocation3 + $0x8] sm:$0xff] (!%p2520_p10)  ;;  %v2089_v9 = vld [vmem:[#allocation3 + $0x50] sm:$0xff] (!%p2520_p10) }
 0x56b   : > { %v1773_v10 = vadd.f32 %v1754_v35, %v1725_v18  ;;  %v1772_v26 = vadd.f32 %v1752_v22, %v1724_v12  ;;  %v1897_v12 = vmul.f32 %v3782_v41, %v1801_v33  ;;  %v1805_v41 = vld [vmem:[#allocation4 + $0x58] sm:$0xff]  ;;  %v2079_v33 = vld [vmem:[#allocation3] sm:$0xff] (!%p2520_p10) }
 0x56c   : > { %v1901_v13 = vmul.f32 %v3786_v54, %v1805_v41 }
 0x56d   : > { %1790 = vst.msk [vmem:[#allocation3 + $0x60] sm:$0xff] %vm1777_vm6, %v1773_v10  ;;  %1789 = vst.msk [vmem:[#allocation3 + $0x58] sm:$0xff] %vm1777_vm6, %v1772_v26 }
 0x56e   : > { %v1748_v28 = vpop.xlane.xlu0 %1747  ;;  %v1888_v54 = vpop.permute.xlu1 %1887 }
 0x56f   : > { %v1770_v61 = vadd.f32 %v1748_v28, %v1722_v19 }
 0x571   : > { %1787 = vst.msk [vmem:[#allocation3 + $0x48] sm:$0xff] %vm1777_vm6, %v1770_v61  ;;  %v1900_v61 = vmul.f32 %v3788_v24, %v1804_v38 }
 0x572   : > { %v1760_v43 = vpop.xlane.xlu0 %1759 }
 0x573   : > { %v1776_v59 = vadd.f32 %v1760_v43, %v1728_v55  ;;  %v1803_v55 = vld [vmem:[#allocation4 + $0x48] sm:$0xff] }
 0x575   : > { %1793 = vst.msk [vmem:[#allocation3 + $0x78] sm:$0xff] %vm1777_vm6, %v1776_v59 }
 0x576   : > { %v1756_v7 = vpop.xlane.xlu0 %1755 }
 0x577   : > { %v1774_v0 = vadd.f32 %v1756_v7, %v1726_v5  ;;  %v1899_v7 = vmul.f32 %v3790_v8, %v1803_v55 }
 0x579   : > { %1791 = vst.msk [vmem:[#allocation3 + $0x68] sm:$0xff] %vm1777_vm6, %v1774_v0 }
 0x596   : > { %v2795_v30 = vpop.f32.mrb[40].mxu1 }
 0x597   : > { %v2013_v48 = vadd.f32 %v2795_v30, %v1892_v36  ;;  %v1948_v34 = vpop.f32.mrb[41].mxu1  ;;  %v1883_v36 = vpop.permute.xlu0 %1882  ;;  %v1807_v30 = vld [vmem:[#allocation4 + $0x68] sm:$0xff] }
 0x598   : > { %v2011_v49 = vadd.f32 %v1948_v34, %v1890_v31  ;;  %v2796_v63 = vpop.f32.mrb[42].mxu1  ;;  %v1806_v31 = vld [vmem:[#allocation4 + $0x60] sm:$0xff]  ;;  %v1904_v8 = vmul.f32 %v1883_v36, %v1808_v62  ;;  %v1905_v34 = vmul.f32 %v1888_v54, %v1809_v27  ;;  %v3861_v27 = vstv (!%p2520_p10), %s2207_s11 }
 0x599   : > { %2029 = vst.msk [vmem:[#allocation4 + $0x10] sm:$0xff] %vm756_vm4, %v2013_v48  ;;  %v2014_v20 = vadd.f32 %v2796_v63, %v1893_v45  ;;  %v1951_v32 = vpop.f32.mrb[43].mxu1  ;;  %v1902_v45 = vmul.f32 %v3797_v4, %v1806_v31  ;;  %v1903_v63 = vmul.f32 %v3794_v50, %v1807_v30  ;;  %v2081_v4 = vld [vmem:[#allocation3 + $0x10] sm:$0xff] (!%p2520_p10)  ;;  %v3048_v50 = vmov (!%p2520_p10), 0  }
 0x59a   : > { %2027 = vst.msk [vmem:[#allocation4] sm:$0xff] %vm756_vm4, %v2011_v49  ;;  %v2012_v29 = vadd.f32 %v1951_v32, %v1891_v46  ;;  %2955 = vset.pattern.permute.xlu1 (!%p2520_p10), %v3048_v50  ;;  %2954 = vset.pattern.permute.xlu0 (!%p2520_p10), %v3048_v50  ;;  %2956 = vrcp.f32 (!%p2520_p10), %v2081_v4 }
 0x59b   : > { %2030 = vst.msk [vmem:[#allocation4 + $0x18] sm:$0xff] %vm756_vm4, %v2014_v20  ;;  %2958 = vrcp.f32 (!%p2520_p10), %v2079_v33 }
 0x59c   : > { %2028 = vst.msk [vmem:[#allocation4 + $0x8] sm:$0xff] %vm756_vm4, %v2012_v29 }
 0x5a1   : > { %v2063_v31 = vld [vmem:[#allocation4] sm:$0xff] (!%p2520_p10) }
 0x5a7   : > { %v2799_v18 = vpop.f32.mrb[44].mxu1 }
 0x5a8   : > { %v2017_v35 = vadd.f32 %v2799_v18, %v1896_v23  ;;  %v1964_v22 = vpop.f32.mrb[45].mxu1  ;;  %v2082_v23 = vld [vmem:[#allocation3 + $0x18] sm:$0xff] (!%p2520_p10)  ;;  %v2083_v18 = vld [vmem:[#allocation3 + $0x20] sm:$0xff] (!%p2520_p10) }
 0x5a9   : > { %v2015_v10 = vadd.f32 %v1964_v22, %v1894_v25  ;;  %v2800_v26 = vpop.f32.mrb[46].mxu1  ;;  %2960 = vrcp.f32 (!%p2520_p10), %v2082_v23  ;;  %v2084_v25 = vld [vmem:[#allocation3 + $0x28] sm:$0xff] (!%p2520_p10)  ;;  %v2957_v22 = vpop.eup (!%p2520_p10), %2956 }
 0x5aa   : > { %2033 = vst.msk [vmem:[#allocation4 + $0x30] sm:$0xff] %vm756_vm4, %v2017_v35  ;;  %v2018_v19 = vadd.f32 %v2800_v26, %v1897_v12  ;;  %v1967_v28 = vpop.f32.mrb[47].mxu1  ;;  %2962 = vrcp.f32 (!%p2520_p10), %v2080_v57  ;;  %v2086_v12 = vld [vmem:[#allocation3 + $0x38] sm:$0xff] (!%p2520_p10)  ;;  %v2085_v35 = vld [vmem:[#allocation3 + $0x30] sm:$0xff] (!%p2520_p10)  ;;  %2123 = vperm.xlu1 (!%p2520_p10), %2955, %v2957_v22  }
 0x5ab   : > { %2031 = vst.msk [vmem:[#allocation4 + $0x20] sm:$0xff] %vm756_vm4, %v2015_v10  ;;  %v2016_v14 = vadd.f32 %v1967_v28, %v1895_v37  ;;  %2964 = vrcp.f32 (!%p2520_p10), %v2084_v25  ;;  %v2959_v37 = vpop.eup (!%p2520_p10), %2958  ;;  %v2088_v10 = vld [vmem:[#allocation3 + $0x48] sm:$0xff] (!%p2520_p10) }
 0x5ac   : > { %2034 = vst.msk [vmem:[#allocation4 + $0x38] sm:$0xff] %vm756_vm4, %v2018_v19  ;;  %2966 = vrcp.f32 (!%p2520_p10), %v2083_v18  ;;  %2113 = vperm.xlu0 (!%p2520_p10), %2954, %v2959_v37   ;;  %v2087_v19 = vld [vmem:[#allocation3 + $0x40] sm:$0xff] (!%p2520_p10) }
 0x5ad   : > { %2032 = vst.msk [vmem:[#allocation4 + $0x28] sm:$0xff] %vm756_vm4, %v2016_v14  ;;  %2968 = vrcp.f32 (!%p2520_p10), %v2086_v12  ;;  %v2090_v14 = vld [vmem:[#allocation3 + $0x58] sm:$0xff] (!%p2520_p10) }
 0x5ae   : > { %2970 = vrcp.f32 (!%p2520_p10), %v2085_v35 }
 0x5af   : > { %2972 = vrcp.f32 (!%p2520_p10), %v2088_v10  ;;  %v4002_v10 = vmax.f32 (!%p2520_p10), %v3305_v42, 0.0 }
 0x5b0   : > { %2974 = vrcp.f32 (!%p2520_p10), %v2087_v19 }
 0x5b1   : > { %2976 = vrcp.f32 (!%p2520_p10), %v2090_v14 }
 0x5b2   : > { %v2803_v43 = vpop.f32.mrb[48].mxu1  ;;  %2978 = vrcp.f32 (!%p2520_p10), %v2089_v9  ;;  %v2067_v25 = vld [vmem:[#allocation4 + $0x20] sm:$0xff] (!%p2520_p10)  ;;  %v2069_v9 = vld [vmem:[#allocation4 + $0x30] sm:$0xff] (!%p2520_p10) }
 0x5b3   : > { %v2021_v59 = vadd.f32 %v2803_v43, %v1900_v61  ;;  %v1980_v5 = vpop.f32.mrb[49].mxu1  ;;  %v2961_v26 = vpop.eup (!%p2520_p10), %2960  ;;  %v2092_v61 = vld [vmem:[#allocation3 + $0x68] sm:$0xff] (!%p2520_p10) }
 0x5b4   : > { %v2019_v0 = vadd.f32 %v1980_v5, %v1898_v39  ;;  %v2804_v53 = vpop.f32.mrb[50].mxu1  ;;  %v2963_v28 = vpop.eup (!%p2520_p10), %2962  ;;  %2128 = vperm.xlu1 (!%p2520_p10), %2955, %v2961_v26   ;;  %v2091_v39 = vld [vmem:[#allocation3 + $0x60] sm:$0xff] (!%p2520_p10)  ;;  %2980 = vrcp.f32 (!%p2520_p10), %v2092_v61  ;;  %v2093_v5 = vld [vmem:[#allocation3 + $0x70] sm:$0xff] (!%p2520_p10)  ;;  %v2068_v23 = vld [vmem:[#allocation4 + $0x28] sm:$0xff] (!%p2520_p10) }
 0x5b5   : > { %2037 = vst.msk [vmem:[#allocation4 + $0x50] sm:$0xff] %vm756_vm4, %v2021_v59  ;;  %v2022_v15 = vadd.f32 %v2804_v53, %v1901_v13  ;;  %v1983_v58 = vpop.f32.mrb[51].mxu1  ;;  %v2965_v38 = vpop.eup (!%p2520_p10), %2964  ;;  %2118 = vperm.xlu0 (!%p2520_p10), %2954, %v2963_v28   ;;  %2982 = vrcp.f32 (!%p2520_p10), %v2091_v39  ;;  %v2094_v13 = vld [vmem:[#allocation3 + $0x78] sm:$0xff] (!%p2520_p10) }
 0x5b6   : > { %2035 = vst.msk [vmem:[#allocation4 + $0x40] sm:$0xff] %vm756_vm4, %v2019_v0  ;;  %v2020_v24 = vadd.f32 %v1983_v58, %v1899_v7  ;;  %v2967_v41 = vpop.eup (!%p2520_p10), %2966  ;;  %2984 = vrcp.f32 (!%p2520_p10), %v2094_v13  ;;  %v2070_v28 = vld [vmem:[#allocation4 + $0x38] sm:$0xff] (!%p2520_p10)  ;;  %v4004_v13 = vmax.f32 (!%p2520_p10), %v3352_v6, 0.0 }
 0x5b7   : > { %2038 = vst.msk [vmem:[#allocation4 + $0x58] sm:$0xff] %vm756_vm4, %v2022_v15  ;;  %v2969_v55 = vpop.eup (!%p2520_p10), %2968  ;;  %2986 = vrcp.f32 (!%p2520_p10), %v2093_v5 }
 0x5b8   : > { %2036 = vst.msk [vmem:[#allocation4 + $0x48] sm:$0xff] %vm756_vm4, %v2020_v24  ;;  %2138 = vperm.xlu1 (!%p2520_p10), %2955, %v2965_v38   ;;  %v2971_v43 = vpop.eup (!%p2520_p10), %2970  ;;  %v2065_v24 = vld [vmem:[#allocation4 + $0x10] sm:$0xff] (!%p2520_p10) }
 0x5b9   : > { %2133 = vperm.xlu0 (!%p2520_p10), %2954, %v2967_v41   ;;  %v2973_v59 = vpop.eup (!%p2520_p10), %2972 }
 0x5ba   : > { %v2807_v48 = vpop.f32.mrb[52].mxu1  ;;  %2062 = sbr.rel (%p2520_p10) target bundleno = 1622 (0x656), region = 64  ;;  %v2975_v7 = vpop.eup (!%p2520_p10), %2974 }
 0x5bb   : > { %v2025_v46 = vadd.f32 %v2807_v48, %v1904_v8  ;;  %v1996_v49 = vpop.f32.mrb[53].mxu1  ;;  %v2977_v0 = vpop.eup (!%p2520_p10), %2976  ;;  %v2066_v48 = vld [vmem:[#allocation4 + $0x18] sm:$0xff] (!%p2520_p10) }
 0x5bc   : > { %v2023_v20 = vadd.f32 %v1996_v49, %v1902_v45  ;;  %v2808_v32 = vpop.f32.mrb[54].mxu1  ;;  %2148 = vperm.xlu1 (!%p2520_p10), %2955, %v2969_v55   ;;  %v2979_v53 = vpop.eup (!%p2520_p10), %2978  ;;  %v4003_v55 = vmax.f32 (!%p2520_p10), %v3344_v2, 0.0 }
 0x5bd   : > { %2041 = vst.msk [vmem:[#allocation4 + $0x70] sm:$0xff] %vm756_vm4, %v2025_v46  ;;  %v2026_v29 = vadd.f32 %v2808_v32, %v1905_v34  ;;  %v1999_v3 = vpop.f32.mrb[55].mxu1  ;;  %2143 = vperm.xlu0 (!%p2520_p10), %2954, %v2971_v43   ;;  %v2064_v46 = vld [vmem:[#allocation4 + $0x8] sm:$0xff] (!%p2520_p10) }
 0x5be   : > { %2039 = vst.msk [vmem:[#allocation4 + $0x60] sm:$0xff] %vm756_vm4, %v2023_v20  ;;  %v2024_v40 = vadd.f32 %v1999_v3, %v1903_v63  ;;  %v2981_v15 = vpop.eup (!%p2520_p10), %2980  ;;  %v3999_v20 = vmax.f32 (!%p2520_p10), %v3327_v56, 0.0  ;;  %v4001_v56 = vmax.f32 (!%p2520_p10), %v3319_v52, 0.0 }
 0x5bf   : > { %2042 = vst.msk [vmem:[#allocation4 + $0x78] sm:$0xff] %vm756_vm4, %v2026_v29  ;;  %v2983_v58 = vpop.eup (!%p2520_p10), %2982 }
 0x5c0   : > { %2040 = vst.msk [vmem:[#allocation4 + $0x68] sm:$0xff] %vm756_vm4, %v2024_v40  ;;  %2158 = vperm.xlu1 (!%p2520_p10), %2955, %v2973_v59   ;;  %v2985_v62 = vpop.eup (!%p2520_p10), %2984  ;;  %v4000_v40 = vmax.f32 (!%p2520_p10), %v3308_v44, 0.0 }
 0x5c1   : > { %2153 = vperm.xlu0 %2954, %v2975_v7   ;;  %v2987_v36 = vpop.eup %2986  ;;  %v2072_v7 = vld [vmem:[#allocation4 + $0x48] sm:$0xff] }
 0x5c4   : > { %2168 = vperm.xlu1 %2955, %v2977_v0  }
 0x5c5   : > { %2163 = vperm.xlu0 %2954, %v2979_v53  }
 0x5c8   : > { %2178 = vperm.xlu1 %2955, %v2981_v15   ;;  %v2071_v15 = vld [vmem:[#allocation4 + $0x40] sm:$0xff] }
 0x5c9   : > { %2173 = vperm.xlu0 %2954, %v2983_v58  }
 0x5cc   : > { %2188 = vperm.xlu1 %2955, %v2985_v62  }
 0x5cd   : > { %2183 = vperm.xlu0 %2954, %v2987_v36   ;;  %v4005_v36 = vmax.f32 %v3372_v17, 0.0 }
 0x629   : > { %v2124_v54 = vpop.permute.xlu1 %2123 }
 0x62a   : > { %v2193_v30 = vmul.f32 %v2124_v54, %v2065_v24  ;;  %v4006_v54 = vmax.f32 %v3380_v21, 0.0 }
 0x62b   : > { %v2114_v8 = vpop.permute.xlu0 %2113 }
 0x62c   : > { %v2191_v45 = vmul.f32 %v2114_v8, %v2063_v31  ;;  %v2211_v34 = vmul.f32 %v3861_v27, %v2193_v30 }
 0x62e   : > { %v2209_v49 = vmul.f32 %v3861_v27, %v2191_v45  ;;  %v2227_v32 = vadd.f32 %v2211_v34, %v3999_v20  ;;  %v2074_v45 = vld [vmem:[#allocation4 + $0x58] sm:$0xff]  ;;  %v4007_v20 = vmax.f32 %v3312_v47, 0.0 }
 0x630   : > { %v2225_v4 = vadd.f32 %v2209_v49, %v4000_v40  ;;  %v2541_v50 = vpack.c.bf16 %v2227_v32, %v2227_v32 }
 0x632   : > { %v2539_v18 = vpack.c.bf16 %v2225_v4, %v2225_v4  ;;  %2308 = vst.msk [vmem:[%s3155_s10 + $0x8] sm:$0xf] %vm2305_vm7, %v2541_v50 }
 0x633   : > { %v2129_v63 = vpop.permute.xlu1 %2128 }
 0x634   : > { %v2194_v29 = vmul.f32 %v2129_v63, %v2066_v48  ;;  %v2119_v3 = vpop.permute.xlu0 %2118  ;;  %2306 = vst.msk [vmem:[%s3155_s10] sm:$0xf] %vm2305_vm7, %v2539_v18 }
 0x635   : > { %v2192_v33 = vmul.f32 %v2119_v3, %v2064_v46  ;;  %v2073_v46 = vld [vmem:[#allocation4 + $0x50] sm:$0xff]  ;;  %v4008_v3 = vmax.f32 %v3316_v51, 0.0 }
 0x636   : > { %v2212_v57 = vmul.f32 %v3861_v27, %v2194_v29 }
 0x637   : > { %v2210_v12 = vmul.f32 %v3861_v27, %v2192_v33  ;;  %v2139_v35 = vpop.permute.xlu1 %2138  ;;  %v2076_v33 = vld [vmem:[#allocation4 + $0x68] sm:$0xff] }
 0x638   : > { %v2228_v22 = vadd.f32 %v2212_v57, %v4001_v56  ;;  %v2196_v37 = vmul.f32 %v2139_v35, %v2068_v23  ;;  %v2134_v44 = vpop.permute.xlu0 %2133  ;;  %v2075_v57 = vld [vmem:[#allocation4 + $0x60] sm:$0xff] }
 0x639   : > { %v2226_v26 = vadd.f32 %v2210_v12, %v4002_v10  ;;  %v2195_v19 = vmul.f32 %v2134_v44, %v2067_v25  ;;  %v4009_v12 = vmax.f32 %v3332_v60, 0.0  ;;  %v2078_v10 = vld [vmem:[#allocation4 + $0x78] sm:$0xff] }
 0x63a   : > { %v2542_v14 = vpack.c.bf16 %v2228_v22, %v2228_v22  ;;  %v2214_v38 = vmul.f32 %v3861_v27, %v2196_v37  ;;  %v4010_v22 = vmax.f32 %v3341_v1, 0.0 }
 0x63b   : > { %v2540_v41 = vpack.c.bf16 %v2226_v26, %v2226_v26  ;;  %v2213_v61 = vmul.f32 %v3861_v27, %v2195_v19  ;;  %v2149_v52 = vpop.permute.xlu1 %2148 }
 0x63c   : > { %2309 = vst.msk [vmem:[%s3155_s10 + $0xc] sm:$0xf] %vm2305_vm7, %v2542_v14  ;;  %v2230_v39 = vadd.f32 %v2214_v38, %v4003_v55  ;;  %v2198_v43 = vmul.f32 %v2149_v52, %v2070_v28  ;;  %v2144_v42 = vpop.permute.xlu0 %2143  ;;  %v2077_v28 = vld [vmem:[#allocation4 + $0x70] sm:$0xff]  ;;  %v4012_v52 = vmax.f32 %v3369_v16, 0.0 }
 0x63d   : > { %2307 = vst.msk [vmem:[%s3155_s10 + $0x4] sm:$0xf] %vm2305_vm7, %v2540_v41  ;;  %v2229_v59 = vadd.f32 %v2213_v61, %v4004_v13  ;;  %v2197_v5 = vmul.f32 %v2144_v42, %v2069_v9  ;;  %v4011_v9 = vmax.f32 %v3360_v11, 0.0  ;;  %v4013_v11 = vld [vmem:[#allocation9_spill] sm:$0xff] }
 0x63e   : > { %v2544_v0 = vpack.c.bf16 %v2230_v39, %v2230_v39  ;;  %v2216_v53 = vmul.f32 %v3861_v27, %v2198_v43 }
 0x63f   : > { %v2543_v58 = vpack.c.bf16 %v2229_v59, %v2229_v59  ;;  %v2215_v62 = vmul.f32 %v3861_v27, %v2197_v5  ;;  %v2159_v2 = vpop.permute.xlu1 %2158  ;;  %v4014_v5 = vmax.f32 %v4013_v11, 0.0 }
 0x640   : > { %2311 = vst.msk [vmem:[%s3155_s10 + $0x14] sm:$0xf] %vm2305_vm7, %v2544_v0  ;;  %v2232_v24 = vadd.f32 %v2216_v53, %v4005_v36  ;;  %v2200_v31 = vmul.f32 %v2159_v2, %v2072_v7  ;;  %v2154_v6 = vpop.permute.xlu0 %2153  ;;  %v4015_v0 = vld [vmem:[#allocation10_spill] sm:$0xff] }
 0x641   : > { %2310 = vst.msk [vmem:[%s3155_s10 + $0x10] sm:$0xf] %vm2305_vm7, %v2543_v58  ;;  %v2231_v30 = vadd.f32 %v2215_v62, %v4006_v54  ;;  %v2199_v8 = vmul.f32 %v2154_v6, %v2071_v15  ;;  %v4016_v53 = vmax.f32 %v4015_v0, 0.0 }
 0x642   : > { %v2546_v48 = vpack.c.bf16 %v2232_v24, %v2232_v24  ;;  %v2218_v34 = vmul.f32 %v3861_v27, %v2200_v31 }
 0x643   : > { %v2545_v49 = vpack.c.bf16 %v2231_v30, %v2231_v30  ;;  %v2217_v63 = vmul.f32 %v3861_v27, %v2199_v8  ;;  %v2169_v17 = vpop.permute.xlu1 %2168 }
 0x644   : > { %2313 = vst.msk [vmem:[%s3155_s10 + $0x1c] sm:$0xf] %vm2305_vm7, %v2546_v48  ;;  %v2234_v32 = vadd.f32 %v2218_v34, %v4007_v20  ;;  %v2202_v29 = vmul.f32 %v2169_v17, %v2074_v45  ;;  %v2164_v21 = vpop.permute.xlu0 %2163 }
 0x645   : > { %2312 = vst.msk [vmem:[%s3155_s10 + $0x18] sm:$0xf] %vm2305_vm7, %v2545_v49  ;;  %v2233_v40 = vadd.f32 %v2217_v63, %v4008_v3  ;;  %v2201_v4 = vmul.f32 %v2164_v21, %v2073_v46 }
 0x646   : > { %v2548_v23 = vpack.c.bf16 %v2234_v32, %v2234_v32  ;;  %v2220_v50 = vmul.f32 %v3861_v27, %v2202_v29 }
 0x647   : > { %v2547_v25 = vpack.c.bf16 %v2233_v40, %v2233_v40  ;;  %v2219_v18 = vmul.f32 %v3861_v27, %v2201_v4  ;;  %v2179_v47 = vpop.permute.xlu1 %2178 }
 0x648   : > { %2315 = vst.msk [vmem:[%s3155_s10 + $0x24] sm:$0xf] %vm2305_vm7, %v2548_v23  ;;  %v2236_v35 = vadd.f32 %v2220_v50, %v4009_v12  ;;  %v2204_v56 = vmul.f32 %v2179_v47, %v2076_v33  ;;  %v2174_v51 = vpop.permute.xlu0 %2173 }
 0x649   : > { %2314 = vst.msk [vmem:[%s3155_s10 + $0x20] sm:$0xf] %vm2305_vm7, %v2547_v25  ;;  %v2235_v37 = vadd.f32 %v2219_v18, %v4010_v22  ;;  %v2203_v44 = vmul.f32 %v2174_v51, %v2075_v57 }
 0x64a   : > { %v2550_v26 = vpack.c.bf16 %v2236_v35, %v2236_v35  ;;  %v2222_v19 = vmul.f32 %v3861_v27, %v2204_v56 }
 0x64b   : > { %v2549_v14 = vpack.c.bf16 %v2235_v37, %v2235_v37  ;;  %v2221_v60 = vmul.f32 %v3861_v27, %v2203_v44  ;;  %v2189_v38 = vpop.permute.xlu1 %2188 }
 0x64c   : > { %2317 = vst.msk [vmem:[%s3155_s10 + $0x2c] sm:$0xf] %vm2305_vm7, %v2550_v26  ;;  %v2238_v41 = vadd.f32 %v2222_v19, %v4011_v9  ;;  %v2206_v1 = vmul.f32 %v2189_v38, %v2078_v10  ;;  %v2184_v61 = vpop.permute.xlu0 %2183 }
 0x64d   : > { %2316 = vst.msk [vmem:[%s3155_s10 + $0x28] sm:$0xf] %vm2305_vm7, %v2549_v14  ;;  %v2237_v55 = vadd.f32 %v2221_v60, %v4012_v52  ;;  %v2205_v39 = vmul.f32 %v2184_v61, %v2077_v28 }
 0x64e   : > { %v2552_v43 = vpack.c.bf16 %v2238_v41, %v2238_v41  ;;  %v2224_v42 = vmul.f32 %v3861_v27, %v2206_v1 }
 0x64f   : > { %v2551_v13 = vpack.c.bf16 %v2237_v55, %v2237_v55  ;;  %v2223_v59 = vmul.f32 %v3861_v27, %v2205_v39 }
 0x650   : > { %2319 = vst.msk [vmem:[%s3155_s10 + $0x34] sm:$0xf] %vm2305_vm7, %v2552_v43  ;;  %v2240_v7 = vadd.f32 %v2224_v42, %v4014_v5 }
 0x651   : > { %2318 = vst.msk [vmem:[%s3155_s10 + $0x30] sm:$0xf] %vm2305_vm7, %v2551_v13  ;;  %v2239_v15 = vadd.f32 %v2223_v59, %v4016_v53 }
 0x652   : > { %v2554_v58 = vpack.c.bf16 %v2240_v7, %v2240_v7 }
 0x653   : > { %v2553_v16 = vpack.c.bf16 %v2239_v15, %v2239_v15 }
 0x654   : > { %2321 = vst.msk [vmem:[%s3155_s10 + $0x3c] sm:$0xf] %vm2305_vm7, %v2554_v58 }
 0x655   : > { %2320 = vst.msk [vmem:[%s3155_s10 + $0x38] sm:$0xf] %vm2305_vm7, %v2553_v16 }
 0x656 PF: > { %s20_s17 = sadd.s32 1, %s3042_s17   ;;  %s4017_s26 = sld [smem:[#allocation6_spill]] }
 0x657   : > { %p17_p11 = scmp.ge.s32.totalorder %s20_s17, 10   ;;  %s4018_s27 = sld [smem:[#allocation7_spill]] }
 0x658   : > { %s4019_s28 = sld [smem:[#allocation8_spill]]  ;;  %s4020_s11 = smov %s3030_s14 }
 0x659   : > { %s4021_s12 = smov %s3034_s15  ;;  %s4022_s13 = smov %s3038_s16 }
 0x65a   :  { %19 = sbr.rel (!%p17_p11) target bundleno = 4 (0x4), region = 97 }
 0x65c   : > { %s4023_s14 = smov %s4017_s26 }
 0x65d   : > { %s4024_s15 = smov %s4018_s27 }
 0x65e   : > { %s4025_s16 = smov %s4019_s28 }

// kernel: gcm_forward.3
= control target key start
LH: loop header
LB: loop body
LE: loop exit
PB: predicated region body
PF: predicated region fallthrough
CT: control target
= control target key end

     0   :  { %s2499_s21 = smov 0   ;;  %s3164_s0 = inlined_call_operand.vmem [shape: bf16[512,64], index: 0, kind: input, shape index: {}]   ;;  %s3165_s1 = inlined_call_operand.vmem [shape: bf16[512,64], index: 1, kind: input, shape index: {}]   ;;  %s3166_s2 = inlined_call_operand.vmem [shape: bf16[512,64], index: 2, kind: input, shape index: {}]   ;;  %s3167_s3 = inlined_call_operand.vmem [shape: bf16[512,64], index: 3, kind: input, shape index: {}]   ;;  %s3168_s4 = inlined_call_operand.vmem [shape: bf16[256,512], index: 4, kind: input, shape index: {}]   ;;  %s3169_s5 = inlined_call_operand.vmem [shape: f32[1,512], index: 5, kind: input, shape index: {}]   ;;  %s3170_s6 = inlined_call_operand.vmem [shape: f32[512,512], index: 6, kind: output, shape index: {}]  }
   0x1 LB: > { %s2139_s22 = sadd.s32 4294967295, %s2461_s21   ;;  %p2143_p0 = scmp.ge.s32.totalorder %s2461_s21, 1  ;;  %s2461_s21 = sphi %s2499_s21, %s16_s21  }
   0x2   : > { %p246_p1 = scmp.lt.s32.totalorder %s2461_s21, 3 }
   0x4   : > { %p247_p2 = pnand %p2143_p0, %p246_p1 }
   0x5   : > { %s2144_s23 = sshll.u32 (!%p247_p2), %s2139_s22, 5  ;;  %v2311_v0 = vld [vmem:[%s3168_s4 + $0x4] ss:$16 sps:$4 sm:$0xff] (!%p247_p2)   ;;  %v2313_v1 = vld [vmem:[%s3168_s4 + $0xc] ss:$16 sps:$4 sm:$0xff] (!%p247_p2)   ;;  %s2463_s27 = smov (!%p247_p2), 64  }
   0x6   : > { %250 = sbr.rel (%p247_p2) target bundleno = 484 (0x1e4), region = 44  ;;  %p293_p3 = scmp.lt.s32.totalorder (!%p247_p2), %s2144_s23, 63  ;;  %1403 = vmatprep.subr.bf16.mxu0 (!%p247_p2), %v2311_v0  ;;  %v2315_v2 = vld [vmem:[%s3168_s4] ss:$16 sps:$4 sm:$0xff] (!%p247_p2)   ;;  %v2316_v3 = vld [vmem:[%s3168_s4 + $0x8] ss:$16 sps:$4 sm:$0xff] (!%p247_p2)   ;;  %1596 = vmatprep.subr.bf16.mxu1 (!%p247_p2), %v2313_v1 }
   0x7   : > { %v2317_v4 = vld [vmem:[%s3168_s4 + $0x24] ss:$16 sps:$4 sm:$0xff] (!%p247_p2)   ;;  %1404 = vmatpush1.bf16.msra.mxu0 (!%p247_p2), %v2315_v2  ;;  %1597 = vmatpush1.bf16.msra.mxu1 (!%p247_p2), %v2316_v3  ;;  %v2319_v5 = vld [vmem:[%s3168_s4 + $0x2c] ss:$16 sps:$4 sm:$0xff] (!%p247_p2)   ;;  %v2322_v6 = vld [vmem:[%s3168_s4 + $0x20] ss:$16 sps:$4 sm:$0xff] (!%p247_p2)  }
   0x8   : > { %1405 = vmatprep.subr.bf16.mxu0 (!%p247_p2), %v2317_v4  ;;  %v2323_v7 = vld [vmem:[%s3168_s4 + $0x28] ss:$16 sps:$4 sm:$0xff] (!%p247_p2)   ;;  %1598 = vmatprep.subr.bf16.mxu1 (!%p247_p2), %v2319_v5  ;;  %v2325_v8 = vld [vmem:[%s3168_s4 + $0x44] ss:$16 sps:$4 sm:$0xff] (!%p247_p2)   ;;  %v2327_v21 = vld [vmem:[%s3168_s4 + $0x4c] ss:$16 sps:$4 sm:$0xff] (!%p247_p2)  }
   0x9   : > { %v2329_v22 = vld [vmem:[%s3168_s4 + $0x40] ss:$16 sps:$4 sm:$0xff] (!%p247_p2)   ;;  %v2330_v23 = vld [vmem:[%s3168_s4 + $0x48] ss:$16 sps:$4 sm:$0xff] (!%p247_p2)   ;;  %v2331_v24 = vld [vmem:[%s3168_s4 + $0x64] ss:$16 sps:$4 sm:$0xff] (!%p247_p2)  }
   0xa   : > { %v2333_v25 = vld [vmem:[%s3168_s4 + $0x6c] ss:$16 sps:$4 sm:$0xff] (!%p247_p2)   ;;  %v2336_v27 = vld [vmem:[%s3168_s4 + $0x60] ss:$16 sps:$4 sm:$0xff] (!%p247_p2)   ;;  %v2337_v28 = vld [vmem:[%s3168_s4 + $0x68] ss:$16 sps:$4 sm:$0xff] (!%p247_p2)  }
   0xb   : > { %1406 = vmatpush1.bf16.msra.mxu0 (!%p247_p2), %v2322_v6  ;;  %1599 = vmatpush1.bf16.msra.mxu1 (!%p247_p2), %v2323_v7  ;;  %v2339_v31 = vld [vmem:[%s3168_s4 + $0x84] ss:$16 sps:$4 sm:$0xff] (!%p247_p2)   ;;  %v2341_v32 = vld [vmem:[%s3168_s4 + $0x8c] ss:$16 sps:$4 sm:$0xff] (!%p247_p2)   ;;  %v2343_v33 = vld [vmem:[%s3168_s4 + $0x80] ss:$16 sps:$4 sm:$0xff] (!%p247_p2)  }
   0xc   : > { %1407 = vmatprep.subr.bf16.mxu0 (!%p247_p2), %v2325_v8  ;;  %1600 = vmatprep.subr.bf16.mxu1 (!%p247_p2), %v2327_v21  ;;  %v2344_v35 = vld [vmem:[%s3168_s4 + $0x88] ss:$16 sps:$4 sm:$0xff] (!%p247_p2)   ;;  %v2345_v36 = vld [vmem:[%s3168_s4 + $0xa4] ss:$16 sps:$4 sm:$0xff] (!%p247_p2)   ;;  %v2347_v37 = vld [vmem:[%s3168_s4 + $0xac] ss:$16 sps:$4 sm:$0xff] (!%p247_p2)  }
   0xd   : > { %s3172_s23 = smov (!%p293_p3, %s2144_s23), 63  ;;  %v2350_v39 = vld [vmem:[%s3168_s4 + $0xa0] ss:$16 sps:$4 sm:$0xff]   ;;  %v2351_v40 = vld [vmem:[%s3168_s4 + $0xa8] ss:$16 sps:$4 sm:$0xff]   ;;  %vm451_vm0 = vcmask 523264  }
   0xe   : > { %s2531_s14 = sshll.u32 %s3172_s23, 2  ;;  %v2353_v42 = vld [vmem:[%s3168_s4 + $0xc4] ss:$16 sps:$4 sm:$0xff]   ;;  %v2355_v44 = vld [vmem:[%s3168_s4 + $0xcc] ss:$16 sps:$4 sm:$0xff]   ;;  %vm628_vm1 = vcmask 1048064  }
   0xf   : > { %s2540_s19 = scalar_lea.vmem %s3167_s3, %s2531_s14  ;;  %s2550_s26 = scalar_lea.vmem %s3165_s1, %s2531_s14  ;;  %1408 = vmatpush1.bf16.msra.mxu0 %v2329_v22  ;;  %1601 = vmatpush1.bf16.msra.mxu1 %v2330_v23  ;;  %v2357_v45 = vld [vmem:[%s3168_s4 + $0xc0] ss:$16 sps:$4 sm:$0xff]   ;;  %v2358_v46 = vld [vmem:[%s3168_s4 + $0xc8] ss:$16 sps:$4 sm:$0xff]   ;;  %v2359_v48 = vld [vmem:[%s3168_s4 + $0xe4] ss:$16 sps:$4 sm:$0xff]  }
  0x10   : > { %v2295_v9 = vld [vmem:[%s2540_s19] sm:$0xff]   ;;  %v2297_v11 = vld [vmem:[%s2540_s19 + $0x8] sm:$0xff]   ;;  %v2299_v13 = vld [vmem:[%s2540_s19 + $0x10] sm:$0xff]   ;;  %1409 = vmatprep.subr.bf16.mxu0 %v2331_v24  ;;  %1602 = vmatprep.subr.bf16.mxu1 %v2333_v25  ;;  %s2729_s15 = scalar_lea.vmem %s3166_s2, %s2531_s14  ;;  %s2758_s11 = scalar_lea.vmem %s3164_s0, %s2531_s14 }
  0x11   : > { %v2296_v10 = vld [vmem:[%s2550_s26] sm:$0xff]   ;;  %901 = vrot.lane.b32.xlu0 %v2295_v9, %s2463_s27  ;;  %903 = vrot.lane.b32.xlu1 %v2297_v11, %s2463_s27  ;;  %v2298_v12 = vld [vmem:[%s2550_s26 + $0x8] sm:$0xff]  }
  0x12   : > { %v2300_v14 = vld [vmem:[%s2550_s26 + $0x10] sm:$0xff]   ;;  %v2301_v15 = vld [vmem:[%s2540_s19 + $0x18] sm:$0xff]   ;;  %v2303_v17 = vld [vmem:[%s2540_s19 + $0x20] sm:$0xff]  }
  0x13   : > { %v2302_v16 = vld [vmem:[%s2550_s26 + $0x18] sm:$0xff]   ;;  %v2304_v18 = vld [vmem:[%s2550_s26 + $0x20] sm:$0xff]   ;;  %v2305_v19 = vld [vmem:[%s2540_s19 + $0x28] sm:$0xff]   ;;  %1410 = vmatpush1.bf16.msra.mxu0 %v2336_v27  ;;  %1603 = vmatpush1.bf16.msra.mxu1 %v2337_v28 }
  0x14   : > { %v2306_v20 = vld [vmem:[%s2550_s26 + $0x28] sm:$0xff]   ;;  %v2307_v26 = vld [vmem:[%s2540_s19 + $0x30] sm:$0xff]   ;;  %v2309_v30 = vld [vmem:[%s2540_s19 + $0x38] sm:$0xff]   ;;  %1411 = vmatprep.subr.bf16.mxu0 %v2339_v31  ;;  %1604 = vmatprep.subr.bf16.mxu1 %v2341_v32 }
  0x15   : > { %580 = vrot.lane.b32.xlu0 %v2296_v10, %s2463_s27  ;;  %582 = vrot.lane.b32.xlu1 %v2298_v12, %s2463_s27  ;;  %v2308_v29 = vld [vmem:[%s2550_s26 + $0x30] sm:$0xff]   ;;  %v2310_v34 = vld [vmem:[%s2550_s26 + $0x38] sm:$0xff]  }
  0x16   : > { %v2321_v38 = vld [vmem:[%s2540_s19 + $0x40] sm:$0xff]   ;;  %v2335_v43 = vld [vmem:[%s2540_s19 + $0x48] sm:$0xff]   ;;  %v2349_v50 = vld [vmem:[%s2540_s19 + $0x50] sm:$0xff]  }
  0x17   : > { %1412 = vmatpush1.bf16.msra.mxu0 %v2343_v33  ;;  %1605 = vmatpush1.bf16.msra.mxu1 %v2344_v35  ;;  %v2324_v41 = vld [vmem:[%s2550_s26 + $0x40] sm:$0xff]   ;;  %v2338_v47 = vld [vmem:[%s2550_s26 + $0x48] sm:$0xff]   ;;  %v2352_v53 = vld [vmem:[%s2550_s26 + $0x50] sm:$0xff]  }
  0x18   : > { %1413 = vmatprep.subr.bf16.mxu0 %v2345_v36  ;;  %1606 = vmatprep.subr.bf16.mxu1 %v2347_v37  ;;  %v2361_v49 = vld [vmem:[%s3168_s4 + $0xec] ss:$16 sps:$4 sm:$0xff]   ;;  %v2364_v51 = vld [vmem:[%s3168_s4 + $0xe0] ss:$16 sps:$4 sm:$0xff]   ;;  %v2365_v52 = vld [vmem:[%s3168_s4 + $0xe8] ss:$16 sps:$4 sm:$0xff]  }
  0x19   : > { %905 = vrot.lane.b32.xlu0 %v2299_v13, %s2463_s27  ;;  %584 = vrot.lane.b32.xlu1 %v2300_v14, %s2463_s27  ;;  %v2367_v54 = vld [vmem:[%s3168_s4 + $0x104] ss:$16 sps:$4 sm:$0xff]   ;;  %v2363_v55 = vld [vmem:[%s2540_s19 + $0x58] sm:$0xff]  }
  0x1a   : > { %v2369_v56 = vld [vmem:[%s3168_s4 + $0x10c] ss:$16 sps:$4 sm:$0xff]   ;;  %v2371_v57 = vld [vmem:[%s3168_s4 + $0x100] ss:$16 sps:$4 sm:$0xff]   ;;  %v2372_v58 = vld [vmem:[%s3168_s4 + $0x108] ss:$16 sps:$4 sm:$0xff]  }
  0x1b   : > { %1414 = vmatpush1.bf16.msra.mxu0 %v2350_v39  ;;  %1607 = vmatpush1.bf16.msra.mxu1 %v2351_v40  ;;  %v2366_v59 = vld [vmem:[%s2550_s26 + $0x58] sm:$0xff]   ;;  %v2373_v60 = vld [vmem:[%s3168_s4 + $0x124] ss:$16 sps:$4 sm:$0xff]   ;;  %v2378_v63 = vld [vmem:[%s3168_s4 + $0x120] ss:$16 sps:$4 sm:$0xff]  }
  0x1c   : > { %1415 = vmatprep.subr.bf16.mxu0 %v2353_v42  ;;  %1608 = vmatprep.subr.bf16.mxu1 %v2355_v44  ;;  %v2375_v61 = vld [vmem:[%s3168_s4 + $0x12c] ss:$16 sps:$4 sm:$0xff]   ;;  %v2377_v62 = vld [vmem:[%s2540_s19 + $0x60] sm:$0xff]   ;;  %v2379_v0 = vld [vmem:[%s3168_s4 + $0x128] ss:$16 sps:$4 sm:$0xff]  }
  0x1d   : > { %907 = vrot.lane.b32.xlu0 %v2301_v15, %s2463_s27  ;;  %586 = vrot.lane.b32.xlu1 %v2302_v16, %s2463_s27  ;;  %v2380_v1 = vld [vmem:[%s2550_s26 + $0x60] sm:$0xff]   ;;  %v2383_v3 = vld [vmem:[%s3168_s4 + $0x14c] ss:$16 sps:$4 sm:$0xff]  }
  0x1e   : > { %v2381_v2 = vld [vmem:[%s3168_s4 + $0x144] ss:$16 sps:$4 sm:$0xff]   ;;  %v2385_v4 = vld [vmem:[%s3168_s4 + $0x140] ss:$16 sps:$4 sm:$0xff]   ;;  %v2386_v5 = vld [vmem:[%s3168_s4 + $0x148] ss:$16 sps:$4 sm:$0xff]  }
  0x1f   : > { %1416 = vmatpush1.bf16.msra.mxu0 %v2357_v45  ;;  %1609 = vmatpush1.bf16.msra.mxu1 %v2358_v46  ;;  %v2387_v6 = vld [vmem:[%s3168_s4 + $0x164] ss:$16 sps:$4 sm:$0xff]   ;;  %v2389_v7 = vld [vmem:[%s3168_s4 + $0x16c] ss:$16 sps:$4 sm:$0xff]   ;;  %v2392_v9 = vld [vmem:[%s3168_s4 + $0x160] ss:$16 sps:$4 sm:$0xff]  }
  0x20   : > { %1417 = vmatprep.subr.bf16.mxu0 %v2359_v48  ;;  %1610 = vmatprep.subr.bf16.mxu1 %v2361_v49  ;;  %v2391_v8 = vld [vmem:[%s2540_s19 + $0x68] sm:$0xff]   ;;  %v2395_v12 = vld [vmem:[%s3168_s4 + $0x184] ss:$16 sps:$4 sm:$0xff]   ;;  %v2399_v14 = vld [vmem:[%s3168_s4 + $0x180] ss:$16 sps:$4 sm:$0xff]  }
  0x21   : > { %909 = vrot.lane.b32.xlu0 %v2303_v17, %s2463_s27  ;;  %588 = vrot.lane.b32.xlu1 %v2304_v18, %s2463_s27  ;;  %v2393_v10 = vld [vmem:[%s3168_s4 + $0x168] ss:$16 sps:$4 sm:$0xff]   ;;  %v2397_v13 = vld [vmem:[%s3168_s4 + $0x18c] ss:$16 sps:$4 sm:$0xff]  }
  0x22   : > { %v2394_v11 = vld [vmem:[%s2550_s26 + $0x68] sm:$0xff]   ;;  %v2401_v16 = vld [vmem:[%s2729_s15] sm:$0xff]   ;;  %v2409_v22 = vld [vmem:[%s2550_s26 + $0x70] sm:$0xff]  }
  0x23   : > { %1418 = vmatpush1.bf16.msra.mxu0 %v2364_v51  ;;  %1611 = vmatpush1.bf16.msra.mxu1 %v2365_v52  ;;  %v2400_v15 = vld [vmem:[%s3168_s4 + $0x188] ss:$16 sps:$4 sm:$0xff]   ;;  %v2402_v17 = vld [vmem:[%s3168_s4 + $0x1a4] ss:$16 sps:$4 sm:$0xff]   ;;  %773 = vst.msk [vmem:[#allocation2 + $0x8] sm:$0xff] %vm451_vm0, %v2401_v16 }
  0x24   : > { %1419 = vmatprep.subr.bf16.mxu0 %v2367_v54  ;;  %1612 = vmatprep.subr.bf16.mxu1 %v2369_v56  ;;  %v2404_v18 = vld [vmem:[%s3168_s4 + $0x1ac] ss:$16 sps:$4 sm:$0xff]   ;;  %v2408_v21 = vld [vmem:[%s3168_s4 + $0x1a8] ss:$16 sps:$4 sm:$0xff]   ;;  %v2410_v23 = vld [vmem:[%s2758_s11] sm:$0xff]  }
  0x25   : > { %911 = vrot.lane.b32.xlu0 %v2305_v19, %s2463_s27  ;;  %590 = vrot.lane.b32.xlu1 %v2306_v20, %s2463_s27  ;;  %v2406_v19 = vld [vmem:[%s2540_s19 + $0x70] sm:$0xff]   ;;  %452 = vst.msk [vmem:[#allocation2] sm:$0xff] %vm451_vm0, %v2410_v23  ;;  %v2413_v25 = vld [vmem:[%s3168_s4 + $0x1cc] ss:$16 sps:$4 sm:$0xff]  }
  0x26   : > { %v2407_v20 = vld [vmem:[%s3168_s4 + $0x1a0] ss:$16 sps:$4 sm:$0xff]   ;;  %v2411_v24 = vld [vmem:[%s3168_s4 + $0x1c4] ss:$16 sps:$4 sm:$0xff]   ;;  %v2416_v27 = vld [vmem:[%s3168_s4 + $0x1c8] ss:$16 sps:$4 sm:$0xff]  }
  0x27   : > { %1420 = vmatpush1.bf16.msra.mxu0 %v2371_v57  ;;  %1613 = vmatpush1.bf16.msra.mxu1 %v2372_v58  ;;  %v2417_v28 = vld [vmem:[%s2729_s15 + $0x8] sm:$0xff]   ;;  %v2422_v31 = vld [vmem:[%s2540_s19 + $0x78] sm:$0xff]   ;;  %v2423_v32 = vld [vmem:[%s3168_s4 + $0x1e0] ss:$16 sps:$4 sm:$0xff]  }
  0x28   : > { %1421 = vmatprep.subr.bf16.mxu0 %v2373_v60  ;;  %1614 = vmatprep.subr.bf16.mxu1 %v2375_v61  ;;  %774 = vst.msk [vmem:[#allocation2 + $0x18] sm:$0xff] %vm451_vm0, %v2417_v28  ;;  %v2424_v33 = vld [vmem:[%s3168_s4 + $0x1e8] ss:$16 sps:$4 sm:$0xff]   ;;  %v2427_v36 = vld [vmem:[%s2729_s15 + $0x10] sm:$0xff]   ;;  %v2431_v40 = vld [vmem:[%s2729_s15 + $0x20] sm:$0xff]  }
  0x29   : > { %913 = vrot.lane.b32.xlu0 %v2307_v26, %s2463_s27  ;;  %592 = vrot.lane.b32.xlu1 %v2308_v29, %s2463_s27  ;;  %v2415_v26 = vld [vmem:[%s3168_s4 + $0x1c0] ss:$16 sps:$4 sm:$0xff]   ;;  %v2418_v29 = vld [vmem:[%s3168_s4 + $0x1e4] ss:$16 sps:$4 sm:$0xff]   ;;  %775 = vst.msk [vmem:[#allocation2 + $0x28] sm:$0xff] %vm451_vm0, %v2427_v36  ;;  %777 = vst.msk [vmem:[#allocation2 + $0x48] sm:$0xff] %vm451_vm0, %v2431_v40 }
  0x2a   : > { %v2426_v35 = vld [vmem:[%s2758_s11 + $0x8] sm:$0xff]   ;;  %v2428_v37 = vld [vmem:[%s2758_s11 + $0x10] sm:$0xff]   ;;  %v2430_v39 = vld [vmem:[%s2758_s11 + $0x18] sm:$0xff]  }
  0x2b   : > { %1422 = vmatpush1.bf16.msra.mxu0 %v2378_v63  ;;  %1615 = vmatpush1.bf16.msra.mxu1 %v2379_v0  ;;  %453 = vst.msk [vmem:[#allocation2 + $0x10] sm:$0xff] %vm451_vm0, %v2426_v35  ;;  %454 = vst.msk [vmem:[#allocation2 + $0x20] sm:$0xff] %vm451_vm0, %v2428_v37  ;;  %v2433_v42 = vld [vmem:[%s2729_s15 + $0x28] sm:$0xff]   ;;  %v2435_v44 = vld [vmem:[%s2729_s15 + $0x30] sm:$0xff]  }
  0x2c   : > { %1423 = vmatprep.subr.bf16.mxu0 %v2381_v2  ;;  %1616 = vmatprep.subr.bf16.mxu1 %v2383_v3  ;;  %455 = vst.msk [vmem:[#allocation2 + $0x30] sm:$0xff] %vm451_vm0, %v2430_v39  ;;  %778 = vst.msk [vmem:[#allocation2 + $0x58] sm:$0xff] %vm451_vm0, %v2433_v42  ;;  %v2436_v45 = vld [vmem:[%s2758_s11 + $0x30] sm:$0xff]   ;;  %v2437_v46 = vld [vmem:[%s2729_s15 + $0x38] sm:$0xff]  }
  0x2d   : > { %915 = vrot.lane.b32.xlu0 %v2309_v30, %s2463_s27  ;;  %594 = vrot.lane.b32.xlu1 %v2310_v34, %s2463_s27  ;;  %v2420_v30 = vld [vmem:[%s3168_s4 + $0x1ec] ss:$16 sps:$4 sm:$0xff]   ;;  %779 = vst.msk [vmem:[#allocation2 + $0x68] sm:$0xff] %vm451_vm0, %v2435_v44  ;;  %458 = vst.msk [vmem:[#allocation2 + $0x60] sm:$0xff] %vm451_vm0, %v2436_v45  ;;  %v2439_v48 = vld [vmem:[%s2729_s15 + $0x40] sm:$0xff]  }
  0x2e   : > { %v2425_v34 = vld [vmem:[%s2550_s26 + $0x78] sm:$0xff]   ;;  %780 = vst.msk [vmem:[#allocation2 + $0x78] sm:$0xff] %vm451_vm0, %v2437_v46  ;;  %v2440_v49 = vld [vmem:[%s2758_s11 + $0x40] sm:$0xff]   ;;  %781 = vst.msk [vmem:[#allocation2 + $0x88] sm:$0xff] %vm451_vm0, %v2439_v48 }
  0x2f   : > { %1424 = vmatpush1.bf16.msra.mxu0 %v2385_v4  ;;  %1617 = vmatpush1.bf16.msra.mxu1 %v2386_v5  ;;  %460 = vst.msk [vmem:[#allocation2 + $0x80] sm:$0xff] %vm451_vm0, %v2440_v49  ;;  %v2442_v51 = vld [vmem:[%s2758_s11 + $0x48] sm:$0xff]   ;;  %v2443_v52 = vld [vmem:[%s2729_s15 + $0x50] sm:$0xff]   ;;  %v2445_v54 = vld [vmem:[%s2729_s15 + $0x58] sm:$0xff]  }
  0x30   : > { %1425 = vmatprep.subr.bf16.mxu0 %v2387_v6  ;;  %1618 = vmatprep.subr.bf16.mxu1 %v2389_v7  ;;  %461 = vst.msk [vmem:[#allocation2 + $0x90] sm:$0xff] %vm451_vm0, %v2442_v51  ;;  %783 = vst.msk [vmem:[#allocation2 + $0xa8] sm:$0xff] %vm451_vm0, %v2443_v52  ;;  %v2447_v56 = vld [vmem:[%s2729_s15 + $0x60] sm:$0xff]   ;;  %v2449_v58 = vld [vmem:[%s2729_s15 + $0x68] sm:$0xff]  }
  0x31   : > { %917 = vrot.lane.b32.xlu0 %v2321_v38, %s2463_s27  ;;  %596 = vrot.lane.b32.xlu1 %v2324_v41, %s2463_s27  ;;  %v2429_v38 = vld [vmem:[%s2729_s15 + $0x18] sm:$0xff]   ;;  %v2432_v41 = vld [vmem:[%s2758_s11 + $0x20] sm:$0xff]   ;;  %784 = vst.msk [vmem:[#allocation2 + $0xb8] sm:$0xff] %vm451_vm0, %v2445_v54  ;;  %785 = vst.msk [vmem:[#allocation2 + $0xc8] sm:$0xff] %vm451_vm0, %v2447_v56 }
  0x32   : > { %776 = vst.msk [vmem:[#allocation2 + $0x38] sm:$0xff] %vm451_vm0, %v2429_v38  ;;  %456 = vst.msk [vmem:[#allocation2 + $0x40] sm:$0xff] %vm451_vm0, %v2432_v41  ;;  %v2448_v57 = vld [vmem:[%s2758_s11 + $0x60] sm:$0xff]   ;;  %v2451_v60 = vld [vmem:[%s2729_s15 + $0x70] sm:$0xff]  }
  0x33   : > { %1426 = vmatpush1.bf16.msra.mxu0 %v2392_v9  ;;  %1619 = vmatpush1.bf16.msra.mxu1 %v2393_v10  ;;  %464 = vst.msk [vmem:[#allocation2 + $0xc0] sm:$0xff] %vm451_vm0, %v2448_v57  ;;  %786 = vst.msk [vmem:[#allocation2 + $0xd8] sm:$0xff] %vm451_vm0, %v2449_v58  ;;  %v2452_v61 = vld [vmem:[%s2758_s11 + $0x70] sm:$0xff]   ;;  %v2454_v63 = vld [vmem:[%s2758_s11 + $0x78] sm:$0xff]  }
  0x34   : > { %1427 = vmatprep.subr.bf16.mxu0 %v2395_v12  ;;  %1620 = vmatprep.subr.bf16.mxu1 %v2397_v13  ;;  %787 = vst.msk [vmem:[#allocation2 + $0xe8] sm:$0xff] %vm451_vm0, %v2451_v60  ;;  %466 = vst.msk [vmem:[#allocation2 + $0xe0] sm:$0xff] %vm451_vm0, %v2452_v61 }
  0x35   : > { %919 = vrot.lane.b32.xlu0 %v2335_v43, %s2463_s27  ;;  %598 = vrot.lane.b32.xlu1 %v2338_v47, %s2463_s27  ;;  %v2434_v43 = vld [vmem:[%s2758_s11 + $0x28] sm:$0xff]   ;;  %v2438_v47 = vld [vmem:[%s2758_s11 + $0x38] sm:$0xff]   ;;  %467 = vst.msk [vmem:[#allocation2 + $0xf0] sm:$0xff] %vm451_vm0, %v2454_v63 }
  0x36   : > { %457 = vst.msk [vmem:[#allocation2 + $0x50] sm:$0xff] %vm451_vm0, %v2434_v43  ;;  %459 = vst.msk [vmem:[#allocation2 + $0x70] sm:$0xff] %vm451_vm0, %v2438_v47 }
  0x37   : > { %1428 = vmatpush1.bf16.msra.mxu0 %v2399_v14  ;;  %1621 = vmatpush1.bf16.msra.mxu1 %v2400_v15 }
  0x38   : > { %1429 = vmatprep.subr.bf16.mxu0 %v2402_v17  ;;  %1622 = vmatprep.subr.bf16.mxu1 %v2404_v18 }
  0x39   : > { %921 = vrot.lane.b32.xlu0 %v2349_v50, %s2463_s27  ;;  %600 = vrot.lane.b32.xlu1 %v2352_v53, %s2463_s27  ;;  %v2441_v50 = vld [vmem:[%s2729_s15 + $0x48] sm:$0xff]   ;;  %v2444_v53 = vld [vmem:[%s2758_s11 + $0x50] sm:$0xff]  }
  0x3a   : > { %782 = vst.msk [vmem:[#allocation2 + $0x98] sm:$0xff] %vm451_vm0, %v2441_v50  ;;  %462 = vst.msk [vmem:[#allocation2 + $0xa0] sm:$0xff] %vm451_vm0, %v2444_v53 }
  0x3b   : > { %1430 = vmatpush1.bf16.msra.mxu0 %v2407_v20  ;;  %1623 = vmatpush1.bf16.msra.mxu1 %v2408_v21 }
  0x3c   : > { %1431 = vmatprep.subr.bf16.mxu0 %v2411_v24  ;;  %1624 = vmatprep.subr.bf16.mxu1 %v2413_v25 }
  0x3d   : > { %923 = vrot.lane.b32.xlu0 %v2363_v55, %s2463_s27  ;;  %602 = vrot.lane.b32.xlu1 %v2366_v59, %s2463_s27  ;;  %v2446_v55 = vld [vmem:[%s2758_s11 + $0x58] sm:$0xff]   ;;  %v2450_v59 = vld [vmem:[%s2758_s11 + $0x68] sm:$0xff]  }
  0x3e   : > { %463 = vst.msk [vmem:[#allocation2 + $0xb0] sm:$0xff] %vm451_vm0, %v2446_v55  ;;  %465 = vst.msk [vmem:[#allocation2 + $0xd0] sm:$0xff] %vm451_vm0, %v2450_v59 }
  0x3f   : > { %1432 = vmatpush1.bf16.msra.mxu0 %v2415_v26  ;;  %1625 = vmatpush1.bf16.msra.mxu1 %v2416_v27 }
  0x40   : > { %1433 = vmatprep.subr.bf16.mxu0 %v2418_v29  ;;  %1626 = vmatprep.subr.bf16.mxu1 %v2420_v30 }
  0x41   : > { %925 = vrot.lane.b32.xlu0 %v2377_v62, %s2463_s27  ;;  %604 = vrot.lane.b32.xlu1 %v2380_v1, %s2463_s27  ;;  %v2453_v62 = vld [vmem:[%s2729_s15 + $0x78] sm:$0xff]  }
  0x42   : > { %788 = vst.msk [vmem:[#allocation2 + $0xf8] sm:$0xff] %vm451_vm0, %v2453_v62 }
  0x43   : > { %1434 = vmatpush1.bf16.msra.mxu0 %v2423_v32  ;;  %1627 = vmatpush1.bf16.msra.mxu1 %v2424_v33 }
  0x45   : > { %927 = vrot.lane.b32.xlu0 %v2391_v8, %s2463_s27  ;;  %606 = vrot.lane.b32.xlu1 %v2394_v11, %s2463_s27 }
  0x49   : > { %929 = vrot.lane.b32.xlu0 %v2406_v19, %s2463_s27  ;;  %608 = vrot.lane.b32.xlu1 %v2409_v22, %s2463_s27 }
  0x4d   : > { %931 = vrot.lane.b32.xlu0 %v2422_v31, %s2463_s27  ;;  %610 = vrot.lane.b32.xlu1 %v2425_v34, %s2463_s27  ;;  %s2285_s27 = sshll.u32 %s3172_s23, 5 }
  0x4e   : > { %s2905_s13 = scalar_lea.vmem %s3170_s6, %s2285_s27 }
  0x83   : > { %v902_v0 = vpop.permute.xlu0 %901  ;;  %v904_v1 = vpop.permute.xlu1 %903 }
  0x84   : > { %949 = vst.msk [vmem:[#allocation2 + $0x8] sm:$0xff] %vm628_vm1, %v902_v0  ;;  %950 = vst.msk [vmem:[#allocation2 + $0x18] sm:$0xff] %vm628_vm1, %v904_v1  ;;  %v1063_v0 = vlaneseq }
  0x86   : > { %v1064_v1 = vshrl.u32 %v1063_v0, 7 }
  0x87   : > { %v581_v2 = vpop.permute.xlu0 %580  ;;  %v583_v3 = vpop.permute.xlu1 %582 }
  0x88   : > { %629 = vst.msk [vmem:[#allocation2] sm:$0xff] %vm628_vm1, %v581_v2  ;;  %630 = vst.msk [vmem:[#allocation2 + $0x10] sm:$0xff] %vm628_vm1, %v583_v3  ;;  %v1065_v2 = vsub.s32 0, %v1064_v1  ;;  %v1073_v3 = vsub.s32 2, %v1064_v1 }
  0x8b   : > { %v966_v4 = vld [vmem:[#allocation2 + $0x8] sm:$0xff]  ;;  %v906_v5 = vpop.permute.xlu0 %905  ;;  %v585_v6 = vpop.permute.xlu1 %584  ;;  %v968_v7 = vld [vmem:[#allocation2 + $0x18] sm:$0xff] }
  0x8c   : > { %1435 = vmatprep.mubr.bf16.mxu0 %v966_v4  ;;  %1628 = vmatprep.mubr.bf16.mxu1 %v966_v4  ;;  %951 = vst.msk [vmem:[#allocation2 + $0x28] sm:$0xff] %vm628_vm1, %v906_v5  ;;  %631 = vst.msk [vmem:[#allocation2 + $0x20] sm:$0xff] %vm628_vm1, %v585_v6  ;;  %v1061_v4 = vld [vmem:[%s3169_s5] sm:$0xf]  ;;  %v1069_v5 = vsub.s32 1, %v1064_v1  ;;  %v1077_v6 = vsub.s32 3, %v1064_v1 }
  0x8f   : > { %v965_v8 = vld [vmem:[#allocation2] sm:$0xff]  ;;  %v908_v9 = vpop.permute.xlu0 %907  ;;  %v587_v10 = vpop.permute.xlu1 %586  ;;  %v967_v12 = vld [vmem:[#allocation2 + $0x10] sm:$0xff] }
  0x90   : > { %1436 = vmatmul.mubr.bf16.vlgmr.msra.gmra.mrb[0].mxu0 %v965_v8  ;;  %1629 = vmatmul.mubr.bf16.vlgmr.msra.gmra.mrb[0].mxu1 %v965_v8  ;;  %952 = vst.msk [vmem:[#allocation2 + $0x38] sm:$0xff] %vm628_vm1, %v908_v9  ;;  %632 = vst.msk [vmem:[#allocation2 + $0x30] sm:$0xff] %vm628_vm1, %v587_v10  ;;  %v2893_v8 = vrot.slane %v1061_v4, %v1073_v3  ;;  %v2895_v9 = vrot.slane %v1061_v4, %v1069_v5 }
  0x91   : > { %1445 = vmatprep.mubr.bf16.mxu0 %v968_v7  ;;  %1638 = vmatprep.mubr.bf16.mxu1 %v968_v7  ;;  %v2891_v7 = vrot.slane %v1061_v4, %v1065_v2  ;;  %v2897_v10 = vrot.slane %v1061_v4, %v1077_v6 }
  0x93   : > { %v910_v11 = vpop.permute.xlu0 %909  ;;  %v589_v13 = vpop.permute.xlu1 %588  ;;  %v970_v14 = vld [vmem:[#allocation2 + $0x28] sm:$0xff]  ;;  %v969_v18 = vld [vmem:[#allocation2 + $0x20] sm:$0xff] }
  0x94   : > { %953 = vst.msk [vmem:[#allocation2 + $0x48] sm:$0xff] %vm628_vm1, %v910_v11  ;;  %633 = vst.msk [vmem:[#allocation2 + $0x40] sm:$0xff] %vm628_vm1, %v589_v13 }
  0x97   : > { %v912_v15 = vpop.permute.xlu0 %911  ;;  %v591_v16 = vpop.permute.xlu1 %590  ;;  %v972_v20 = vld [vmem:[#allocation2 + $0x38] sm:$0xff]  ;;  %v971_v24 = vld [vmem:[#allocation2 + $0x30] sm:$0xff] }
  0x98   : > { %1446 = vmatmul.mubr.bf16.gmra.mrb[4].mxu0 %v967_v12  ;;  %1639 = vmatmul.mubr.bf16.gmra.mrb[4].mxu1 %v967_v12  ;;  %954 = vst.msk [vmem:[#allocation2 + $0x58] sm:$0xff] %vm628_vm1, %v912_v15  ;;  %634 = vst.msk [vmem:[#allocation2 + $0x50] sm:$0xff] %vm628_vm1, %v591_v16 }
  0x99   : > { %1455 = vmatprep.mubr.bf16.mxu0 %v970_v14  ;;  %1648 = vmatprep.mubr.bf16.mxu1 %v970_v14 }
  0x9b   : > { %v914_v17 = vpop.permute.xlu0 %913  ;;  %v593_v19 = vpop.permute.xlu1 %592  ;;  %v974_v26 = vld [vmem:[#allocation2 + $0x48] sm:$0xff]  ;;  %v973_v30 = vld [vmem:[#allocation2 + $0x40] sm:$0xff] }
  0x9c   : > { %955 = vst.msk [vmem:[#allocation2 + $0x68] sm:$0xff] %vm628_vm1, %v914_v17  ;;  %635 = vst.msk [vmem:[#allocation2 + $0x60] sm:$0xff] %vm628_vm1, %v593_v19 }
  0x9f   : > { %v916_v21 = vpop.permute.xlu0 %915  ;;  %v595_v22 = vpop.permute.xlu1 %594  ;;  %v976_v32 = vld [vmem:[#allocation2 + $0x58] sm:$0xff]  ;;  %v975_v36 = vld [vmem:[#allocation2 + $0x50] sm:$0xff] }
  0xa0   : > { %1456 = vmatmul.mubr.bf16.gmra.mrb[8].mxu0 %v969_v18  ;;  %1649 = vmatmul.mubr.bf16.gmra.mrb[8].mxu1 %v969_v18  ;;  %956 = vst.msk [vmem:[#allocation2 + $0x78] sm:$0xff] %vm628_vm1, %v916_v21  ;;  %636 = vst.msk [vmem:[#allocation2 + $0x70] sm:$0xff] %vm628_vm1, %v595_v22 }
  0xa1   : > { %1465 = vmatprep.mubr.bf16.mxu0 %v972_v20  ;;  %1658 = vmatprep.mubr.bf16.mxu1 %v972_v20 }
  0xa3   : > { %v918_v23 = vpop.permute.xlu0 %917  ;;  %v597_v25 = vpop.permute.xlu1 %596  ;;  %v978_v38 = vld [vmem:[#allocation2 + $0x68] sm:$0xff]  ;;  %v977_v41 = vld [vmem:[#allocation2 + $0x60] sm:$0xff] }
  0xa4   : > { %957 = vst.msk [vmem:[#allocation2 + $0x88] sm:$0xff] %vm628_vm1, %v918_v23  ;;  %637 = vst.msk [vmem:[#allocation2 + $0x80] sm:$0xff] %vm628_vm1, %v597_v25 }
  0xa7   : > { %v920_v27 = vpop.permute.xlu0 %919  ;;  %v599_v28 = vpop.permute.xlu1 %598  ;;  %v980_v42 = vld [vmem:[#allocation2 + $0x78] sm:$0xff]  ;;  %v979_v45 = vld [vmem:[#allocation2 + $0x70] sm:$0xff] }
  0xa8   : > { %1466 = vmatmul.mubr.bf16.gmra.mrb[12].mxu0 %v971_v24  ;;  %1659 = vmatmul.mubr.bf16.gmra.mrb[12].mxu1 %v971_v24  ;;  %958 = vst.msk [vmem:[#allocation2 + $0x98] sm:$0xff] %vm628_vm1, %v920_v27  ;;  %638 = vst.msk [vmem:[#allocation2 + $0x90] sm:$0xff] %vm628_vm1, %v599_v28 }
  0xa9   : > { %1475 = vmatprep.mubr.bf16.mxu0 %v974_v26  ;;  %1668 = vmatprep.mubr.bf16.mxu1 %v974_v26 }
  0xab   : > { %v922_v29 = vpop.permute.xlu0 %921  ;;  %v601_v31 = vpop.permute.xlu1 %600  ;;  %v982_v46 = vld [vmem:[#allocation2 + $0x88] sm:$0xff]  ;;  %v981_v49 = vld [vmem:[#allocation2 + $0x80] sm:$0xff] }
  0xac   : > { %959 = vst.msk [vmem:[#allocation2 + $0xa8] sm:$0xff] %vm628_vm1, %v922_v29  ;;  %639 = vst.msk [vmem:[#allocation2 + $0xa0] sm:$0xff] %vm628_vm1, %v601_v31 }
  0xaf   : > { %v924_v33 = vpop.permute.xlu0 %923  ;;  %v603_v34 = vpop.permute.xlu1 %602  ;;  %v984_v50 = vld [vmem:[#allocation2 + $0x98] sm:$0xff]  ;;  %v983_v51 = vld [vmem:[#allocation2 + $0x90] sm:$0xff] }
  0xb0   : > { %1476 = vmatmul.mubr.bf16.gmra.mrb[16].mxu0 %v973_v30  ;;  %1669 = vmatmul.mubr.bf16.gmra.mrb[16].mxu1 %v973_v30  ;;  %960 = vst.msk [vmem:[#allocation2 + $0xb8] sm:$0xff] %vm628_vm1, %v924_v33  ;;  %640 = vst.msk [vmem:[#allocation2 + $0xb0] sm:$0xff] %vm628_vm1, %v603_v34 }
  0xb1   : > { %1485 = vmatprep.mubr.bf16.mxu0 %v976_v32  ;;  %1678 = vmatprep.mubr.bf16.mxu1 %v976_v32 }
  0xb3   : > { %v926_v35 = vpop.permute.xlu0 %925  ;;  %v605_v37 = vpop.permute.xlu1 %604  ;;  %v986_v52 = vld [vmem:[#allocation2 + $0xa8] sm:$0xff]  ;;  %v985_v53 = vld [vmem:[#allocation2 + $0xa0] sm:$0xff] }
  0xb4   : > { %961 = vst.msk [vmem:[#allocation2 + $0xc8] sm:$0xff] %vm628_vm1, %v926_v35  ;;  %641 = vst.msk [vmem:[#allocation2 + $0xc0] sm:$0xff] %vm628_vm1, %v605_v37 }
  0xb7   : > { %v928_v39 = vpop.permute.xlu0 %927  ;;  %v607_v40 = vpop.permute.xlu1 %606  ;;  %v988_v54 = vld [vmem:[#allocation2 + $0xb8] sm:$0xff]  ;;  %v987_v55 = vld [vmem:[#allocation2 + $0xb0] sm:$0xff] }
  0xb8   : > { %1486 = vmatmul.mubr.bf16.gmra.mrb[20].mxu0 %v975_v36  ;;  %1679 = vmatmul.mubr.bf16.gmra.mrb[20].mxu1 %v975_v36  ;;  %962 = vst.msk [vmem:[#allocation2 + $0xd8] sm:$0xff] %vm628_vm1, %v928_v39  ;;  %642 = vst.msk [vmem:[#allocation2 + $0xd0] sm:$0xff] %vm628_vm1, %v607_v40 }
  0xb9   : > { %1495 = vmatprep.mubr.bf16.mxu0 %v978_v38  ;;  %1688 = vmatprep.mubr.bf16.mxu1 %v978_v38 }
  0xbb   : > { %v930_v43 = vpop.permute.xlu0 %929  ;;  %v609_v44 = vpop.permute.xlu1 %608  ;;  %v990_v56 = vld [vmem:[#allocation2 + $0xc8] sm:$0xff]  ;;  %v989_v57 = vld [vmem:[#allocation2 + $0xc0] sm:$0xff] }
  0xbc   : > { %963 = vst.msk [vmem:[#allocation2 + $0xe8] sm:$0xff] %vm628_vm1, %v930_v43  ;;  %643 = vst.msk [vmem:[#allocation2 + $0xe0] sm:$0xff] %vm628_vm1, %v609_v44 }
  0xbf   : > { %v932_v47 = vpop.permute.xlu0 %931  ;;  %v611_v48 = vpop.permute.xlu1 %610  ;;  %v992_v58 = vld [vmem:[#allocation2 + $0xd8] sm:$0xff]  ;;  %v991_v59 = vld [vmem:[#allocation2 + $0xd0] sm:$0xff] }
  0xc0   : > { %1496 = vmatmul.mubr.bf16.gmra.mrb[24].mxu0 %v977_v41  ;;  %1689 = vmatmul.mubr.bf16.gmra.mrb[24].mxu1 %v977_v41  ;;  %964 = vst.msk [vmem:[#allocation2 + $0xf8] sm:$0xff] %vm628_vm1, %v932_v47  ;;  %644 = vst.msk [vmem:[#allocation2 + $0xf0] sm:$0xff] %vm628_vm1, %v611_v48 }
  0xc1   : > { %1505 = vmatprep.mubr.bf16.mxu0 %v980_v42  ;;  %1698 = vmatprep.mubr.bf16.mxu1 %v980_v42 }
  0xc3   : > { %v994_v60 = vld [vmem:[#allocation2 + $0xe8] sm:$0xff]  ;;  %v993_v61 = vld [vmem:[#allocation2 + $0xe0] sm:$0xff] }
  0xc7   : > { %v996_v62 = vld [vmem:[#allocation2 + $0xf8] sm:$0xff]  ;;  %v995_v63 = vld [vmem:[#allocation2 + $0xf0] sm:$0xff] }
  0xc8   : > { %1506 = vmatmul.mubr.bf16.gmra.mrb[28].mxu0 %v979_v45  ;;  %1699 = vmatmul.mubr.bf16.gmra.mrb[28].mxu1 %v979_v45 }
  0xc9   : > { %1515 = vmatprep.mubr.bf16.mxu0 %v982_v46  ;;  %1708 = vmatprep.mubr.bf16.mxu1 %v982_v46 }
  0xd0   : > { %1516 = vmatmul.mubr.bf16.gmra.mrb[32].mxu0 %v981_v49  ;;  %1709 = vmatmul.mubr.bf16.gmra.mrb[32].mxu1 %v981_v49 }
  0xd1   : > { %1525 = vmatprep.mubr.bf16.mxu0 %v984_v50  ;;  %1718 = vmatprep.mubr.bf16.mxu1 %v984_v50 }
  0xd8   : > { %1526 = vmatmul.mubr.bf16.gmra.mrb[36].mxu0 %v983_v51  ;;  %1719 = vmatmul.mubr.bf16.gmra.mrb[36].mxu1 %v983_v51 }
  0xd9   : > { %1535 = vmatprep.mubr.bf16.mxu0 %v986_v52  ;;  %1728 = vmatprep.mubr.bf16.mxu1 %v986_v52 }
  0xe0   : > { %1536 = vmatmul.mubr.bf16.gmra.mrb[40].mxu0 %v985_v53  ;;  %1729 = vmatmul.mubr.bf16.gmra.mrb[40].mxu1 %v985_v53 }
  0xe1   : > { %1545 = vmatprep.mubr.bf16.mxu0 %v988_v54  ;;  %1738 = vmatprep.mubr.bf16.mxu1 %v988_v54 }
  0xe8   : > { %1546 = vmatmul.mubr.bf16.gmra.mrb[44].mxu0 %v987_v55  ;;  %1739 = vmatmul.mubr.bf16.gmra.mrb[44].mxu1 %v987_v55 }
  0xe9   : > { %1555 = vmatprep.mubr.bf16.mxu0 %v990_v56  ;;  %1748 = vmatprep.mubr.bf16.mxu1 %v990_v56 }
  0xf0   : > { %1556 = vmatmul.mubr.bf16.gmra.mrb[48].mxu0 %v989_v57  ;;  %1749 = vmatmul.mubr.bf16.gmra.mrb[48].mxu1 %v989_v57 }
  0xf1   : > { %1565 = vmatprep.mubr.bf16.mxu0 %v992_v58  ;;  %1758 = vmatprep.mubr.bf16.mxu1 %v992_v58 }
  0xf8   : > { %1566 = vmatmul.mubr.bf16.gmra.mrb[52].mxu0 %v991_v59  ;;  %1759 = vmatmul.mubr.bf16.gmra.mrb[52].mxu1 %v991_v59 }
  0xf9   : > { %1575 = vmatprep.mubr.bf16.mxu0 %v994_v60  ;;  %1768 = vmatprep.mubr.bf16.mxu1 %v994_v60 }
 0x100   : > { %1576 = vmatmul.mubr.bf16.gmra.mrb[56].mxu0 %v993_v61  ;;  %1769 = vmatmul.mubr.bf16.gmra.mrb[56].mxu1 %v993_v61 }
 0x101   : > { %1585 = vmatprep.mubr.bf16.mxu0 %v996_v62  ;;  %1778 = vmatprep.mubr.bf16.mxu1 %v996_v62 }
 0x108   : > { %1586 = vmatmul.mubr.bf16.gmra.mrb[60].mxu0 %v995_v63  ;;  %1779 = vmatmul.mubr.bf16.gmra.mrb[60].mxu1 %v995_v63 }
 0x163   : > { %v1437_v11 = vpop.f32.mrb[0].mxu0  ;;  %v1630_v12 = vpop.f32.mrb[0].mxu1 }
 0x164   : > { %v1438_v13 = vadd.f32 %v1437_v11, %v2891_v7  ;;  %v1631_v14 = vadd.f32 %v1630_v12, %v2893_v8  ;;  %v1439_v15 = vpop.f32.mrb[1].mxu0  ;;  %v1632_v16 = vpop.f32.mrb[1].mxu1 }
 0x165   : > { %v1440_v17 = vadd.f32 %v1439_v15, %v2895_v9  ;;  %v1633_v18 = vadd.f32 %v1632_v16, %v2897_v10  ;;  %v1441_v19 = vpop.f32.mrb[2].mxu0  ;;  %v1634_v20 = vpop.f32.mrb[2].mxu1 }
 0x166   : > { %v1789_v21 = vmax.f32 %v1438_v13, 0.0  ;;  %v1791_v22 = vmax.f32 %v1631_v14, 0.0  ;;  %v1442_v23 = vadd.f32 %v1441_v19, %v2891_v7  ;;  %v1635_v24 = vadd.f32 %v1634_v20, %v2893_v8  ;;  %v1443_v25 = vpop.f32.mrb[3].mxu0  ;;  %v1636_v26 = vpop.f32.mrb[3].mxu1 }
 0x167   : > { %v1790_v27 = vmax.f32 %v1440_v17, 0.0  ;;  %v1792_v28 = vmax.f32 %v1633_v18, 0.0  ;;  %v1444_v29 = vadd.f32 %v1443_v25, %v2895_v9  ;;  %v1637_v30 = vadd.f32 %v1636_v26, %v2897_v10 }
 0x168   : > { %1917 = vst [vmem:[%s2905_s13] sm:$0xff] %v1789_v21  ;;  %1919 = vst [vmem:[%s2905_s13 + $0x10] sm:$0xff] %v1791_v22  ;;  %v1793_v31 = vmax.f32 %v1442_v23, 0.0  ;;  %v1795_v32 = vmax.f32 %v1635_v24, 0.0 }
 0x169   : > { %1918 = vst [vmem:[%s2905_s13 + $0x8] sm:$0xff] %v1790_v27  ;;  %1920 = vst [vmem:[%s2905_s13 + $0x18] sm:$0xff] %v1792_v28  ;;  %v1794_v33 = vmax.f32 %v1444_v29, 0.0  ;;  %v1796_v34 = vmax.f32 %v1637_v30, 0.0 }
 0x16a   : > { %1921 = vst [vmem:[%s2905_s13 + $0x20] sm:$0xff] %v1793_v31  ;;  %1923 = vst [vmem:[%s2905_s13 + $0x30] sm:$0xff] %v1795_v32 }
 0x16b   : > { %1922 = vst [vmem:[%s2905_s13 + $0x28] sm:$0xff] %v1794_v33  ;;  %1924 = vst [vmem:[%s2905_s13 + $0x38] sm:$0xff] %v1796_v34  ;;  %v1447_v35 = vpop.f32.mrb[4].mxu0  ;;  %v1640_v36 = vpop.f32.mrb[4].mxu1 }
 0x16c   : > { %v1448_v37 = vadd.f32 %v1447_v35, %v2891_v7  ;;  %v1641_v38 = vadd.f32 %v1640_v36, %v2893_v8  ;;  %v1449_v39 = vpop.f32.mrb[5].mxu0  ;;  %v1642_v40 = vpop.f32.mrb[5].mxu1 }
 0x16d   : > { %v1450_v41 = vadd.f32 %v1449_v39, %v2895_v9  ;;  %v1643_v42 = vadd.f32 %v1642_v40, %v2897_v10  ;;  %v1451_v43 = vpop.f32.mrb[6].mxu0  ;;  %v1644_v44 = vpop.f32.mrb[6].mxu1 }
 0x16e   : > { %v1797_v45 = vmax.f32 %v1448_v37, 0.0  ;;  %v1799_v46 = vmax.f32 %v1641_v38, 0.0  ;;  %v1452_v47 = vadd.f32 %v1451_v43, %v2891_v7  ;;  %v1645_v48 = vadd.f32 %v1644_v44, %v2893_v8  ;;  %v1453_v49 = vpop.f32.mrb[7].mxu0  ;;  %v1646_v50 = vpop.f32.mrb[7].mxu1 }
 0x16f   : > { %v1798_v51 = vmax.f32 %v1450_v41, 0.0  ;;  %v1800_v52 = vmax.f32 %v1643_v42, 0.0  ;;  %v1454_v53 = vadd.f32 %v1453_v49, %v2895_v9  ;;  %v1647_v54 = vadd.f32 %v1646_v50, %v2897_v10 }
 0x170   : > { %1925 = vst [vmem:[%s2905_s13 + $0x40] sm:$0xff] %v1797_v45  ;;  %1927 = vst [vmem:[%s2905_s13 + $0x50] sm:$0xff] %v1799_v46  ;;  %v1801_v55 = vmax.f32 %v1452_v47, 0.0  ;;  %v1803_v56 = vmax.f32 %v1645_v48, 0.0 }
 0x171   : > { %1926 = vst [vmem:[%s2905_s13 + $0x48] sm:$0xff] %v1798_v51  ;;  %1928 = vst [vmem:[%s2905_s13 + $0x58] sm:$0xff] %v1800_v52  ;;  %v1802_v57 = vmax.f32 %v1454_v53, 0.0  ;;  %v1804_v58 = vmax.f32 %v1647_v54, 0.0 }
 0x172   : > { %1929 = vst [vmem:[%s2905_s13 + $0x60] sm:$0xff] %v1801_v55  ;;  %1931 = vst [vmem:[%s2905_s13 + $0x70] sm:$0xff] %v1803_v56 }
 0x173   : > { %1930 = vst [vmem:[%s2905_s13 + $0x68] sm:$0xff] %v1802_v57  ;;  %1932 = vst [vmem:[%s2905_s13 + $0x78] sm:$0xff] %v1804_v58  ;;  %v1457_v59 = vpop.f32.mrb[8].mxu0  ;;  %v1650_v60 = vpop.f32.mrb[8].mxu1 }
 0x174   : > { %v1458_v61 = vadd.f32 %v1457_v59, %v2891_v7  ;;  %v1651_v62 = vadd.f32 %v1650_v60, %v2893_v8  ;;  %v1459_v63 = vpop.f32.mrb[9].mxu0  ;;  %v1652_v0 = vpop.f32.mrb[9].mxu1 }
 0x175   : > { %v1460_v1 = vadd.f32 %v1459_v63, %v2895_v9  ;;  %v1653_v2 = vadd.f32 %v1652_v0, %v2897_v10  ;;  %v1461_v3 = vpop.f32.mrb[10].mxu0  ;;  %v1654_v4 = vpop.f32.mrb[10].mxu1 }
 0x176   : > { %v1805_v5 = vmax.f32 %v1458_v61, 0.0  ;;  %v1807_v6 = vmax.f32 %v1651_v62, 0.0  ;;  %v1462_v11 = vadd.f32 %v1461_v3, %v2891_v7  ;;  %v1655_v12 = vadd.f32 %v1654_v4, %v2893_v8  ;;  %v1463_v13 = vpop.f32.mrb[11].mxu0  ;;  %v1656_v14 = vpop.f32.mrb[11].mxu1 }
 0x177   : > { %v1806_v15 = vmax.f32 %v1460_v1, 0.0  ;;  %v1808_v16 = vmax.f32 %v1653_v2, 0.0  ;;  %v1464_v17 = vadd.f32 %v1463_v13, %v2895_v9  ;;  %v1657_v18 = vadd.f32 %v1656_v14, %v2897_v10 }
 0x178   : > { %1933 = vst [vmem:[%s2905_s13 + $0x80] sm:$0xff] %v1805_v5  ;;  %1935 = vst [vmem:[%s2905_s13 + $0x90] sm:$0xff] %v1807_v6  ;;  %v1809_v19 = vmax.f32 %v1462_v11, 0.0  ;;  %v1811_v20 = vmax.f32 %v1655_v12, 0.0 }
 0x179   : > { %1934 = vst [vmem:[%s2905_s13 + $0x88] sm:$0xff] %v1806_v15  ;;  %1936 = vst [vmem:[%s2905_s13 + $0x98] sm:$0xff] %v1808_v16  ;;  %v1810_v21 = vmax.f32 %v1464_v17, 0.0  ;;  %v1812_v22 = vmax.f32 %v1657_v18, 0.0 }
 0x17a   : > { %1937 = vst [vmem:[%s2905_s13 + $0xa0] sm:$0xff] %v1809_v19  ;;  %1939 = vst [vmem:[%s2905_s13 + $0xb0] sm:$0xff] %v1811_v20 }
 0x17b   : > { %1938 = vst [vmem:[%s2905_s13 + $0xa8] sm:$0xff] %v1810_v21  ;;  %1940 = vst [vmem:[%s2905_s13 + $0xb8] sm:$0xff] %v1812_v22  ;;  %v1467_v23 = vpop.f32.mrb[12].mxu0  ;;  %v1660_v24 = vpop.f32.mrb[12].mxu1 }
 0x17c   : > { %v1468_v25 = vadd.f32 %v1467_v23, %v2891_v7  ;;  %v1661_v26 = vadd.f32 %v1660_v24, %v2893_v8  ;;  %v1469_v27 = vpop.f32.mrb[13].mxu0  ;;  %v1662_v28 = vpop.f32.mrb[13].mxu1 }
 0x17d   : > { %v1470_v29 = vadd.f32 %v1469_v27, %v2895_v9  ;;  %v1663_v30 = vadd.f32 %v1662_v28, %v2897_v10  ;;  %v1471_v31 = vpop.f32.mrb[14].mxu0  ;;  %v1664_v32 = vpop.f32.mrb[14].mxu1 }
 0x17e   : > { %v1813_v33 = vmax.f32 %v1468_v25, 0.0  ;;  %v1815_v34 = vmax.f32 %v1661_v26, 0.0  ;;  %v1472_v35 = vadd.f32 %v1471_v31, %v2891_v7  ;;  %v1665_v36 = vadd.f32 %v1664_v32, %v2893_v8  ;;  %v1473_v37 = vpop.f32.mrb[15].mxu0  ;;  %v1666_v38 = vpop.f32.mrb[15].mxu1 }
 0x17f   : > { %v1814_v39 = vmax.f32 %v1470_v29, 0.0  ;;  %v1816_v40 = vmax.f32 %v1663_v30, 0.0  ;;  %v1474_v41 = vadd.f32 %v1473_v37, %v2895_v9  ;;  %v1667_v42 = vadd.f32 %v1666_v38, %v2897_v10 }
 0x180   : > { %1941 = vst [vmem:[%s2905_s13 + $0xc0] sm:$0xff] %v1813_v33  ;;  %1943 = vst [vmem:[%s2905_s13 + $0xd0] sm:$0xff] %v1815_v34  ;;  %v1817_v43 = vmax.f32 %v1472_v35, 0.0  ;;  %v1819_v44 = vmax.f32 %v1665_v36, 0.0 }
 0x181   : > { %1942 = vst [vmem:[%s2905_s13 + $0xc8] sm:$0xff] %v1814_v39  ;;  %1944 = vst [vmem:[%s2905_s13 + $0xd8] sm:$0xff] %v1816_v40  ;;  %v1818_v45 = vmax.f32 %v1474_v41, 0.0  ;;  %v1820_v46 = vmax.f32 %v1667_v42, 0.0 }
 0x182   : > { %1945 = vst [vmem:[%s2905_s13 + $0xe0] sm:$0xff] %v1817_v43  ;;  %1947 = vst [vmem:[%s2905_s13 + $0xf0] sm:$0xff] %v1819_v44 }
 0x183   : > { %1946 = vst [vmem:[%s2905_s13 + $0xe8] sm:$0xff] %v1818_v45  ;;  %1948 = vst [vmem:[%s2905_s13 + $0xf8] sm:$0xff] %v1820_v46  ;;  %v1477_v47 = vpop.f32.mrb[16].mxu0  ;;  %v1670_v48 = vpop.f32.mrb[16].mxu1 }
 0x184   : > { %v1478_v49 = vadd.f32 %v1477_v47, %v2891_v7  ;;  %v1671_v50 = vadd.f32 %v1670_v48, %v2893_v8  ;;  %v1479_v51 = vpop.f32.mrb[17].mxu0  ;;  %v1672_v52 = vpop.f32.mrb[17].mxu1 }
 0x185   : > { %v1480_v53 = vadd.f32 %v1479_v51, %v2895_v9  ;;  %v1673_v54 = vadd.f32 %v1672_v52, %v2897_v10  ;;  %v1481_v55 = vpop.f32.mrb[18].mxu0  ;;  %v1674_v56 = vpop.f32.mrb[18].mxu1 }
 0x186   : > { %v1821_v57 = vmax.f32 %v1478_v49, 0.0  ;;  %v1823_v58 = vmax.f32 %v1671_v50, 0.0  ;;  %v1482_v59 = vadd.f32 %v1481_v55, %v2891_v7  ;;  %v1675_v60 = vadd.f32 %v1674_v56, %v2893_v8  ;;  %v1483_v61 = vpop.f32.mrb[19].mxu0  ;;  %v1676_v62 = vpop.f32.mrb[19].mxu1 }
 0x187   : > { %v1822_v63 = vmax.f32 %v1480_v53, 0.0  ;;  %v1824_v0 = vmax.f32 %v1673_v54, 0.0  ;;  %v1484_v1 = vadd.f32 %v1483_v61, %v2895_v9  ;;  %v1677_v2 = vadd.f32 %v1676_v62, %v2897_v10 }
 0x188   : > { %1949 = vst [vmem:[%s2905_s13 + $0x100] sm:$0xff] %v1821_v57  ;;  %1951 = vst [vmem:[%s2905_s13 + $0x110] sm:$0xff] %v1823_v58  ;;  %v1825_v3 = vmax.f32 %v1482_v59, 0.0  ;;  %v1827_v4 = vmax.f32 %v1675_v60, 0.0 }
 0x189   : > { %1950 = vst [vmem:[%s2905_s13 + $0x108] sm:$0xff] %v1822_v63  ;;  %1952 = vst [vmem:[%s2905_s13 + $0x118] sm:$0xff] %v1824_v0  ;;  %v1826_v5 = vmax.f32 %v1484_v1, 0.0  ;;  %v1828_v6 = vmax.f32 %v1677_v2, 0.0 }
 0x18a   : > { %1953 = vst [vmem:[%s2905_s13 + $0x120] sm:$0xff] %v1825_v3  ;;  %1955 = vst [vmem:[%s2905_s13 + $0x130] sm:$0xff] %v1827_v4 }
 0x18b   : > { %1954 = vst [vmem:[%s2905_s13 + $0x128] sm:$0xff] %v1826_v5  ;;  %1956 = vst [vmem:[%s2905_s13 + $0x138] sm:$0xff] %v1828_v6  ;;  %v1487_v11 = vpop.f32.mrb[20].mxu0  ;;  %v1680_v12 = vpop.f32.mrb[20].mxu1 }
 0x18c   : > { %v1488_v13 = vadd.f32 %v1487_v11, %v2891_v7  ;;  %v1681_v14 = vadd.f32 %v1680_v12, %v2893_v8  ;;  %v1489_v15 = vpop.f32.mrb[21].mxu0  ;;  %v1682_v16 = vpop.f32.mrb[21].mxu1 }
 0x18d   : > { %v1490_v17 = vadd.f32 %v1489_v15, %v2895_v9  ;;  %v1683_v18 = vadd.f32 %v1682_v16, %v2897_v10  ;;  %v1491_v19 = vpop.f32.mrb[22].mxu0  ;;  %v1684_v20 = vpop.f32.mrb[22].mxu1 }
 0x18e   : > { %v1829_v21 = vmax.f32 %v1488_v13, 0.0  ;;  %v1831_v22 = vmax.f32 %v1681_v14, 0.0  ;;  %v1492_v23 = vadd.f32 %v1491_v19, %v2891_v7  ;;  %v1685_v24 = vadd.f32 %v1684_v20, %v2893_v8  ;;  %v1493_v25 = vpop.f32.mrb[23].mxu0  ;;  %v1686_v26 = vpop.f32.mrb[23].mxu1 }
 0x18f   : > { %v1830_v27 = vmax.f32 %v1490_v17, 0.0  ;;  %v1832_v28 = vmax.f32 %v1683_v18, 0.0  ;;  %v1494_v29 = vadd.f32 %v1493_v25, %v2895_v9  ;;  %v1687_v30 = vadd.f32 %v1686_v26, %v2897_v10 }
 0x190   : > { %1957 = vst [vmem:[%s2905_s13 + $0x140] sm:$0xff] %v1829_v21  ;;  %1959 = vst [vmem:[%s2905_s13 + $0x150] sm:$0xff] %v1831_v22  ;;  %v1833_v31 = vmax.f32 %v1492_v23, 0.0  ;;  %v1835_v32 = vmax.f32 %v1685_v24, 0.0 }
 0x191   : > { %1958 = vst [vmem:[%s2905_s13 + $0x148] sm:$0xff] %v1830_v27  ;;  %1960 = vst [vmem:[%s2905_s13 + $0x158] sm:$0xff] %v1832_v28  ;;  %v1834_v33 = vmax.f32 %v1494_v29, 0.0  ;;  %v1836_v34 = vmax.f32 %v1687_v30, 0.0 }
 0x192   : > { %1961 = vst [vmem:[%s2905_s13 + $0x160] sm:$0xff] %v1833_v31  ;;  %1963 = vst [vmem:[%s2905_s13 + $0x170] sm:$0xff] %v1835_v32 }
 0x193   : > { %1962 = vst [vmem:[%s2905_s13 + $0x168] sm:$0xff] %v1834_v33  ;;  %1964 = vst [vmem:[%s2905_s13 + $0x178] sm:$0xff] %v1836_v34  ;;  %v1497_v35 = vpop.f32.mrb[24].mxu0  ;;  %v1690_v36 = vpop.f32.mrb[24].mxu1 }
 0x194   : > { %v1498_v37 = vadd.f32 %v1497_v35, %v2891_v7  ;;  %v1691_v38 = vadd.f32 %v1690_v36, %v2893_v8  ;;  %v1499_v39 = vpop.f32.mrb[25].mxu0  ;;  %v1692_v40 = vpop.f32.mrb[25].mxu1 }
 0x195   : > { %v1500_v41 = vadd.f32 %v1499_v39, %v2895_v9  ;;  %v1693_v42 = vadd.f32 %v1692_v40, %v2897_v10  ;;  %v1501_v43 = vpop.f32.mrb[26].mxu0  ;;  %v1694_v44 = vpop.f32.mrb[26].mxu1 }
 0x196   : > { %v1837_v45 = vmax.f32 %v1498_v37, 0.0  ;;  %v1839_v46 = vmax.f32 %v1691_v38, 0.0  ;;  %v1502_v47 = vadd.f32 %v1501_v43, %v2891_v7  ;;  %v1695_v48 = vadd.f32 %v1694_v44, %v2893_v8  ;;  %v1503_v49 = vpop.f32.mrb[27].mxu0  ;;  %v1696_v50 = vpop.f32.mrb[27].mxu1 }
 0x197   : > { %v1838_v51 = vmax.f32 %v1500_v41, 0.0  ;;  %v1840_v52 = vmax.f32 %v1693_v42, 0.0  ;;  %v1504_v53 = vadd.f32 %v1503_v49, %v2895_v9  ;;  %v1697_v54 = vadd.f32 %v1696_v50, %v2897_v10 }
 0x198   : > { %1965 = vst [vmem:[%s2905_s13 + $0x180] sm:$0xff] %v1837_v45  ;;  %1967 = vst [vmem:[%s2905_s13 + $0x190] sm:$0xff] %v1839_v46  ;;  %v1841_v55 = vmax.f32 %v1502_v47, 0.0  ;;  %v1843_v56 = vmax.f32 %v1695_v48, 0.0 }
 0x199   : > { %1966 = vst [vmem:[%s2905_s13 + $0x188] sm:$0xff] %v1838_v51  ;;  %1968 = vst [vmem:[%s2905_s13 + $0x198] sm:$0xff] %v1840_v52  ;;  %v1842_v57 = vmax.f32 %v1504_v53, 0.0  ;;  %v1844_v58 = vmax.f32 %v1697_v54, 0.0 }
 0x19a   : > { %1969 = vst [vmem:[%s2905_s13 + $0x1a0] sm:$0xff] %v1841_v55  ;;  %1971 = vst [vmem:[%s2905_s13 + $0x1b0] sm:$0xff] %v1843_v56 }
 0x19b   : > { %1970 = vst [vmem:[%s2905_s13 + $0x1a8] sm:$0xff] %v1842_v57  ;;  %1972 = vst [vmem:[%s2905_s13 + $0x1b8] sm:$0xff] %v1844_v58  ;;  %v1507_v59 = vpop.f32.mrb[28].mxu0  ;;  %v1700_v60 = vpop.f32.mrb[28].mxu1 }
 0x19c   : > { %v1508_v61 = vadd.f32 %v1507_v59, %v2891_v7  ;;  %v1701_v62 = vadd.f32 %v1700_v60, %v2893_v8  ;;  %v1509_v63 = vpop.f32.mrb[29].mxu0  ;;  %v1702_v0 = vpop.f32.mrb[29].mxu1 }
 0x19d   : > { %v1510_v1 = vadd.f32 %v1509_v63, %v2895_v9  ;;  %v1703_v2 = vadd.f32 %v1702_v0, %v2897_v10  ;;  %v1511_v3 = vpop.f32.mrb[30].mxu0  ;;  %v1704_v4 = vpop.f32.mrb[30].mxu1 }
 0x19e   : > { %v1845_v5 = vmax.f32 %v1508_v61, 0.0  ;;  %v1847_v6 = vmax.f32 %v1701_v62, 0.0  ;;  %v1512_v11 = vadd.f32 %v1511_v3, %v2891_v7  ;;  %v1705_v12 = vadd.f32 %v1704_v4, %v2893_v8  ;;  %v1513_v13 = vpop.f32.mrb[31].mxu0  ;;  %v1706_v14 = vpop.f32.mrb[31].mxu1 }
 0x19f   : > { %v1846_v15 = vmax.f32 %v1510_v1, 0.0  ;;  %v1848_v16 = vmax.f32 %v1703_v2, 0.0  ;;  %v1514_v17 = vadd.f32 %v1513_v13, %v2895_v9  ;;  %v1707_v18 = vadd.f32 %v1706_v14, %v2897_v10 }
 0x1a0   : > { %1973 = vst [vmem:[%s2905_s13 + $0x1c0] sm:$0xff] %v1845_v5  ;;  %1975 = vst [vmem:[%s2905_s13 + $0x1d0] sm:$0xff] %v1847_v6  ;;  %v1849_v19 = vmax.f32 %v1512_v11, 0.0  ;;  %v1851_v20 = vmax.f32 %v1705_v12, 0.0 }
 0x1a1   : > { %1974 = vst [vmem:[%s2905_s13 + $0x1c8] sm:$0xff] %v1846_v15  ;;  %1976 = vst [vmem:[%s2905_s13 + $0x1d8] sm:$0xff] %v1848_v16  ;;  %v1850_v21 = vmax.f32 %v1514_v17, 0.0  ;;  %v1852_v22 = vmax.f32 %v1707_v18, 0.0 }
 0x1a2   : > { %1977 = vst [vmem:[%s2905_s13 + $0x1e0] sm:$0xff] %v1849_v19  ;;  %1979 = vst [vmem:[%s2905_s13 + $0x1f0] sm:$0xff] %v1851_v20 }
 0x1a3   : > { %1978 = vst [vmem:[%s2905_s13 + $0x1e8] sm:$0xff] %v1850_v21  ;;  %1980 = vst [vmem:[%s2905_s13 + $0x1f8] sm:$0xff] %v1852_v22  ;;  %v1517_v23 = vpop.f32.mrb[32].mxu0  ;;  %v1710_v24 = vpop.f32.mrb[32].mxu1 }
 0x1a4   : > { %v1518_v25 = vadd.f32 %v1517_v23, %v2891_v7  ;;  %v1711_v26 = vadd.f32 %v1710_v24, %v2893_v8  ;;  %v1519_v27 = vpop.f32.mrb[33].mxu0  ;;  %v1712_v28 = vpop.f32.mrb[33].mxu1 }
 0x1a5   : > { %v1520_v29 = vadd.f32 %v1519_v27, %v2895_v9  ;;  %v1713_v30 = vadd.f32 %v1712_v28, %v2897_v10  ;;  %v1521_v31 = vpop.f32.mrb[34].mxu0  ;;  %v1714_v32 = vpop.f32.mrb[34].mxu1 }
 0x1a6   : > { %v1853_v33 = vmax.f32 %v1518_v25, 0.0  ;;  %v1855_v34 = vmax.f32 %v1711_v26, 0.0  ;;  %v1522_v35 = vadd.f32 %v1521_v31, %v2891_v7  ;;  %v1715_v36 = vadd.f32 %v1714_v32, %v2893_v8  ;;  %v1523_v37 = vpop.f32.mrb[35].mxu0  ;;  %v1716_v38 = vpop.f32.mrb[35].mxu1 }
 0x1a7   : > { %v1854_v39 = vmax.f32 %v1520_v29, 0.0  ;;  %v1856_v40 = vmax.f32 %v1713_v30, 0.0  ;;  %v1524_v41 = vadd.f32 %v1523_v37, %v2895_v9  ;;  %v1717_v42 = vadd.f32 %v1716_v38, %v2897_v10 }
 0x1a8   : > { %1981 = vst [vmem:[%s2905_s13 + $0x200] sm:$0xff] %v1853_v33  ;;  %1983 = vst [vmem:[%s2905_s13 + $0x210] sm:$0xff] %v1855_v34  ;;  %v1857_v43 = vmax.f32 %v1522_v35, 0.0  ;;  %v1859_v44 = vmax.f32 %v1715_v36, 0.0 }
 0x1a9   : > { %1982 = vst [vmem:[%s2905_s13 + $0x208] sm:$0xff] %v1854_v39  ;;  %1984 = vst [vmem:[%s2905_s13 + $0x218] sm:$0xff] %v1856_v40  ;;  %v1858_v45 = vmax.f32 %v1524_v41, 0.0  ;;  %v1860_v46 = vmax.f32 %v1717_v42, 0.0 }
 0x1aa   : > { %1985 = vst [vmem:[%s2905_s13 + $0x220] sm:$0xff] %v1857_v43  ;;  %1987 = vst [vmem:[%s2905_s13 + $0x230] sm:$0xff] %v1859_v44 }
 0x1ab   : > { %1986 = vst [vmem:[%s2905_s13 + $0x228] sm:$0xff] %v1858_v45  ;;  %1988 = vst [vmem:[%s2905_s13 + $0x238] sm:$0xff] %v1860_v46  ;;  %v1527_v47 = vpop.f32.mrb[36].mxu0  ;;  %v1720_v48 = vpop.f32.mrb[36].mxu1 }
 0x1ac   : > { %v1528_v49 = vadd.f32 %v1527_v47, %v2891_v7  ;;  %v1721_v50 = vadd.f32 %v1720_v48, %v2893_v8  ;;  %v1529_v51 = vpop.f32.mrb[37].mxu0  ;;  %v1722_v52 = vpop.f32.mrb[37].mxu1 }
 0x1ad   : > { %v1530_v53 = vadd.f32 %v1529_v51, %v2895_v9  ;;  %v1723_v54 = vadd.f32 %v1722_v52, %v2897_v10  ;;  %v1531_v55 = vpop.f32.mrb[38].mxu0  ;;  %v1724_v56 = vpop.f32.mrb[38].mxu1 }
 0x1ae   : > { %v1861_v57 = vmax.f32 %v1528_v49, 0.0  ;;  %v1863_v58 = vmax.f32 %v1721_v50, 0.0  ;;  %v1532_v59 = vadd.f32 %v1531_v55, %v2891_v7  ;;  %v1725_v60 = vadd.f32 %v1724_v56, %v2893_v8  ;;  %v1533_v61 = vpop.f32.mrb[39].mxu0  ;;  %v1726_v62 = vpop.f32.mrb[39].mxu1 }
 0x1af   : > { %v1862_v63 = vmax.f32 %v1530_v53, 0.0  ;;  %v1864_v0 = vmax.f32 %v1723_v54, 0.0  ;;  %v1534_v1 = vadd.f32 %v1533_v61, %v2895_v9  ;;  %v1727_v2 = vadd.f32 %v1726_v62, %v2897_v10 }
 0x1b0   : > { %1989 = vst [vmem:[%s2905_s13 + $0x240] sm:$0xff] %v1861_v57  ;;  %1991 = vst [vmem:[%s2905_s13 + $0x250] sm:$0xff] %v1863_v58  ;;  %v1865_v3 = vmax.f32 %v1532_v59, 0.0  ;;  %v1867_v4 = vmax.f32 %v1725_v60, 0.0 }
 0x1b1   : > { %1990 = vst [vmem:[%s2905_s13 + $0x248] sm:$0xff] %v1862_v63  ;;  %1992 = vst [vmem:[%s2905_s13 + $0x258] sm:$0xff] %v1864_v0  ;;  %v1866_v5 = vmax.f32 %v1534_v1, 0.0  ;;  %v1868_v6 = vmax.f32 %v1727_v2, 0.0 }
 0x1b2   : > { %1993 = vst [vmem:[%s2905_s13 + $0x260] sm:$0xff] %v1865_v3  ;;  %1995 = vst [vmem:[%s2905_s13 + $0x270] sm:$0xff] %v1867_v4 }
 0x1b3   : > { %1994 = vst [vmem:[%s2905_s13 + $0x268] sm:$0xff] %v1866_v5  ;;  %1996 = vst [vmem:[%s2905_s13 + $0x278] sm:$0xff] %v1868_v6  ;;  %v1537_v11 = vpop.f32.mrb[40].mxu0  ;;  %v1730_v12 = vpop.f32.mrb[40].mxu1 }
 0x1b4   : > { %v1538_v13 = vadd.f32 %v1537_v11, %v2891_v7  ;;  %v1731_v14 = vadd.f32 %v1730_v12, %v2893_v8  ;;  %v1539_v15 = vpop.f32.mrb[41].mxu0  ;;  %v1732_v16 = vpop.f32.mrb[41].mxu1 }
 0x1b5   : > { %v1540_v17 = vadd.f32 %v1539_v15, %v2895_v9  ;;  %v1733_v18 = vadd.f32 %v1732_v16, %v2897_v10  ;;  %v1541_v19 = vpop.f32.mrb[42].mxu0  ;;  %v1734_v20 = vpop.f32.mrb[42].mxu1 }
 0x1b6   : > { %v1869_v21 = vmax.f32 %v1538_v13, 0.0  ;;  %v1871_v22 = vmax.f32 %v1731_v14, 0.0  ;;  %v1542_v23 = vadd.f32 %v1541_v19, %v2891_v7  ;;  %v1735_v24 = vadd.f32 %v1734_v20, %v2893_v8  ;;  %v1543_v25 = vpop.f32.mrb[43].mxu0  ;;  %v1736_v26 = vpop.f32.mrb[43].mxu1 }
 0x1b7   : > { %v1870_v27 = vmax.f32 %v1540_v17, 0.0  ;;  %v1872_v28 = vmax.f32 %v1733_v18, 0.0  ;;  %v1544_v29 = vadd.f32 %v1543_v25, %v2895_v9  ;;  %v1737_v30 = vadd.f32 %v1736_v26, %v2897_v10 }
 0x1b8   : > { %1997 = vst [vmem:[%s2905_s13 + $0x280] sm:$0xff] %v1869_v21  ;;  %1999 = vst [vmem:[%s2905_s13 + $0x290] sm:$0xff] %v1871_v22  ;;  %v1873_v31 = vmax.f32 %v1542_v23, 0.0  ;;  %v1875_v32 = vmax.f32 %v1735_v24, 0.0 }
 0x1b9   : > { %1998 = vst [vmem:[%s2905_s13 + $0x288] sm:$0xff] %v1870_v27  ;;  %2000 = vst [vmem:[%s2905_s13 + $0x298] sm:$0xff] %v1872_v28  ;;  %v1874_v33 = vmax.f32 %v1544_v29, 0.0  ;;  %v1876_v34 = vmax.f32 %v1737_v30, 0.0 }
 0x1ba   : > { %2001 = vst [vmem:[%s2905_s13 + $0x2a0] sm:$0xff] %v1873_v31  ;;  %2003 = vst [vmem:[%s2905_s13 + $0x2b0] sm:$0xff] %v1875_v32 }
 0x1bb   : > { %2002 = vst [vmem:[%s2905_s13 + $0x2a8] sm:$0xff] %v1874_v33  ;;  %2004 = vst [vmem:[%s2905_s13 + $0x2b8] sm:$0xff] %v1876_v34  ;;  %v1547_v35 = vpop.f32.mrb[44].mxu0  ;;  %v1740_v36 = vpop.f32.mrb[44].mxu1 }
 0x1bc   : > { %v1548_v37 = vadd.f32 %v1547_v35, %v2891_v7  ;;  %v1741_v38 = vadd.f32 %v1740_v36, %v2893_v8  ;;  %v1549_v39 = vpop.f32.mrb[45].mxu0  ;;  %v1742_v40 = vpop.f32.mrb[45].mxu1 }
 0x1bd   : > { %v1550_v41 = vadd.f32 %v1549_v39, %v2895_v9  ;;  %v1743_v42 = vadd.f32 %v1742_v40, %v2897_v10  ;;  %v1551_v43 = vpop.f32.mrb[46].mxu0  ;;  %v1744_v44 = vpop.f32.mrb[46].mxu1 }
 0x1be   : > { %v1877_v45 = vmax.f32 %v1548_v37, 0.0  ;;  %v1879_v46 = vmax.f32 %v1741_v38, 0.0  ;;  %v1552_v47 = vadd.f32 %v1551_v43, %v2891_v7  ;;  %v1745_v48 = vadd.f32 %v1744_v44, %v2893_v8  ;;  %v1553_v49 = vpop.f32.mrb[47].mxu0  ;;  %v1746_v50 = vpop.f32.mrb[47].mxu1 }
 0x1bf   : > { %v1878_v51 = vmax.f32 %v1550_v41, 0.0  ;;  %v1880_v52 = vmax.f32 %v1743_v42, 0.0  ;;  %v1554_v53 = vadd.f32 %v1553_v49, %v2895_v9  ;;  %v1747_v54 = vadd.f32 %v1746_v50, %v2897_v10 }
 0x1c0   : > { %2005 = vst [vmem:[%s2905_s13 + $0x2c0] sm:$0xff] %v1877_v45  ;;  %2007 = vst [vmem:[%s2905_s13 + $0x2d0] sm:$0xff] %v1879_v46  ;;  %v1881_v55 = vmax.f32 %v1552_v47, 0.0  ;;  %v1883_v56 = vmax.f32 %v1745_v48, 0.0 }
 0x1c1   : > { %2006 = vst [vmem:[%s2905_s13 + $0x2c8] sm:$0xff] %v1878_v51  ;;  %2008 = vst [vmem:[%s2905_s13 + $0x2d8] sm:$0xff] %v1880_v52  ;;  %v1882_v57 = vmax.f32 %v1554_v53, 0.0  ;;  %v1884_v58 = vmax.f32 %v1747_v54, 0.0 }
 0x1c2   : > { %2009 = vst [vmem:[%s2905_s13 + $0x2e0] sm:$0xff] %v1881_v55  ;;  %2011 = vst [vmem:[%s2905_s13 + $0x2f0] sm:$0xff] %v1883_v56 }
 0x1c3   : > { %2010 = vst [vmem:[%s2905_s13 + $0x2e8] sm:$0xff] %v1882_v57  ;;  %2012 = vst [vmem:[%s2905_s13 + $0x2f8] sm:$0xff] %v1884_v58  ;;  %v1557_v59 = vpop.f32.mrb[48].mxu0  ;;  %v1750_v60 = vpop.f32.mrb[48].mxu1 }
 0x1c4   : > { %v1558_v61 = vadd.f32 %v1557_v59, %v2891_v7  ;;  %v1751_v62 = vadd.f32 %v1750_v60, %v2893_v8  ;;  %v1559_v63 = vpop.f32.mrb[49].mxu0  ;;  %v1752_v0 = vpop.f32.mrb[49].mxu1 }
 0x1c5   : > { %v1560_v1 = vadd.f32 %v1559_v63, %v2895_v9  ;;  %v1753_v2 = vadd.f32 %v1752_v0, %v2897_v10  ;;  %v1561_v3 = vpop.f32.mrb[50].mxu0  ;;  %v1754_v4 = vpop.f32.mrb[50].mxu1 }
 0x1c6   : > { %v1885_v5 = vmax.f32 %v1558_v61, 0.0  ;;  %v1887_v6 = vmax.f32 %v1751_v62, 0.0  ;;  %v1562_v11 = vadd.f32 %v1561_v3, %v2891_v7  ;;  %v1755_v12 = vadd.f32 %v1754_v4, %v2893_v8  ;;  %v1563_v13 = vpop.f32.mrb[51].mxu0  ;;  %v1756_v14 = vpop.f32.mrb[51].mxu1 }
 0x1c7   : > { %v1886_v15 = vmax.f32 %v1560_v1, 0.0  ;;  %v1888_v16 = vmax.f32 %v1753_v2, 0.0  ;;  %v1564_v17 = vadd.f32 %v1563_v13, %v2895_v9  ;;  %v1757_v18 = vadd.f32 %v1756_v14, %v2897_v10 }
 0x1c8   : > { %2013 = vst [vmem:[%s2905_s13 + $0x300] sm:$0xff] %v1885_v5  ;;  %2015 = vst [vmem:[%s2905_s13 + $0x310] sm:$0xff] %v1887_v6  ;;  %v1889_v19 = vmax.f32 %v1562_v11, 0.0  ;;  %v1891_v20 = vmax.f32 %v1755_v12, 0.0 }
 0x1c9   : > { %2014 = vst [vmem:[%s2905_s13 + $0x308] sm:$0xff] %v1886_v15  ;;  %2016 = vst [vmem:[%s2905_s13 + $0x318] sm:$0xff] %v1888_v16  ;;  %v1890_v21 = vmax.f32 %v1564_v17, 0.0  ;;  %v1892_v22 = vmax.f32 %v1757_v18, 0.0 }
 0x1ca   : > { %2017 = vst [vmem:[%s2905_s13 + $0x320] sm:$0xff] %v1889_v19  ;;  %2019 = vst [vmem:[%s2905_s13 + $0x330] sm:$0xff] %v1891_v20 }
 0x1cb   : > { %2018 = vst [vmem:[%s2905_s13 + $0x328] sm:$0xff] %v1890_v21  ;;  %2020 = vst [vmem:[%s2905_s13 + $0x338] sm:$0xff] %v1892_v22  ;;  %v1567_v23 = vpop.f32.mrb[52].mxu0  ;;  %v1760_v24 = vpop.f32.mrb[52].mxu1 }
 0x1cc   : > { %v1568_v25 = vadd.f32 %v1567_v23, %v2891_v7  ;;  %v1761_v26 = vadd.f32 %v1760_v24, %v2893_v8  ;;  %v1569_v27 = vpop.f32.mrb[53].mxu0  ;;  %v1762_v28 = vpop.f32.mrb[53].mxu1 }
 0x1cd   : > { %v1570_v29 = vadd.f32 %v1569_v27, %v2895_v9  ;;  %v1763_v30 = vadd.f32 %v1762_v28, %v2897_v10  ;;  %v1571_v31 = vpop.f32.mrb[54].mxu0  ;;  %v1764_v32 = vpop.f32.mrb[54].mxu1 }
 0x1ce   : > { %v1893_v33 = vmax.f32 %v1568_v25, 0.0  ;;  %v1895_v34 = vmax.f32 %v1761_v26, 0.0  ;;  %v1572_v35 = vadd.f32 %v1571_v31, %v2891_v7  ;;  %v1765_v36 = vadd.f32 %v1764_v32, %v2893_v8  ;;  %v1573_v37 = vpop.f32.mrb[55].mxu0  ;;  %v1766_v38 = vpop.f32.mrb[55].mxu1 }
 0x1cf   : > { %v1894_v39 = vmax.f32 %v1570_v29, 0.0  ;;  %v1896_v40 = vmax.f32 %v1763_v30, 0.0  ;;  %v1574_v41 = vadd.f32 %v1573_v37, %v2895_v9  ;;  %v1767_v42 = vadd.f32 %v1766_v38, %v2897_v10 }
 0x1d0   : > { %2021 = vst [vmem:[%s2905_s13 + $0x340] sm:$0xff] %v1893_v33  ;;  %2023 = vst [vmem:[%s2905_s13 + $0x350] sm:$0xff] %v1895_v34  ;;  %v1897_v43 = vmax.f32 %v1572_v35, 0.0  ;;  %v1899_v44 = vmax.f32 %v1765_v36, 0.0 }
 0x1d1   : > { %2022 = vst [vmem:[%s2905_s13 + $0x348] sm:$0xff] %v1894_v39  ;;  %2024 = vst [vmem:[%s2905_s13 + $0x358] sm:$0xff] %v1896_v40  ;;  %v1898_v45 = vmax.f32 %v1574_v41, 0.0  ;;  %v1900_v46 = vmax.f32 %v1767_v42, 0.0 }
 0x1d2   : > { %2025 = vst [vmem:[%s2905_s13 + $0x360] sm:$0xff] %v1897_v43  ;;  %2027 = vst [vmem:[%s2905_s13 + $0x370] sm:$0xff] %v1899_v44 }
 0x1d3   : > { %2026 = vst [vmem:[%s2905_s13 + $0x368] sm:$0xff] %v1898_v45  ;;  %2028 = vst [vmem:[%s2905_s13 + $0x378] sm:$0xff] %v1900_v46  ;;  %v1577_v47 = vpop.f32.mrb[56].mxu0  ;;  %v1770_v48 = vpop.f32.mrb[56].mxu1 }
 0x1d4   : > { %v1578_v49 = vadd.f32 %v1577_v47, %v2891_v7  ;;  %v1771_v50 = vadd.f32 %v1770_v48, %v2893_v8  ;;  %v1579_v51 = vpop.f32.mrb[57].mxu0  ;;  %v1772_v52 = vpop.f32.mrb[57].mxu1 }
 0x1d5   : > { %v1580_v53 = vadd.f32 %v1579_v51, %v2895_v9  ;;  %v1773_v54 = vadd.f32 %v1772_v52, %v2897_v10  ;;  %v1581_v55 = vpop.f32.mrb[58].mxu0  ;;  %v1774_v56 = vpop.f32.mrb[58].mxu1 }
 0x1d6   : > { %v1901_v57 = vmax.f32 %v1578_v49, 0.0  ;;  %v1903_v58 = vmax.f32 %v1771_v50, 0.0  ;;  %v1582_v59 = vadd.f32 %v1581_v55, %v2891_v7  ;;  %v1775_v60 = vadd.f32 %v1774_v56, %v2893_v8  ;;  %v1583_v61 = vpop.f32.mrb[59].mxu0  ;;  %v1776_v62 = vpop.f32.mrb[59].mxu1 }
 0x1d7   : > { %v1902_v63 = vmax.f32 %v1580_v53, 0.0  ;;  %v1904_v0 = vmax.f32 %v1773_v54, 0.0  ;;  %v1584_v1 = vadd.f32 %v1583_v61, %v2895_v9  ;;  %v1777_v2 = vadd.f32 %v1776_v62, %v2897_v10 }
 0x1d8   : > { %2029 = vst [vmem:[%s2905_s13 + $0x380] sm:$0xff] %v1901_v57  ;;  %2031 = vst [vmem:[%s2905_s13 + $0x390] sm:$0xff] %v1903_v58  ;;  %v1905_v3 = vmax.f32 %v1582_v59, 0.0  ;;  %v1907_v4 = vmax.f32 %v1775_v60, 0.0 }
 0x1d9   : > { %2030 = vst [vmem:[%s2905_s13 + $0x388] sm:$0xff] %v1902_v63  ;;  %2032 = vst [vmem:[%s2905_s13 + $0x398] sm:$0xff] %v1904_v0  ;;  %v1906_v5 = vmax.f32 %v1584_v1, 0.0  ;;  %v1908_v6 = vmax.f32 %v1777_v2, 0.0 }
 0x1da   : > { %2033 = vst [vmem:[%s2905_s13 + $0x3a0] sm:$0xff] %v1905_v3  ;;  %2035 = vst [vmem:[%s2905_s13 + $0x3b0] sm:$0xff] %v1907_v4 }
 0x1db   : > { %2034 = vst [vmem:[%s2905_s13 + $0x3a8] sm:$0xff] %v1906_v5  ;;  %2036 = vst [vmem:[%s2905_s13 + $0x3b8] sm:$0xff] %v1908_v6  ;;  %v1587_v11 = vpop.f32.mrb[60].mxu0  ;;  %v1780_v12 = vpop.f32.mrb[60].mxu1 }
 0x1dc   : > { %v1588_v13 = vadd.f32 %v1587_v11, %v2891_v7  ;;  %v1781_v14 = vadd.f32 %v1780_v12, %v2893_v8  ;;  %v1589_v15 = vpop.f32.mrb[61].mxu0  ;;  %v1782_v16 = vpop.f32.mrb[61].mxu1 }
 0x1dd   : > { %v1590_v17 = vadd.f32 %v1589_v15, %v2895_v9  ;;  %v1783_v18 = vadd.f32 %v1782_v16, %v2897_v10  ;;  %v1591_v19 = vpop.f32.mrb[62].mxu0  ;;  %v1784_v20 = vpop.f32.mrb[62].mxu1 }
 0x1de   : > { %v1909_v21 = vmax.f32 %v1588_v13, 0.0  ;;  %v1911_v22 = vmax.f32 %v1781_v14, 0.0  ;;  %v1592_v23 = vadd.f32 %v1591_v19, %v2891_v7  ;;  %v1785_v24 = vadd.f32 %v1784_v20, %v2893_v8  ;;  %v1593_v25 = vpop.f32.mrb[63].mxu0  ;;  %v1786_v26 = vpop.f32.mrb[63].mxu1 }
 0x1df   : > { %v1910_v27 = vmax.f32 %v1590_v17, 0.0  ;;  %v1912_v28 = vmax.f32 %v1783_v18, 0.0  ;;  %v1594_v29 = vadd.f32 %v1593_v25, %v2895_v9  ;;  %v1787_v30 = vadd.f32 %v1786_v26, %v2897_v10 }
 0x1e0   : > { %2037 = vst [vmem:[%s2905_s13 + $0x3c0] sm:$0xff] %v1909_v21  ;;  %2039 = vst [vmem:[%s2905_s13 + $0x3d0] sm:$0xff] %v1911_v22  ;;  %v1913_v31 = vmax.f32 %v1592_v23, 0.0  ;;  %v1915_v32 = vmax.f32 %v1785_v24, 0.0 }
 0x1e1   : > { %2038 = vst [vmem:[%s2905_s13 + $0x3c8] sm:$0xff] %v1910_v27  ;;  %2040 = vst [vmem:[%s2905_s13 + $0x3d8] sm:$0xff] %v1912_v28  ;;  %v1914_v7 = vmax.f32 %v1594_v29, 0.0  ;;  %v1916_v33 = vmax.f32 %v1787_v30, 0.0 }
 0x1e2   : > { %2041 = vst [vmem:[%s2905_s13 + $0x3e0] sm:$0xff] %v1913_v31  ;;  %2043 = vst [vmem:[%s2905_s13 + $0x3f0] sm:$0xff] %v1915_v32 }
 0x1e3   : > { %2042 = vst [vmem:[%s2905_s13 + $0x3e8] sm:$0xff] %v1914_v7  ;;  %2044 = vst [vmem:[%s2905_s13 + $0x3f8] sm:$0xff] %v1916_v33 }
 0x1e4 PF: > { %s16_s21 = sadd.s32 1, %s2461_s21  }
 0x1e5   : > { %p13_p4 = scmp.ge.s32.totalorder %s16_s21, 4  }
 0x1e7   :  { %15 = sbr.rel (!%p13_p4) target bundleno = 1 (0x1), region = 83 }

</bundles_post_ra>
